<compile_context>
chip_gen: v7x
topology: tpu7x:2x2x1
jax: 0.10.0
libtpu: 0.0.40
codegen_flags: <defaults>
</compile_context>

<pallas_src>
import functools

import jax
import jax.numpy as jnp
import numpy as np
from jax.experimental import pallas as pl
from jax.experimental.pallas import tpu as pltpu

# Make the pure-JAX reference matmuls full f32 so kernel-vs-reference argmax
# decisions cannot diverge from default (bf16-ish) XLA matmul precision.
jax.config.update("jax_default_matmul_precision", "highest")


def _round_up(x, m):
    return ((x + m - 1) // m) * m


# ----------------------------------------------------------------------------
# Fused Pallas kernel: for each grid step b (= block_idx):
#   embed -> LSTMCell(embed, (hx, cx)) -> decoder[b] -> *(1/T) -> tanh_c*tanh
#   -> greedy next token -> one-hot embedding gather for block b+1
# State (embed, hx packed in xh_sc; cx in its resident output block) never
# leaves VMEM between blocks.
# ----------------------------------------------------------------------------
def _controller_fused_kernel(x0_ref, hx0_ref, cx0_ref, enc_ref, w_ref, b_ref,
                             dec_w_ref, dec_b_ref,
                             logits_ref, hx_ref, cx_ref,
                             xh_sc,
                             *, hp, n_tok, inv_temp, tanh_c, is_train):
    blk = pl.program_id(0)

    @pl.when(blk == 0)
    def _init():
        # Block 0: is_embed=True — raw (zero) "embedding" fed directly.
        xh_sc[:, :hp] = x0_ref[...]
        xh_sc[:, hp:] = hx0_ref[...]
        cx_ref[...] = cx0_ref[...]

    xh = xh_sc[...]                    # (B, 2*Hp) = [embed | h]
    c = cx_ref[...]                    # (B, Hp)

    # Single fused gate matmul: [x, h] @ [W_ih ; W_hh] + (b_ih + b_hh)
    gates = jnp.dot(xh, w_ref[...], preferred_element_type=jnp.float32) + b_ref[...]

    i = jax.nn.sigmoid(gates[:, 0 * hp:1 * hp])
    f = jax.nn.sigmoid(gates[:, 1 * hp:2 * hp])
    g = jnp.tanh(gates[:, 2 * hp:3 * hp])
    o = jax.nn.sigmoid(gates[:, 3 * hp:4 * hp])

    c_new = f * c + i * g
    h_new = o * jnp.tanh(c_new)

    # Decoder for this block (selected via BlockSpec index_map) + temperature.
    logits = (jnp.dot(h_new, dec_w_ref[...], preferred_element_type=jnp.float32)
              + dec_b_ref[...])
    logits = logits * inv_temp
    if is_train:
        logits = tanh_c * jnp.tanh(logits)

    logits_ref[...] = logits           # lane-dense (B, 128) store
    hx_ref[...] = h_new                # resident output blocks -> written back
    cx_ref[...] = c_new                #   to HBM once, after the last block
    xh_sc[:, hp:] = h_new              # carry h for the next block

    # Next-block embedding: greedy (argmax) token as a deterministic stand-in
    # for probs.multinomial in sample(), then a one-hot @ table MXU gather.
    # TODO(synk): probs.multinomial sampling / log_prob gather from sample()
    # are host-side RNG control flow; the kernel uses greedy token selection.
    @pl.when(blk + 1 < pl.num_programs(0))
    def _next_embed():
        bsz, tokp = logits.shape
        col = jax.lax.broadcasted_iota(jnp.int32, (bsz, tokp), 1)
        masked = jnp.where(col < n_tok, logits, jnp.float32(-1e30))
        mx = jnp.max(masked, axis=-1, keepdims=True)
        # first index achieving the max (matches jnp.argmax tie-breaking)
        action = jnp.min(jnp.where(masked == mx, col, tokp),
                         axis=-1, keepdims=True)            # (B, 1) int32
        enc_rows = enc_ref.shape[0]
        row = jax.lax.broadcasted_iota(jnp.int32, (bsz, enc_rows), 1)
        onehot = (row == action).astype(jnp.float32)          # (B, enc_rows)
        embed_next = jnp.dot(onehot, enc_ref[...],
                             preferred_element_type=jnp.float32)
        xh_sc[:, :hp] = embed_next


# ----------------------------------------------------------------------------
# One-time parameter preparation (hoisted out of the hot path)
# ----------------------------------------------------------------------------
def prepare_controller_params(raw, args):
    H = args["controller_hid"]
    n_tok = len(args["shared_lr_list"])
    num_blocks = args["num_blocks"]
    n_total = num_blocks * n_tok

    Hp = _round_up(H, 128)
    TOKp = _round_up(n_tok, 128)
    ENCp = _round_up(n_total, 128)

    wih_t = np.asarray(raw["w_ih"]).T          # (H, 4H)
    whh_t = np.asarray(raw["w_hh"]).T          # (H, 4H)
    bias = np.asarray(raw["b_ih"]) + np.asarray(raw["b_hh"])   # (4H,)

    w_cat = np.zeros((2 * Hp, 4 * Hp), np.float32)
    b = np.zeros((1, 4 * Hp), np.float32)
    for k in range(4):  # keep each gate lane-aligned at k*Hp
        w_cat[:H, k * Hp:k * Hp + H] = wih_t[:, k * H:(k + 1) * H]
        w_cat[Hp:Hp + H, k * Hp:k * Hp + H] = whh_t[:, k * H:(k + 1) * H]
        b[0, k * Hp:k * Hp + H] = bias[k * H:(k + 1) * H]

    enc = np.zeros((ENCp, Hp), np.float32)
    enc[:n_total, :H] = np.asarray(raw["encoder"])

    dec_w = np.zeros((num_blocks, Hp, TOKp), np.float32)
    dec_b = np.zeros((num_blocks, 1, TOKp), np.float32)
    for blk in range(num_blocks):
        dec_w[blk, :H, :n_tok] = np.asarray(raw["dec_w"][blk]).T
        dec_b[blk, 0, :n_tok] = np.asarray(raw["dec_b"][blk])

    return dict(
        w_cat=jnp.asarray(w_cat), b=jnp.asarray(b), enc=jnp.asarray(enc),
        dec_w=jnp.asarray(dec_w), dec_b=jnp.asarray(dec_b),
        H=H, Hp=Hp, n_tok=n_tok, TOKp=TOKp, num_blocks=num_blocks,
    )


# ----------------------------------------------------------------------------
# Wrapper == running Controller.forward() for block_idx = 0..num_blocks-1
# (static_inputs / static_init_hidden zeros, greedy next-token chaining)
# ----------------------------------------------------------------------------
def controller_sample_fused(params_p, args, batch_size):
    H, Hp = params_p["H"], params_p["Hp"]
    n_tok, TOKp = params_p["n_tok"], params_p["TOKp"]
    nb = params_p["num_blocks"]
    ENCp = params_p["enc"].shape[0]
    B = batch_size
    assert B % 8 == 0, "batch must be a sublane multiple for this demo"

    # static_inputs / static_init_hidden (already at padded width)
    x0 = jnp.zeros((B, Hp), jnp.float32)
    hx0 = jnp.zeros((B, Hp), jnp.float32)
    cx0 = jnp.zeros((B, Hp), jnp.float32)

    kernel = functools.partial(
        _controller_fused_kernel,
        hp=Hp, n_tok=n_tok,
        inv_temp=1.0 / float(args["softmax_temperature"]),
        tanh_c=float(args["tanh_c"]),
        is_train=(args["mode"] == "train"),
    )

    grid_spec = pltpu.PrefetchScalarGridSpec(
        num_scalar_prefetch=0,
        grid=(nb,),
        in_specs=[
            pl.BlockSpec((B, Hp), lambda b: (0, 0)),              # x0
            pl.BlockSpec((B, Hp), lambda b: (0, 0)),              # hx0
            pl.BlockSpec((B, Hp), lambda b: (0, 0)),              # cx0
            pl.BlockSpec((ENCp, Hp), lambda b: (0, 0)),           # encoder (resident)
            pl.BlockSpec((2 * Hp, 4 * Hp), lambda b: (0, 0)),     # [W_ih;W_hh] (resident)
            pl.BlockSpec((1, 4 * Hp), lambda b: (0, 0)),          # fused bias
            pl.BlockSpec((None, Hp, TOKp), lambda b: (b, 0, 0)),  # dec_w[b]
            pl.BlockSpec((None, 1, TOKp), lambda b: (b, 0, 0)),   # dec_b[b]
        ],
        out_specs=[
            pl.BlockSpec((None, B, TOKp), lambda b: (b, 0, 0)),   # logits per block
            pl.BlockSpec((B, Hp), lambda b: (0, 0)),              # hx (resident carry)
            pl.BlockSpec((B, Hp), lambda b: (0, 0)),              # cx (resident carry)
        ],
        scratch_shapes=[pltpu.VMEM((B, 2 * Hp), jnp.float32)],    # [embed | h] carry
    )

    logits_p, hx_p, cx_p = pl.pallas_call(
        kernel,
        grid_spec=grid_spec,
        out_shape=[
            jax.ShapeDtypeStruct((nb, B, TOKp), jnp.float32),
            jax.ShapeDtypeStruct((B, Hp), jnp.float32),
            jax.ShapeDtypeStruct((B, Hp), jnp.float32),
        ],
        compiler_params=pltpu.CompilerParams(
            dimension_semantics=("arbitrary",)),   # recurrent block axis
    )(x0, hx0, cx0, params_p["enc"], params_p["w_cat"], params_p["b"],
      params_p["dec_w"], params_p["dec_b"])

    logits = logits_p[:, :, :n_tok]                         # strip lane padding
    actions = jnp.argmax(logits, axis=-1).astype(jnp.int32)  # greedy tokens
    return logits, actions, (hx_p[:, :H], cx_p[:, :H])


# ----------------------------------------------------------------------------
# Pure-JAX reference (mirrors PyTorch Controller.forward in a block loop)
# ----------------------------------------------------------------------------
def reference_sample(raw, args, batch_size):
    H = args["controller_hid"]
    B = batch_size
    embed = jnp.zeros((B, H), jnp.float32)
    hx = jnp.zeros((B, H), jnp.float32)
    cx = jnp.zeros((B, H), jnp.float32)
    logits_all, actions_all = [], []
    for blk in range(args["num_blocks"]):
        gates = (embed @ raw["w_ih"].T + raw["b_ih"]
                 + hx @ raw["w_hh"].T + raw["b_hh"])
        i, f, g, o = jnp.split(gates, 4, axis=1)
        i, f, g, o = (jax.nn.sigmoid(i), jax.nn.sigmoid(f),
                      jnp.tanh(g), jax.nn.sigmoid(o))
        cx = f * cx + i * g
        hx = o * jnp.tanh(cx)
        logits = hx @ raw["dec_w"][blk].T + raw["dec_b"][blk]
        logits = logits / args["softmax_temperature"]
        if args["mode"] == "train":
            logits = args["tanh_c"] * jnp.tanh(logits)
        logits_all.append(logits)
        action = jnp.argmax(logits, axis=-1).astype(jnp.int32)
        actions_all.append(action)
        embed = raw["encoder"][action]     # next-block embedding lookup
    return jnp.stack(logits_all), jnp.stack(actions_all), (hx, cx)


if __name__ == "__main__":
    # Small, deterministic config consistent with the module's __init__.
    args = dict(
        num_blocks=3,
        shared_lr_list=[0.1, 0.01, 0.001, 0.0001],   # -> 4 tokens per block
        controller_hid=32,
        controller_init_range=0.1,
        softmax_temperature=5.0,
        tanh_c=2.5,
        mode="train",
    )
    H = args["controller_hid"]
    n_tok = len(args["shared_lr_list"])
    n_total_tok = args["num_blocks"] * n_tok
    B = 8

    key = jax.random.PRNGKey(0)
    ks = jax.random.split(key, 6)
    r = args["controller_init_range"]
    uni = lambda k, shp: jax.random.uniform(k, shp, jnp.float32, -r, r)

    raw_params = dict(
        encoder=uni(ks[0], (n_total_tok, H)),                       # Embedding
        w_ih=uni(ks[1], (4 * H, H)),                                # LSTMCell
        w_hh=uni(ks[2], (4 * H, H)),
        b_ih=uni(ks[3], (4 * H,)),
        b_hh=uni(ks[4], (4 * H,)),
        dec_w=uni(ks[5], (args["num_blocks"], n_tok, H)),           # decoders
        dec_b=jnp.zeros((args["num_blocks"], n_tok), jnp.float32),  # bias = 0
    )

    # One-time prep (pre-transpose, fuse biases, pad to lane-aligned layouts).
    params_p = prepare_controller_params(raw_params, args)

    logits, actions, (hx, cx) = controller_sample_fused(params_p, args, B)
    jax.block_until_ready((logits, actions, hx, cx))

    ref_logits, ref_actions, (ref_hx, ref_cx) = reference_sample(raw_params, args, B)

    np.testing.assert_allclose(np.asarray(logits), np.asarray(ref_logits),
                               rtol=1e-3, atol=1e-4)
    np.testing.assert_array_equal(np.asarray(actions), np.asarray(ref_actions))
    np.testing.assert_allclose(np.asarray(hx), np.asarray(ref_hx),
                               rtol=1e-3, atol=1e-4)
    np.testing.assert_allclose(np.asarray(cx), np.asarray(ref_cx),
                               rtol=1e-3, atol=1e-4)

    print("KERNEL_OK")
</pallas_src>

<mosaic_0001>
module attributes {stable_mosaic.version = 11 : i64} {
  func.func @_controller_fused_kernel(%arg0: i32, %arg1: memref<8x128xf32, #tpu.memory_space<vmem>>, %arg2: memref<8x128xf32, #tpu.memory_space<vmem>>, %arg3: memref<8x128xf32, #tpu.memory_space<vmem>>, %arg4: memref<128x128xf32, #tpu.memory_space<vmem>>, %arg5: memref<256x512xf32, #tpu.memory_space<vmem>>, %arg6: memref<1x512xf32, #tpu.memory_space<vmem>>, %arg7: memref<1x128x128xf32, #tpu.memory_space<vmem>>, %arg8: memref<1x1x128xf32, #tpu.memory_space<vmem>>, %arg9: memref<1x8x128xf32, #tpu.memory_space<vmem>>, %arg10: memref<8x128xf32, #tpu.memory_space<vmem>>, %arg11: memref<8x128xf32, #tpu.memory_space<vmem>>, %arg12: memref<8x256xf32, #tpu.memory_space<vmem>>) attributes {dimension_semantics = [#tpu.dimension_semantics<arbitrary>], iteration_bounds = array<i64: 3>, scalar_prefetch = 0 : i64, scratch_operands = 1 : i64, tpu.core_type = #tpu.core_type<tc>, window_params = [{pipeline_mode = #tpu.pipeline_mode<synchronous>, transform_indices = @transform_0, window_bounds = array<i64: 8, 128>}, {pipeline_mode = #tpu.pipeline_mode<synchronous>, transform_indices = @transform_1, window_bounds = array<i64: 8, 128>}, {pipeline_mode = #tpu.pipeline_mode<synchronous>, transform_indices = @transform_2, window_bounds = array<i64: 8, 128>}, {pipeline_mode = #tpu.pipeline_mode<synchronous>, transform_indices = @transform_3, window_bounds = array<i64: 128, 128>}, {pipeline_mode = #tpu.pipeline_mode<synchronous>, transform_indices = @transform_4, window_bounds = array<i64: 256, 512>}, {pipeline_mode = #tpu.pipeline_mode<synchronous>, transform_indices = @transform_5, window_bounds = array<i64: 1, 512>}, {transform_indices = @transform_6, window_bounds = array<i64: 1, 128, 128>}, {transform_indices = @transform_7, window_bounds = array<i64: 1, 1, 128>}, {transform_indices = @transform_8, window_bounds = array<i64: 1, 8, 128>}, {pipeline_mode = #tpu.pipeline_mode<synchronous>, transform_indices = @transform_9, window_bounds = array<i64: 8, 128>}, {pipeline_mode = #tpu.pipeline_mode<synchronous>, transform_indices = @transform_10, window_bounds = array<i64: 8, 128>}]} {
    %c0_i32 = arith.constant 0 : i32
    %0 = arith.cmpi eq, %arg0, %c0_i32 : i32
    %1 = arith.extui %0 : i1 to i32
    %c0_i32_0 = arith.constant 0 : i32
    %2 = arith.cmpi ne, %1, %c0_i32_0 : i32
    scf.if %2 {
      %c0_29 = arith.constant 0 : index
      %c0_30 = arith.constant 0 : index
      %57 = vector.load %arg1[%c0_29, %c0_30] : memref<8x128xf32, #tpu.memory_space<vmem>>, vector<8x128xf32>
      %c0_31 = arith.constant 0 : index
      %c0_32 = arith.constant 0 : index
      %58 = vector.load %arg12[%c0_31, %c0_32] : memref<8x256xf32, #tpu.memory_space<vmem>>, vector<8x128xf32>
      tpu.vector_store %arg12[%c0_31, %c0_32], %57 {strides = array<i32>} : memref<8x256xf32, #tpu.memory_space<vmem>>, vector<8x128xf32>,
      %c0_33 = arith.constant 0 : index
      %c0_34 = arith.constant 0 : index
      %59 = vector.load %arg2[%c0_33, %c0_34] : memref<8x128xf32, #tpu.memory_space<vmem>>, vector<8x128xf32>
      %c0_35 = arith.constant 0 : index
      %c128_36 = arith.constant 128 : index
      %60 = vector.load %arg12[%c0_35, %c128_36] : memref<8x256xf32, #tpu.memory_space<vmem>>, vector<8x128xf32>
      tpu.vector_store %arg12[%c0_35, %c128_36], %59 {strides = array<i32>} : memref<8x256xf32, #tpu.memory_space<vmem>>, vector<8x128xf32>,
      %c0_37 = arith.constant 0 : index
      %c0_38 = arith.constant 0 : index
      %61 = vector.load %arg3[%c0_37, %c0_38] : memref<8x128xf32, #tpu.memory_space<vmem>>, vector<8x128xf32>
      %c0_39 = arith.constant 0 : index
      %c0_40 = arith.constant 0 : index
      %62 = vector.load %arg11[%c0_39, %c0_40] : memref<8x128xf32, #tpu.memory_space<vmem>>, vector<8x128xf32>
      tpu.vector_store %arg11[%c0_39, %c0_40], %61 {strides = array<i32>} : memref<8x128xf32, #tpu.memory_space<vmem>>, vector<8x128xf32>,
    } else {
    }
    %c0 = arith.constant 0 : index
    %c0_1 = arith.constant 0 : index
    %3 = vector.load %arg12[%c0, %c0_1] : memref<8x256xf32, #tpu.memory_space<vmem>>, vector<8x256xf32>
    %c0_2 = arith.constant 0 : index
    %c0_3 = arith.constant 0 : index
    %4 = vector.load %arg11[%c0_2, %c0_3] : memref<8x128xf32, #tpu.memory_space<vmem>>, vector<8x128xf32>
    %c0_4 = arith.constant 0 : index
    %c0_5 = arith.constant 0 : index
    %5 = vector.load %arg5[%c0_4, %c0_5] : memref<256x512xf32, #tpu.memory_space<vmem>>, vector<256x512xf32>
    %cst = arith.constant dense<0.000000e+00> : vector<8x512xf32>
    %6 = tpu.matmul %3, %5, %cst {dimension_numbers = #tpu.dot_dimension_numbers<[1], [0], [0], [1], [0, 0, 1, 1], [], []>, precision = #tpu.contract_precision<fp32>} : vector<8x256xf32>, vector<256x512xf32>, vector<8x512xf32> -> vector<8x512xf32>
    %c0_6 = arith.constant 0 : index
    %c0_7 = arith.constant 0 : index
    %7 = vector.load %arg6[%c0_6, %c0_7] : memref<1x512xf32, #tpu.memory_space<vmem>>, vector<1x512xf32>
    %8 = vector.broadcast %7 : vector<1x512xf32> to vector<8x512xf32>
    %9 = arith.addf %6, %8 : vector<8x512xf32>
    %10 = vector.extract_strided_slice %9 {offsets = [0, 0], sizes = [8, 128], strides = [1, 1]} : vector<8x512xf32> to vector<8x128xf32>
    %11 = arith.negf %10 : vector<8x128xf32>
    %12 = math.exp %11 : vector<8x128xf32>
    %cst_8 = arith.constant 1.000000e+00 : f32
    %13 = vector.broadcast %cst_8 : f32 to vector<8x128xf32>
    %14 = arith.addf %13, %12 : vector<8x128xf32>
    %15 = arith.divf %13, %14 : vector<8x128xf32>
    %16 = vector.extract_strided_slice %9 {offsets = [0, 128], sizes = [8, 128], strides = [1, 1]} : vector<8x512xf32> to vector<8x128xf32>
    %17 = arith.negf %16 : vector<8x128xf32>
    %18 = math.exp %17 : vector<8x128xf32>
    %cst_9 = arith.constant 1.000000e+00 : f32
    %19 = vector.broadcast %cst_9 : f32 to vector<8x128xf32>
    %20 = arith.addf %19, %18 : vector<8x128xf32>
    %21 = arith.divf %19, %20 : vector<8x128xf32>
    %22 = vector.extract_strided_slice %9 {offsets = [0, 256], sizes = [8, 128], strides = [1, 1]} : vector<8x512xf32> to vector<8x128xf32>
    %23 = math.tanh %22 : vector<8x128xf32>
    %24 = vector.extract_strided_slice %9 {offsets = [0, 384], sizes = [8, 128], strides = [1, 1]} : vector<8x512xf32> to vector<8x128xf32>
    %25 = arith.negf %24 : vector<8x128xf32>
    %26 = math.exp %25 : vector<8x128xf32>
    %cst_10 = arith.constant 1.000000e+00 : f32
    %27 = vector.broadcast %cst_10 : f32 to vector<8x128xf32>
    %28 = arith.addf %27, %26 : vector<8x128xf32>
    %29 = arith.divf %27, %28 : vector<8x128xf32>
    %30 = arith.mulf %21, %4 : vector<8x128xf32>
    %31 = arith.mulf %15, %23 : vector<8x128xf32>
    %32 = arith.addf %30, %31 : vector<8x128xf32>
    %33 = math.tanh %32 : vector<8x128xf32>
    %34 = arith.mulf %29, %33 : vector<8x128xf32>
    %c0_11 = arith.constant 0 : index
    %c0_12 = arith.constant 0 : index
    %c0_13 = arith.constant 0 : index
    %35 = vector.load %arg7[%c0_11, %c0_12, %c0_13] : memref<1x128x128xf32, #tpu.memory_space<vmem>>, vector<1x128x128xf32>
    %36 = vector.shape_cast %35 : vector<1x128x128xf32> to vector<128x128xf32>
    %cst_14 = arith.constant dense<0.000000e+00> : vector<8x128xf32>
    %37 = tpu.matmul %34, %36, %cst_14 {dimension_numbers = #tpu.dot_dimension_numbers<[1], [0], [0], [1], [0, 0, 1, 1], [], []>, precision = #tpu.contract_precision<fp32>} : vector<8x128xf32>, vector<128x128xf32>, vector<8x128xf32> -> vector<8x128xf32>
    %c0_15 = arith.constant 0 : index
    %c0_16 = arith.constant 0 : index
    %c0_17 = arith.constant 0 : index
    %38 = vector.load %arg8[%c0_15, %c0_16, %c0_17] : memref<1x1x128xf32, #tpu.memory_space<vmem>>, vector<1x1x128xf32>
    %39 = vector.shape_cast %38 : vector<1x1x128xf32> to vector<1x128xf32>
    %40 = vector.broadcast %39 : vector<1x128xf32> to vector<8x128xf32>
    %41 = arith.addf %37, %40 : vector<8x128xf32>
    %cst_18 = arith.constant 2.000000e-01 : f32
    %42 = vector.broadcast %cst_18 : f32 to vector<8x128xf32>
    %43 = arith.mulf %41, %42 : vector<8x128xf32>
    %44 = math.tanh %43 : vector<8x128xf32>
    %cst_19 = arith.constant 2.500000e+00 : f32
    %45 = vector.broadcast %cst_19 : f32 to vector<8x128xf32>
    %46 = arith.mulf %45, %44 : vector<8x128xf32>
    %c0_20 = arith.constant 0 : index
    %c0_21 = arith.constant 0 : index
    %c0_22 = arith.constant 0 : index
    %47 = vector.load %arg9[%c0_20, %c0_21, %c0_22] : memref<1x8x128xf32, #tpu.memory_space<vmem>>, vector<1x8x128xf32>
    %48 = vector.shape_cast %47 : vector<1x8x128xf32> to vector<8x128xf32>
    %49 = vector.shape_cast %46 : vector<8x128xf32> to vector<1x8x128xf32>
    tpu.vector_store %arg9[%c0_20, %c0_21, %c0_22], %49 {strides = array<i32>} : memref<1x8x128xf32, #tpu.memory_space<vmem>>, vector<1x8x128xf32>,
    %c0_23 = arith.constant 0 : index
    %c0_24 = arith.constant 0 : index
    %50 = vector.load %arg10[%c0_23, %c0_24] : memref<8x128xf32, #tpu.memory_space<vmem>>, vector<8x128xf32>
    tpu.vector_store %arg10[%c0_23, %c0_24], %34 {strides = array<i32>} : memref<8x128xf32, #tpu.memory_space<vmem>>, vector<8x128xf32>,
    %c0_25 = arith.constant 0 : index
    %c0_26 = arith.constant 0 : index
    %51 = vector.load %arg11[%c0_25, %c0_26] : memref<8x128xf32, #tpu.memory_space<vmem>>, vector<8x128xf32>
    tpu.vector_store %arg11[%c0_25, %c0_26], %32 {strides = array<i32>} : memref<8x128xf32, #tpu.memory_space<vmem>>, vector<8x128xf32>,
    %c0_27 = arith.constant 0 : index
    %c128 = arith.constant 128 : index
    %52 = vector.load %arg12[%c0_27, %c128] : memref<8x256xf32, #tpu.memory_space<vmem>>, vector<8x128xf32>
    tpu.vector_store %arg12[%c0_27, %c128], %34 {strides = array<i32>} : memref<8x256xf32, #tpu.memory_space<vmem>>, vector<8x128xf32>,
    %c1_i32 = arith.constant 1 : i32
    %53 = arith.addi %arg0, %c1_i32 : i32
    %c3_i32 = arith.constant 3 : i32
    %54 = arith.cmpi slt, %53, %c3_i32 : i32
    %55 = arith.extui %54 : i1 to i32
    %c0_i32_28 = arith.constant 0 : i32
    %56 = arith.cmpi ne, %55, %c0_i32_28 : i32
    scf.if %56 {
      %57 = tpu.iota {dimensions = array<i32: 1>} : vector<8x128xi32>
      %c4_i32 = arith.constant 4 : i32
      %58 = vector.broadcast %c4_i32 : i32 to vector<8x128xi32>
      %59 = arith.cmpi slt, %57, %58 : vector<8x128xi32>
      %cst_29 = arith.constant -1.000000e+30 : f32
      %60 = vector.broadcast %cst_29 : f32 to vector<8x128xf32>
      %61 = arith.select %59, %46, %60 : vector<8x128xi1>, vector<8x128xf32>
      %cst_30 = arith.constant dense<0xFF800000> : vector<8xf32>
      %62 = vector.multi_reduction <maximumf>, %61, %cst_30 [1] : vector<8x128xf32> to vector<8xf32>
      %63 = vector.shape_cast %62 : vector<8xf32> to vector<8x1xf32>
      %64 = vector.broadcast %63 : vector<8x1xf32> to vector<8x128xf32>
      %65 = arith.cmpf oeq, %61, %64 : vector<8x128xf32>
      %c128_i32 = arith.constant 128 : i32
      %66 = vector.broadcast %c128_i32 : i32 to vector<8x128xi32>
      %67 = arith.select %65, %57, %66 : vector<8x128xi1>, vector<8x128xi32>
      %cst_31 = arith.constant dense<2147483647> : vector<8xi32>
      %68 = vector.multi_reduction <minsi>, %67, %cst_31 [1] : vector<8x128xi32> to vector<8xi32>
      %69 = vector.shape_cast %68 : vector<8xi32> to vector<8x1xi32>
      %70 = tpu.iota {dimensions = array<i32: 1>} : vector<8x128xi32>
      %71 = vector.broadcast %69 : vector<8x1xi32> to vector<8x128xi32>
      %72 = arith.cmpi eq, %70, %71 : vector<8x128xi32>
      %73 = arith.extui %72 : vector<8x128xi1> to vector<8x128xi32>
      %74 = arith.sitofp %73 : vector<8x128xi32> to vector<8x128xf32>
      %c0_32 = arith.constant 0 : index
      %c0_33 = arith.constant 0 : index
      %75 = vector.load %arg4[%c0_32, %c0_33] : memref<128x128xf32, #tpu.memory_space<vmem>>, vector<128x128xf32>
      %cst_34 = arith.constant dense<0.000000e+00> : vector<8x128xf32>
      %76 = tpu.matmul %74, %75, %cst_34 {dimension_numbers = #tpu.dot_dimension_numbers<[1], [0], [0], [1], [0, 0, 1, 1], [], []>, precision = #tpu.contract_precision<fp32>} : vector<8x128xf32>, vector<128x128xf32>, vector<8x128xf32> -> vector<8x128xf32>
      %c0_35 = arith.constant 0 : index
      %c0_36 = arith.constant 0 : index
      %77 = vector.load %arg12[%c0_35, %c0_36] : memref<8x256xf32, #tpu.memory_space<vmem>>, vector<8x128xf32>
      tpu.vector_store %arg12[%c0_35, %c0_36], %76 {strides = array<i32>} : memref<8x256xf32, #tpu.memory_space<vmem>>, vector<8x128xf32>,
    } else {
    }
    return
  }
  func.func @transform_0(%arg0: i32) -> (i32, i32) {
    %c0_i32 = arith.constant 0 : i32
    %c0_i32_0 = arith.constant 0 : i32
    %c0_i32_1 = arith.constant 0 : i32
    return %c0_i32, %c0_i32_0 : i32, i32
  }
  func.func @transform_1(%arg0: i32) -> (i32, i32) {
    %c0_i32 = arith.constant 0 : i32
    %c0_i32_0 = arith.constant 0 : i32
    %c0_i32_1 = arith.constant 0 : i32
    return %c0_i32, %c0_i32_0 : i32, i32
  }
  func.func @transform_2(%arg0: i32) -> (i32, i32) {
    %c0_i32 = arith.constant 0 : i32
    %c0_i32_0 = arith.constant 0 : i32
    %c0_i32_1 = arith.constant 0 : i32
    return %c0_i32, %c0_i32_0 : i32, i32
  }
  func.func @transform_3(%arg0: i32) -> (i32, i32) {
    %c0_i32 = arith.constant 0 : i32
    %c0_i32_0 = arith.constant 0 : i32
    %c0_i32_1 = arith.constant 0 : i32
    return %c0_i32, %c0_i32_0 : i32, i32
  }
  func.func @transform_4(%arg0: i32) -> (i32, i32) {
    %c0_i32 = arith.constant 0 : i32
    %c0_i32_0 = arith.constant 0 : i32
    %c0_i32_1 = arith.constant 0 : i32
    return %c0_i32, %c0_i32_0 : i32, i32
  }
  func.func @transform_5(%arg0: i32) -> (i32, i32) {
    %c0_i32 = arith.constant 0 : i32
    %c0_i32_0 = arith.constant 0 : i32
    %c0_i32_1 = arith.constant 0 : i32
    return %c0_i32, %c0_i32_0 : i32, i32
  }
  func.func @transform_6(%arg0: i32) -> (i32, i32, i32) {
    %c0_i32 = arith.constant 0 : i32
    %c0_i32_0 = arith.constant 0 : i32
    %c0_i32_1 = arith.constant 0 : i32
    return %arg0, %c0_i32, %c0_i32_0 : i32, i32, i32
  }
  func.func @transform_7(%arg0: i32) -> (i32, i32, i32) {
    %c0_i32 = arith.constant 0 : i32
    %c0_i32_0 = arith.constant 0 : i32
    %c0_i32_1 = arith.constant 0 : i32
    return %arg0, %c0_i32, %c0_i32_0 : i32, i32, i32
  }
  func.func @transform_8(%arg0: i32) -> (i32, i32, i32) {
    %c0_i32 = arith.constant 0 : i32
    %c0_i32_0 = arith.constant 0 : i32
    %c0_i32_1 = arith.constant 0 : i32
    return %arg0, %c0_i32, %c0_i32_0 : i32, i32, i32
  }
  func.func @transform_9(%arg0: i32) -> (i32, i32) {
    %c0_i32 = arith.constant 0 : i32
    %c0_i32_0 = arith.constant 0 : i32
    %c0_i32_1 = arith.constant 0 : i32
    return %c0_i32, %c0_i32_0 : i32, i32
  }
  func.func @transform_10(%arg0: i32) -> (i32, i32) {
    %c0_i32 = arith.constant 0 : i32
    %c0_i32_0 = arith.constant 0 : i32
    %c0_i32_1 = arith.constant 0 : i32
    return %c0_i32, %c0_i32_0 : i32, i32
  }
}

</mosaic_0001>

<bundles_post_ra>
// kernel: tpu_custom_call.1
= control target key start
LH: loop header
LB: loop body
LE: loop exit
PB: predicated region body
PF: predicated region fallthrough
CT: control target
= control target key end

     0   :  { %s10087_s0 = inlined_call_operand.hbm [shape: f32[8,128], index: 0, kind: input, shape index: {}]   ;;  %s10088_s1 = inlined_call_operand.hbm [shape: f32[8,128], index: 1, kind: input, shape index: {}]   ;;  %s10089_s2 = inlined_call_operand.hbm [shape: f32[8,128], index: 2, kind: input, shape index: {}]   ;;  %s10090_s3 = inlined_call_operand.hbm [shape: f32[128,128], index: 3, kind: input, shape index: {}]   ;;  %s10091_s4 = inlined_call_operand.hbm [shape: f32[256,512], index: 4, kind: input, shape index: {}]   ;;  %s10092_s5 = inlined_call_operand.vmem [shape: f32[1,512], index: 5, kind: input, shape index: {}]   ;;  %s10093_s6 = inlined_call_operand.hbm [shape: f32[3,128,128], index: 6, kind: input, shape index: {}]   ;;  %s10094_s7 = inlined_call_operand.vmem [shape: f32[3,1,128], index: 7, kind: input, shape index: {}]   ;;  %s10095_s8 = inlined_call_operand.hbm [shape: f32[3,8,128], index: 8, kind: output, shape index: {0}]   ;;  %s10096_s9 = inlined_call_operand.hbm [shape: f32[8,128], index: 9, kind: output, shape index: {1}]   ;;  %s10097_s10 = inlined_call_operand.hbm [shape: f32[8,128], index: 10, kind: output, shape index: {2}]  }
   0x1   :  { %10538 = sst [smem:[#allocation207_spill]] %s10087_s0 }
   0x2   :  { %10539 = sst [smem:[#allocation208_spill]] %s10088_s1 }
   0x3   :  { %10540 = sst [smem:[#allocation209_spill]] %s10089_s2 }
   0x4   :  { %16 = vsyncpa [#allocation4], 0 }
   0x5   :  { %17 = vsyncpa [#allocation7], 0 }
   0x6   :  { %18 = vsyncpa [#allocation10], 0 }
   0x7   :  { %19 = vsyncpa [#allocation13], 0 }
   0x8   :  { %21 = vsyncpa [#allocation13 + $0x1], 0 }
   0x9   :  { %22 = vsyncpa [#allocation5], 0 }
   0xa   :  { %24 = vsyncpa [#allocation5 + $0x1], 0 }
   0xb   :  { %25 = vsyncpa [#allocation16], 0  ;;  %s7037_s13 = smov 0   ;;  %s7039_s14 = smov 0  }
   0xc   :  { %s7041_s15 = smov 0   ;;  %s7043_s16 = smov 0  }
   0xd LB: > { %s6962_s17 = smov [#allocation6]   ;;  %s7058_s19 = sadd.s32 4294967295, %s6960_s16   ;;  %s6960_s16 = sphi %s7043_s16, %s11405_s16   ;;  %s6956_s15 = sphi %s7041_s15, %s11404_s15   ;;  %s6952_s14 = sphi %s7039_s14, %s11403_s14   ;;  %s6948_s13 = sphi %s7037_s13, %s11402_s13  }
   0xe   : > { %s306_s18 = sshll.u32 %s6962_s17, 4  ;;  %p4756_p0 = scmp.ge.s32.totalorder %s6960_s16, 1  ;;  %s307_s18 = int_to_ptr.vmem [resolvable:$true] %s306_s18 }
   0xf   : > { %p10098_p1 = scmp.eq.s32.totalorder %s7058_s19, 0  ;;  %p282_p2 = scmp.lt.s32.totalorder %s6960_s16, 4 }
  0x10   : > { %s6963_s21 = smov [#allocation9]   ;;  %s6964_s24 = smov [#allocation3]  }
  0x11   : > { %p7064_p4 = pnand %p4756_p0, %p282_p2  ;;  %s327_s22 = sshll.u32 %s6963_s21, 4  ;;  %s7070_s22 = int_to_ptr.vmem [resolvable:$true] %s327_s22 }
  0x12   : > { %s295_s25 = sshll.u32 %s6964_s24, 4  ;;  %s10543_s1 = sld [smem:[#allocation208_spill]]  ;;  %s7078_s25 = int_to_ptr.vmem [resolvable:$true] %s295_s25 }
  0x13   : > { %s10541_s20 = scalar_select %p7064_p4, 1, 0 }
  0x14   : > { %p6548_p5 = pneg %p7064_p4 }
  0x16   : > { %p7074_p6 = pnand %p6548_p5, %p10098_p1 }
  0x18   : > { %s6656_s28 = scalar_lea.hbm %s10543_s1, 128  ;;  %p7088_p8 = pneg %p7074_p6 }
  0x19   : > { %p6657_p7 = scmp.ne.s32.totalorder %s10543_s1, %s6656_s28  ;;  %p6663_p11 = scmp.lt.u32.totalorder %s6656_s28, %s10543_s1 }
  0x1b   : > { %p6659_p9 = pnand %p7088_p8, %p6657_p7 }
  0x1d   : > { %p6660_p10 = pneg %p6659_p9 }
  0x1f   : > { %p6665_p12 = pnand %p6663_p11, %p6660_p10 }
  0x21   : > { %6668 = shalt.err (!%p6665_p12)
}
  0x22   : > { %s6669_s21 = scalar_lea.vmem %s307_s18, 128  ;;  %p6677_p5 = scmp.lt.s32.totalorder %s307_s18, %s307_s18 }
  0x23   : > { %p6670_p13 = scmp.ne.s32.totalorder %s307_s18, %s6669_s21  ;;  %p6678_p3 = scmp.lt.s32.totalorder %s6669_s21, %s6669_s21 }
  0x25   : > { %p6672_p0 = pnand %p6670_p13, %p7088_p8  ;;  %p6679_p1 = por %p6678_p3, %p6677_p5 }
  0x27   : > { %p6673_p2 = pneg %p6672_p0 }
  0x29   : > { %p6680_p4 = pnand %p6679_p1, %p6673_p2 }
  0x2b   : > { %6683 = shalt.err (!%p6680_p4)
}
  0x2c   : > { %6554 = dma.hbm_to_vmem [thread:$0]  (!%p7074_p6), %s10543_s1, 128, %s307_s18, [#allocation7]  }
  0x2d   : > { %s6684_s29 = scalar_lea.hbm %s10090_s3, 2048 }
  0x2e   : > { %p6685_p7 = scmp.ne.s32.totalorder %s10090_s3, %s6684_s29  ;;  %p6691_p1 = scmp.lt.u32.totalorder %s6684_s29, %s10090_s3 }
  0x30   : > { %p6687_p9 = pnand %p6685_p7, %p7088_p8 }
  0x32   : > { %p6688_p3 = pneg %p6687_p9 }
  0x34   : > { %p6693_p4 = pnand %p6691_p1, %p6688_p3 }
  0x36   : > { %6696 = shalt.err (!%p6693_p4)
}
  0x37   : > { %s6697_s18 = scalar_lea.vmem %s7070_s22, 2048  ;;  %p6705_p13 = scmp.lt.s32.totalorder %s7070_s22, %s7070_s22 }
  0x38   : > { %p6698_p10 = scmp.ne.s32.totalorder %s7070_s22, %s6697_s18  ;;  %p6706_p0 = scmp.lt.s32.totalorder %s6697_s18, %s6697_s18 }
  0x3a   : > { %p6700_p11 = pnand %p6698_p10, %p7088_p8  ;;  %p6707_p2 = por %p6706_p0, %p6705_p13 }
  0x3c   : > { %p6701_p12 = pneg %p6700_p11 }
  0x3e   : > { %p6708_p5 = pnand %p6707_p2, %p6701_p12 }
  0x40   : > { %6711 = shalt.err (!%p6708_p5)
}
  0x41   : > { %s10100_s24 = smov 128   ;;  %s10101_s26 = smov 8  }
  0x42   : > { %6560 = dma.hbm_to_vmem [thread:$0]  (!%p7074_p6), %s10090_s3, 2048, %s7070_s22, [#allocation10], %s10100_s24, %s10100_s24, %s10101_s26  }
  0x43   : > { %s10545_s0 = sld [smem:[#allocation207_spill]] }
  0x49   : > { %s6712_s12 = scalar_lea.hbm %s10545_s0, 128 }
  0x4a   : > { %p6713_p7 = scmp.ne.s32.totalorder %s10545_s0, %s6712_s12  ;;  %p6719_p1 = scmp.lt.u32.totalorder %s6712_s12, %s10545_s0 }
  0x4c   : > { %p6715_p9 = pnand %p6713_p7, %p7088_p8 }
  0x4e   : > { %p6716_p3 = pneg %p6715_p9 }
  0x50   : > { %p6721_p4 = pnand %p6719_p1, %p6716_p3 }
  0x52   : > { %6724 = shalt.err (!%p6721_p4)
}
  0x53   : > { %s6725_s22 = scalar_lea.vmem %s7078_s25, 128  ;;  %p6733_p13 = scmp.lt.s32.totalorder %s7078_s25, %s7078_s25 }
  0x54   : > { %p6726_p10 = scmp.ne.s32.totalorder %s7078_s25, %s6725_s22  ;;  %p6734_p0 = scmp.lt.s32.totalorder %s6725_s22, %s6725_s22 }
  0x56   : > { %p6728_p11 = pnand %p6726_p10, %p7088_p8  ;;  %p6735_p2 = por %p6734_p0, %p6733_p13 }
  0x58   : > { %p6729_p12 = pneg %p6728_p11 }
  0x5a   : > { %p6736_p5 = pnand %p6735_p2, %p6729_p12 }
  0x5c   : > { %6739 = shalt.err (!%p6736_p5)
}
  0x5d   : > { %6551 = dma.hbm_to_vmem [thread:$0]  (!%p7074_p6), %s10545_s0, 128, %s7078_s25, [#allocation4]  }
  0x5e   : > { %s6967_s28 = smov [#allocation8]   ;;  %s6968_s30 = smov [#allocation11]  }
  0x5f   : > { %s317_s29 = sshll.u32 %s6967_s28, 4  ;;  %s340_s12 = sshll.u32 %s6968_s30, 4  ;;  %s318_s29 = int_to_ptr.vmem [resolvable:$true] %s317_s29  ;;  %s341_s12 = int_to_ptr.vmem [resolvable:$true] %s340_s12 }
  0x60   : > { %s10546_s2 = sld [smem:[#allocation209_spill]] }
  0x66   : > { %s6740_s18 = scalar_lea.hbm %s10546_s2, 128 }
  0x67   : > { %p6741_p7 = scmp.ne.s32.totalorder %s10546_s2, %s6740_s18  ;;  %p6747_p1 = scmp.lt.u32.totalorder %s6740_s18, %s10546_s2 }
  0x69   : > { %p6743_p9 = pnand %p6741_p7, %p7088_p8 }
  0x6b   : > { %p6744_p3 = pneg %p6743_p9 }
  0x6d   : > { %p6749_p4 = pnand %p6747_p1, %p6744_p3 }
  0x6f   : > { %6752 = shalt.err (!%p6749_p4)
}
  0x70   : > { %s6753_s25 = scalar_lea.vmem %s318_s29, 128  ;;  %p6761_p13 = scmp.lt.s32.totalorder %s318_s29, %s318_s29 }
  0x71   : > { %p6754_p10 = scmp.ne.s32.totalorder %s318_s29, %s6753_s25  ;;  %p6762_p0 = scmp.lt.s32.totalorder %s6753_s25, %s6753_s25 }
  0x73   : > { %p6756_p11 = pnand %p6754_p10, %p7088_p8  ;;  %p6763_p2 = por %p6762_p0, %p6761_p13 }
  0x75   : > { %p6757_p12 = pneg %p6756_p11 }
  0x77   : > { %p6764_p5 = pnand %p6763_p2, %p6757_p12 }
  0x79   : > { %6767 = shalt.err (!%p6764_p5)
}
  0x7a   : > { %6557 = dma.hbm_to_vmem [thread:$0]  (!%p7074_p6), %s10546_s2, 128, %s318_s29, [#allocation7]  }
  0x7b   : > { %s6768_s30 = scalar_lea.hbm %s10091_s4, 16384 }
  0x7c   : > { %p6769_p7 = scmp.ne.s32.totalorder %s10091_s4, %s6768_s30  ;;  %p6775_p1 = scmp.lt.u32.totalorder %s6768_s30, %s10091_s4 }
  0x7e   : > { %p6771_p9 = pnand %p6769_p7, %p7088_p8 }
  0x80   : > { %p6772_p3 = pneg %p6771_p9 }
  0x82   : > { %p6777_p4 = pnand %p6775_p1, %p6772_p3 }
  0x84   : > { %6780 = shalt.err (!%p6777_p4)
}
  0x85   : > { %s6781_s1 = scalar_lea.vmem %s341_s12, 16384  ;;  %p6789_p13 = scmp.lt.s32.totalorder %s341_s12, %s341_s12 }
  0x86   : > { %p6782_p10 = scmp.ne.s32.totalorder %s341_s12, %s6781_s1  ;;  %p6790_p0 = scmp.lt.s32.totalorder %s6781_s1, %s6781_s1 }
  0x88   : > { %p6784_p11 = pnand %p6782_p10, %p7088_p8  ;;  %p6791_p2 = por %p6790_p0, %p6789_p13 }
  0x8a   : > { %p6785_p12 = pneg %p6784_p11 }
  0x8c   : > { %p6792_p5 = pnand %p6791_p2, %p6785_p12 }
  0x8e   : > { %6795 = shalt.err (!%p6792_p5)
}
  0x8f   : > { %s6969_s29 = smov 512   ;;  %s6970_s11 = smov 32  }
  0x90   : > { %6563 = dma.hbm_to_vmem [thread:$0]  (!%p7074_p6), %s10091_s4, 16384, %s341_s12, [#allocation10], %s6969_s29, %s6969_s29, %s6970_s11  }
  0x91   : > { %s4755_s27 = sadd.s32 4294967294, %s6960_s16   ;;  %s7191_s26 = sadd.s32 1, %s6960_s16  }
  0x92   : > { %s164_s28 = sadd.s32 1, %s6956_s15  ;;  %s161_s30 = ssub.s32 %s6960_s16, %s7191_s26 }
  0x93   : > { %p171_p8 = scmp.ne.s32.totalorder %s6956_s15, %s6952_s14  ;;  %p162_p7 = scmp.eq.s32.totalorder %s161_s30, 0 }
  0x94   : > { %p172_p9 = scmp.eq.s32.totalorder %s6960_s16, 0  ;;  %p177_p3 = scmp.ne.s32.totalorder %s6952_s14, %s6948_s13 }
  0x95   : > { %p10102_p1 = scmp.eq.s32.totalorder %s7058_s19, 2  ;;  %p10547_p10 = scmp.eq.s32.totalorder %s7058_s19, 0 }
  0x96   : > { %s7203_s17 = scalar_select %p162_p7, %s6956_s15, %s164_s28  }
  0x97   : > { %p173_p4 = por %p172_p9, %p171_p8  ;;  %p7207_p11 = por %p10547_p10, %p177_p3 }
  0x98   : > { %p7213_p6 = por %p10102_p1, %p171_p8  ;;  %p233_p12 = scmp.eq.s32.totalorder %s4755_s27, 2 }
  0x99   : > { %p6577_p13 = scmp.lt.s32.totalorder %s6960_s16, 3  ;;  %s357_s21 = sand.u32 1, %s6956_s15  }
  0x9a   : > { %s10549_s12 = scalar_select %p7213_p6, 1, 0 }
  0x9b   : > { %p7219_p0 = por %p233_p12, %p177_p3  ;;  %s4763_s22 = sshll.u32 %s357_s21, 7 }
  0x9c   : > { %s4792_s1 = sshll.u32 %s6960_s16, 11  ;;  %s361_s24 = scalar_lea.vmem [#allocation12], %s4763_s22 }
  0x9d   : > { %s10550_s18 = scalar_select %p7219_p0, 1, 0 }
  0x9e   : > { %s7227_s25 = scalar_lea.hbm %s10093_s6, %s4792_s1  ;;  %s368_s28 = sshll.u32 %s361_s24, 4  ;;  %s7233_s28 = int_to_ptr.vmem [resolvable:$true] %s368_s28 }
  0x9f   : > { %p7229_p2 = pnand %p6577_p13, %p173_p4  ;;  %s7235_s30 = scalar_lea.sflag [#allocation13], %s357_s21 }
  0xa0   : > { %s6796_s0 = scalar_lea.hbm %s7227_s25, 2048  ;;  %s6801_s29 = scalar_lea.hbm %s10093_s6, 6144 }
  0xa1   : > { %p6797_p5 = scmp.ne.s32.totalorder %s7227_s25, %s6796_s0  ;;  %p6798_p8 = pneg %p7229_p2 }
  0xa2   : > { %p6802_p3 = scmp.lt.u32.totalorder %s7227_s25, %s10093_s6  ;;  %p6803_p4 = scmp.lt.u32.totalorder %s6801_s29, %s6796_s0 }
  0xa3   : > { %p6799_p7 = pnand %p6798_p8, %p6797_p5  ;;  %p6805_p12 = scmp.lt.u32.totalorder %s6796_s0, %s7227_s25 }
  0xa4   : > { %p6804_p10 = por %p6803_p4, %p6802_p3 }
  0xa5   : > { %p6800_p9 = pneg %p6799_p7 }
  0xa6   : > { %p6806_p13 = por %p6805_p12, %p6804_p10 }
  0xa8   : > { %p6807_p1 = pnand %p6806_p13, %p6800_p9 }
  0xaa   : > { %6810 = shalt.err (!%p6807_p1)
}
  0xab   : > { %s6811_s21 = scalar_lea.vmem %s7233_s28, 2048  ;;  %s6971_s22 = smov [#allocation12]  }
  0xac   : > { %p6812_p5 = scmp.ne.s32.totalorder %s7233_s28, %s6811_s21  ;;  %s6816_s1 = sshll.u32 %s6971_s22, 4  ;;  %s6817_s1 = int_to_ptr.vmem [resolvable:$false] %s6816_s1 }
  0xad   : > { %s6818_s11 = scalar_lea.vmem %s6817_s1, 4096  ;;  %p6819_p6 = scmp.lt.s32.totalorder %s7233_s28, %s6817_s1 }
  0xae   : > { %p6814_p7 = pnand %p6812_p5, %p6798_p8  ;;  %p6820_p3 = scmp.lt.s32.totalorder %s6818_s11, %s6811_s21 }
  0xb0   : > { %p6815_p0 = pneg %p6814_p7  ;;  %p6821_p4 = por %p6820_p3, %p6819_p6 }
  0xb2   : > { %p6822_p10 = pnand %p6821_p4, %p6815_p0 }
  0xb4   : > { %6825 = shalt.err (!%p6822_p10)
}
  0xb5   : > { %s10552_s0 = smov 8   ;;  %s10553_s29 = smov 128  }
  0xb6   : > { %6567 = dma.hbm_to_vmem [thread:$0]  (!%p7229_p2), %s7227_s25, 2048, %s7233_s28, %s7235_s30, %s10553_s29, %s10553_s29, %s10552_s0  }
  0xb7   : > { %p10554_p1 = scmp.ne.s32.totalorder %s10541_s20, 0 }
  0xb9   : > { %386 = sbr.rel (%p10554_p1) target bundleno = 2120 (0x848), region = 52 }
  0xc0   : > { %p10555_p8 = scmp.eq.s32.totalorder %s7058_s19, 0 }
  0xc2   : > { %6923 = dma.done.wait (%p10555_p8), [#allocation4], 128   ;;  %p10556_p9 = pmov %p10555_p8 }
  0xc3   : > { %p10557_p6 = pmov %p10555_p8 }
  0xc4   : > { %6925 = vsyncadd (%p10556_p9), [#allocation4], 4294967168 }
  0xc5   : > { %6927 = dma.done.wait (%p10557_p6), [#allocation7], 256   ;;  %p10558_p0 = pmov %p10557_p6 }
  0xc7   : > { %6929 = vsyncadd (%p10558_p0), [#allocation7], 4294967040  ;;  %p10559_p12 = pmov %p10558_p0 }
  0xc8   : > { %p10560_p2 = pmov %p10558_p0 }
  0xc9   : > { %6931 = dma.done.wait (%p10559_p12), [#allocation10], 18432  }
  0xca   : > { %6933 = vsyncadd (%p10560_p2), [#allocation10], 4294948864  ;;  %s7281_s20 = sand.u32 1, %s6952_s14  }
  0xcb   : > { %s4772_s25 = sshll.u32 %s7281_s20, 7  ;;  %s409_s28 = scalar_lea.sflag [#allocation13], %s7281_s20 }
  0xcc   : > { %s7285_s27 = scalar_lea.vmem [#allocation12], %s4772_s25 }
  0xcd   : > { %6935 = dma.done.wait (%p7207_p11), %s409_s28, 2048  }
  0xce   : > { %6937 = vsyncadd (%p7207_p11), %s409_s28, 4294965248  ;;  %s4773_s30 = sshll.u32 %s7281_s20, 3  ;;  %p452_p13 = scmp.lt.s32.totalorder %s7058_s19, 2 }
  0xcf   : > { %s7300_s11 = scalar_lea.vmem [#allocation14], %s4773_s30  ;;  %p10561_p5 = scmp.ne.s32.totalorder %s7058_s19, 0 }
  0xd0   : > { %s7294_s24 = scalar_select %p452_p13, %s7058_s19, 2 }
  0xd1   : > { %458 = sbr.rel (%p10561_p5) target bundleno = 216 (0xd8), region = 80  ;;  %v459_v0 = vld [vmem:[#allocation3] sm:$0xff] (!%p10561_p5)  ;;  %v461_v1 = vld [vmem:[#allocation6] sm:$0xff] (!%p10561_p5)  ;;  %v463_v2 = vld [vmem:[#allocation8] sm:$0xff] (!%p10561_p5) }
  0xd2   : > { %s454_s1 = scalar_lea.vmem %s10094_s7, %s7294_s24  ;;  %460 = vst [vmem:[#allocation2] sm:$0xff] (!%p10561_p5), %v459_v0  ;;  %462 = vst [vmem:[#allocation2 + $0x8] sm:$0xff] (!%p10561_p5), %v461_v1 }
  0xd3   : > { %464 = vst [vmem:[#allocation17] sm:$0xff] (!%p10561_p5), %v463_v2 }
  0xd8 PF: > { %v469_v3 = vld [vmem:[#allocation11 + $0x8] sm:$0xff]  ;;  %v468_v5 = vld [vmem:[#allocation11] sm:$0xff]  ;;  %vm6973_vm0 = vmmov 0   ;;  %s3881_s29 = sadd.s32 1, %s7058_s19 }
  0xd9   : > { %v473_v4 = vld [vmem:[#allocation11 + $0x28] sm:$0xff]  ;;  %v618_v6 = vand.u32 4294901760, %v469_v3  ;;  %v472_v8 = vld [vmem:[#allocation11 + $0x20] sm:$0xff]  ;;  %v620_v9 = vand.u32 4294901760, %v468_v5  ;;  %p4779_p11 = scmp.ge.s32.totalorder %s3881_s29, 3 }
  0xda   : > { %v622_v7 = vand.u32 4294901760, %v473_v4  ;;  %v477_v10 = vld [vmem:[#allocation11 + $0x48] sm:$0xff]  ;;  %v624_v12 = vand.u32 4294901760, %v472_v8  ;;  %v476_v15 = vld [vmem:[#allocation11 + $0x40] sm:$0xff]  ;;  %vm6976_vm4 = vmmov (!%p4779_p11), 0  }
  0xdb   : > { %v481_v11 = vld [vmem:[#allocation11 + $0x68] sm:$0xff]  ;;  %v626_v13 = vand.u32 4294901760, %v477_v10  ;;  %v480_v16 = vld [vmem:[#allocation11 + $0x60] sm:$0xff]  ;;  %v7306_v18 = vsub.f32 %v468_v5, %v620_v9  ;;  %v628_v19 = vand.u32 4294901760, %v476_v15  ;;  %v7322_v33 = vsub.f32 %v469_v3, %v618_v6 }
  0xdc   : > { %v630_v14 = vand.u32 4294901760, %v481_v11  ;;  %v7304_v17 = vpack.c.bf16 %v622_v7, %v618_v6  ;;  %v632_v20 = vand.u32 4294901760, %v480_v16  ;;  %v485_v21 = vld [vmem:[#allocation11 + $0x88] sm:$0xff]  ;;  %v7308_v23 = vpack.c.bf16 %v624_v12, %v620_v9  ;;  %v484_v26 = vld [vmem:[#allocation11 + $0x80] sm:$0xff] }
  0xdd   : > { %10563 = vst [vmem:[#allocation25_spill] sm:$0xff] %v7306_v18  ;;  %v489_v22 = vld [vmem:[#allocation11 + $0xa8] sm:$0xff]  ;;  %v7310_v24 = vsub.f32 %v472_v8, %v624_v12  ;;  %v488_v27 = vld [vmem:[#allocation11 + $0xa0] sm:$0xff]  ;;  %v7315_v28 = vsub.f32 %v477_v10, %v626_v13  ;;  %v634_v31 = vand.u32 4294901760, %v485_v21  ;;  %10570 = vst [vmem:[#allocation32_spill] sm:$0xff] %v7322_v33  ;;  %v7324_v34 = vsub.f32 %v473_v4, %v622_v7 }
  0xde   : > { %10562 = vst [vmem:[#allocation24_spill] sm:$0xff] %v7304_v17  ;;  %10564 = vst [vmem:[#allocation26_spill] sm:$0xff] %v7308_v23  ;;  %v7312_v25 = vpack.c.bf16 %v630_v14, %v626_v13  ;;  %5418 = vmatprep.subr.bf16.mxu1 %v7304_v17  ;;  %v7317_v29 = vsub.f32 %v481_v11, %v630_v14  ;;  %v7319_v30 = vpack.c.bf16 %v632_v20, %v628_v19  ;;  %v493_v39 = vld [vmem:[#allocation11 + $0xc8] sm:$0xff]  ;;  %v492_v57 = vld [vmem:[#allocation11 + $0xc0] sm:$0xff] }
  0xdf   : > { %10565 = vst [vmem:[#allocation27_spill] sm:$0xff] %v7310_v24  ;;  %10567 = vst [vmem:[#allocation29_spill] sm:$0xff] %v7315_v28  ;;  %5420 = vmatpush1.bf16.msra.mxu1 %v7308_v23  ;;  %v638_v32 = vand.u32 4294901760, %v489_v22  ;;  %v636_v35 = vand.u32 4294901760, %v484_v26  ;;  %v640_v36 = vand.u32 4294901760, %v488_v27  ;;  %v10119_v37 = vand.u32 4294901760, %v7306_v18 }
  0xe0   : > { %10566 = vst [vmem:[#allocation28_spill] sm:$0xff] %v7312_v25  ;;  %10568 = vst [vmem:[#allocation30_spill] sm:$0xff] %v7317_v29  ;;  %5422 = vmatprep.subr.bf16.mxu1 %v7312_v25  ;;  %v10117_v38 = vand.u32 4294901760, %v7310_v24  ;;  %v7329_v40 = vsub.f32 %v476_v15, %v628_v19  ;;  %v7331_v41 = vsub.f32 %v480_v16, %v632_v20  ;;  %v10122_v43 = vand.u32 4294901760, %v7322_v33  ;;  %v497_v44 = vld [vmem:[#allocation11 + $0xe8] sm:$0xff]  ;;  %v496_v58 = vld [vmem:[#allocation11 + $0xe0] sm:$0xff] }
  0xe1   : > { %10569 = vst [vmem:[#allocation31_spill] sm:$0xff] %v7319_v30  ;;  %10571 = vst [vmem:[#allocation33_spill] sm:$0xff] %v7324_v34  ;;  %v7333_v42 = vpack.c.bf16 %v638_v32, %v634_v31  ;;  %v7336_v45 = vsub.f32 %v485_v21, %v634_v31  ;;  %v7338_v46 = vsub.f32 %v489_v22, %v638_v32  ;;  %v10120_v47 = vand.u32 4294901760, %v7324_v34  ;;  %v501_v7 = vld [vmem:[#allocation11 + $0x108] sm:$0xff]  ;;  %v500_v13 = vld [vmem:[#allocation11 + $0x100] sm:$0xff] }
  0xe2   : > { %10572 = vst [vmem:[#allocation34_spill] sm:$0xff] %v7329_v40  ;;  %10573 = vst [vmem:[#allocation35_spill] sm:$0xff] %v7331_v41  ;;  %v7341_v48 = vpack.c.bf16 %v640_v36, %v636_v35  ;;  %v766_v49 = vsub.f32 %v7322_v33, %v10122_v43  ;;  %v772_v50 = vsub.f32 %v7306_v18, %v10119_v37  ;;  %v642_v52 = vand.u32 4294901760, %v493_v39  ;;  %v505_v8 = vld [vmem:[#allocation11 + $0x128] sm:$0xff] }
  0xe3   : > { %10574 = vst [vmem:[#allocation36_spill] sm:$0xff] %v7333_v42  ;;  %10575 = vst [vmem:[#allocation37_spill] sm:$0xff] %v7336_v45  ;;  %5424 = vmatpush1.bf16.msra.mxu1 %v7319_v30  ;;  %v784_v51 = vsub.f32 %v7310_v24, %v10117_v38  ;;  %v778_v53 = vsub.f32 %v7324_v34, %v10120_v47  ;;  %v646_v54 = vand.u32 4294901760, %v497_v44  ;;  %v10115_v55 = vand.u32 4294901760, %v7315_v28  ;;  %v561_v17 = vld [vmem:[#allocation11 + $0x2e8] sm:$0xff] }
  0xe4   : > { %10576 = vst [vmem:[#allocation38_spill] sm:$0xff] %v7338_v46  ;;  %10577 = vst [vmem:[#allocation39_spill] sm:$0xff] %v7341_v48  ;;  %5426 = vmatprep.subr.bf16.mxu1 %v7333_v42  ;;  %v10114_v56 = vand.u32 4294901760, %v7317_v29  ;;  %v767_v59 = vand.u32 4294901760, %v766_v49  ;;  %v7359_v60 = vsub.f32 %v484_v26, %v636_v35  ;;  %v773_v61 = vand.u32 4294901760, %v772_v50  ;;  %v553_v42 = vld [vmem:[#allocation11 + $0x2a8] sm:$0xff] }
  0xe5   : > { %v785_v62 = vand.u32 4294901760, %v784_v51  ;;  %v779_v63 = vand.u32 4294901760, %v778_v53  ;;  %v7361_v0 = vsub.f32 %v488_v27, %v640_v36  ;;  %v7363_v1 = vpack.c.bf16 %v646_v54, %v642_v52  ;;  %v504_v27 = vld [vmem:[#allocation11 + $0x120] sm:$0xff] }
  0xe6   : > { %10578 = vst [vmem:[#allocation40_spill] sm:$0xff] %v7359_v60  ;;  %v790_v2 = vsub.f32 %v7315_v28, %v10115_v55  ;;  %v802_v4 = vsub.f32 %v7317_v29, %v10114_v56  ;;  %v644_v5 = vand.u32 4294901760, %v492_v57  ;;  %v648_v6 = vand.u32 4294901760, %v496_v58  ;;  %v525_v56 = vld [vmem:[#allocation11 + $0x1c8] sm:$0xff] }
  0xe7   : > { %10579 = vst [vmem:[#allocation41_spill] sm:$0xff] %v7361_v0  ;;  %10580 = vst [vmem:[#allocation42_spill] sm:$0xff] %v7363_v1  ;;  %5428 = vmatpush1.bf16.msra.mxu1 %v7341_v48  ;;  %v5483_v3 = vpack.c.bf16 %v785_v62, %v773_v61  ;;  %v5481_v9 = vpack.c.bf16 %v779_v63, %v767_v59  ;;  %v10112_v11 = vand.u32 4294901760, %v7329_v40  ;;  %v10110_v12 = vand.u32 4294901760, %v7331_v41  ;;  %v509_v59 = vld [vmem:[#allocation11 + $0x148] sm:$0xff] }
  0xe8   : > { %5430 = vmatprep.subr.bf16.mxu1 %v7363_v1  ;;  %v791_v10 = vand.u32 4294901760, %v790_v2  ;;  %v7375_v14 = vsub.f32 %v493_v39, %v642_v52  ;;  %v7377_v15 = vsub.f32 %v497_v44, %v646_v54  ;;  %v803_v16 = vand.u32 4294901760, %v802_v4  ;;  %v513_v61 = vld [vmem:[#allocation11 + $0x168] sm:$0xff]  ;;  %v508_v2 = vld [vmem:[#allocation11 + $0x140] sm:$0xff] }
  0xe9   : > { %v7379_v19 = vpack.c.bf16 %v648_v6, %v644_v5  ;;  %5482 = vmatprep.subr.bf16.mxu0 %v5481_v9  ;;  %v796_v20 = vsub.f32 %v7329_v40, %v10112_v11  ;;  %v808_v21 = vsub.f32 %v7331_v41, %v10110_v12  ;;  %v650_v22 = vand.u32 4294901760, %v501_v7  ;;  %v529_v55 = vld [vmem:[#allocation11 + $0x1e8] sm:$0xff] }
  0xea   : > { %10581 = vst [vmem:[#allocation43_spill] sm:$0xff] %v7375_v14  ;;  %10582 = vst [vmem:[#allocation44_spill] sm:$0xff] %v7377_v15  ;;  %v654_v26 = vand.u32 4294901760, %v505_v8  ;;  %5484 = vmatpush1.bf16.msra.mxu0 %v5483_v3  ;;  %v5485_v31 = vpack.c.bf16 %v803_v16, %v791_v10  ;;  %v10109_v32 = vand.u32 4294901760, %v7336_v45  ;;  %v10107_v35 = vand.u32 4294901760, %v7338_v46 }
  0xeb   : > { %10583 = vst [vmem:[#allocation45_spill] sm:$0xff] %v7379_v19  ;;  %5432 = vmatpush1.bf16.msra.mxu1 %v7379_v19  ;;  %v652_v36 = vand.u32 4294901760, %v500_v13  ;;  %v7390_v39 = vsub.f32 %v492_v57, %v644_v5  ;;  %v797_v44 = vand.u32 4294901760, %v796_v20  ;;  %v809_v49 = vand.u32 4294901760, %v808_v21  ;;  %v512_v20 = vld [vmem:[#allocation11 + $0x160] sm:$0xff] }
  0xec   : > { %v7392_v50 = vpack.c.bf16 %v654_v26, %v650_v22  ;;  %5486 = vmatprep.subr.bf16.mxu0 %v5485_v31  ;;  %v7394_v51 = vsub.f32 %v496_v58, %v648_v6  ;;  %v814_v52 = vsub.f32 %v7336_v45, %v10109_v32  ;;  %v826_v53 = vsub.f32 %v7338_v46, %v10107_v35 }
  0xed   : > { %10584 = vst [vmem:[#allocation46_spill] sm:$0xff] %v7390_v39  ;;  %v656_v54 = vand.u32 4294901760, %v504_v27  ;;  %v5487_v57 = vpack.c.bf16 %v809_v49, %v797_v44  ;;  %v7403_v62 = vsub.f32 %v501_v7, %v650_v22  ;;  %v10105_v63 = vand.u32 4294901760, %v7359_v60 }
  0xee   : > { %10585 = vst [vmem:[#allocation47_spill] sm:$0xff] %v7392_v50  ;;  %10586 = vst [vmem:[#allocation48_spill] sm:$0xff] %v7394_v51  ;;  %5434 = vmatprep.subr.bf16.mxu1 %v7392_v50  ;;  %v10104_v58 = vand.u32 4294901760, %v7361_v0  ;;  %v7407_v3 = vsub.f32 %v505_v8, %v654_v26  ;;  %v815_v4 = vand.u32 4294901760, %v814_v52  ;;  %v827_v5 = vand.u32 4294901760, %v826_v53  ;;  %v545_v50 = vld [vmem:[#allocation11 + $0x268] sm:$0xff] }
  0xef   : > { %10587 = vst [vmem:[#allocation49_spill] sm:$0xff] %v7403_v62  ;;  %v7409_v6 = vpack.c.bf16 %v656_v54, %v652_v36  ;;  %5488 = vmatpush1.bf16.msra.mxu0 %v5487_v57  ;;  %v820_v9 = vsub.f32 %v7359_v60, %v10105_v63  ;;  %v658_v10 = vand.u32 4294901760, %v509_v59  ;;  %v662_v16 = vand.u32 4294901760, %v513_v61  ;;  %v521_v63 = vld [vmem:[#allocation11 + $0x1a8] sm:$0xff] }
  0xf0   : > { %10588 = vst [vmem:[#allocation50_spill] sm:$0xff] %v7407_v3  ;;  %v832_v7 = vsub.f32 %v7361_v0, %v10104_v58  ;;  %v5489_v21 = vpack.c.bf16 %v827_v5, %v815_v4  ;;  %v10106_v8 = vand.u32 4294901760, %v7375_v14  ;;  %v10108_v22 = vand.u32 4294901760, %v7377_v15  ;;  %v517_v58 = vld [vmem:[#allocation11 + $0x188] sm:$0xff] }
  0xf1   : > { %10589 = vst [vmem:[#allocation51_spill] sm:$0xff] %v7409_v6  ;;  %5436 = vmatpush1.bf16.msra.mxu1 %v7409_v6  ;;  %v660_v26 = vand.u32 4294901760, %v508_v2  ;;  %v7420_v31 = vsub.f32 %v500_v13, %v652_v36  ;;  %v821_v44 = vand.u32 4294901760, %v820_v9  ;;  %v7422_v52 = vpack.c.bf16 %v662_v16, %v658_v10 }
  0xf2   : > { %v833_v49 = vand.u32 4294901760, %v832_v7  ;;  %5490 = vmatprep.subr.bf16.mxu0 %v5489_v21  ;;  %v7424_v53 = vsub.f32 %v504_v27, %v656_v54  ;;  %v838_v57 = vsub.f32 %v7375_v14, %v10106_v8  ;;  %v850_v4 = vsub.f32 %v7377_v15, %v10108_v22  ;;  %v516_v54 = vld [vmem:[#allocation11 + $0x180] sm:$0xff] }
  0xf3   : > { %10590 = vst [vmem:[#allocation52_spill] sm:$0xff] %v7420_v31  ;;  %10591 = vst [vmem:[#allocation53_spill] sm:$0xff] %v7422_v52  ;;  %v664_v5 = vand.u32 4294901760, %v512_v20  ;;  %5438 = vmatprep.subr.bf16.mxu1 %v7422_v52  ;;  %v7433_v36 = vsub.f32 %v509_v59, %v658_v10  ;;  %v10111_v9 = vand.u32 4294901760, %v7390_v39  ;;  %v10113_v27 = vand.u32 4294901760, %v7394_v51  ;;  %v520_v22 = vld [vmem:[#allocation11 + $0x1a0] sm:$0xff] }
  0xf4   : > { %10592 = vst [vmem:[#allocation54_spill] sm:$0xff] %v7424_v53  ;;  %v5491_v13 = vpack.c.bf16 %v833_v49, %v821_v44  ;;  %v7437_v7 = vsub.f32 %v513_v61, %v662_v16  ;;  %v839_v21 = vand.u32 4294901760, %v838_v57  ;;  %v851_v8 = vand.u32 4294901760, %v850_v4 }
  0xf5   : > { %10593 = vst [vmem:[#allocation55_spill] sm:$0xff] %v7433_v36  ;;  %v7439_v35 = vpack.c.bf16 %v664_v5, %v660_v26  ;;  %v844_v44 = vsub.f32 %v7390_v39, %v10111_v9  ;;  %v856_v59 = vsub.f32 %v7394_v51, %v10113_v27  ;;  %v666_v10 = vand.u32 4294901760, %v517_v58 }
  0xf6   : > { %10594 = vst [vmem:[#allocation56_spill] sm:$0xff] %v7437_v7  ;;  %5492 = vmatpush1.bf16.msra.mxu0 %v5491_v13  ;;  %v670_v49 = vand.u32 4294901760, %v521_v63  ;;  %v5493_v32 = vpack.c.bf16 %v851_v8, %v839_v21  ;;  %v10116_v61 = vand.u32 4294901760, %v7403_v62  ;;  %v10118_v16 = vand.u32 4294901760, %v7407_v3 }
  0xf7   : > { %10595 = vst [vmem:[#allocation57_spill] sm:$0xff] %v7439_v35  ;;  %5440 = vmatpush1.bf16.msra.mxu1 %v7439_v35  ;;  %v668_v57 = vand.u32 4294901760, %v516_v54  ;;  %v7450_v4 = vsub.f32 %v508_v2, %v660_v26  ;;  %v845_v13 = vand.u32 4294901760, %v844_v44  ;;  %v857_v12 = vand.u32 4294901760, %v856_v59 }
  0xf8   : > { %v7452_v9 = vpack.c.bf16 %v670_v49, %v666_v10  ;;  %5494 = vmatprep.subr.bf16.mxu0 %v5493_v32  ;;  %v7454_v11 = vsub.f32 %v512_v20, %v664_v5  ;;  %v862_v8 = vsub.f32 %v7403_v62, %v10116_v61  ;;  %v874_v21 = vsub.f32 %v7407_v3, %v10118_v16  ;;  %v524_v5 = vld [vmem:[#allocation11 + $0x1c0] sm:$0xff] }
  0xf9   : > { %10596 = vst [vmem:[#allocation58_spill] sm:$0xff] %v7450_v4  ;;  %v672_v27 = vand.u32 4294901760, %v520_v22  ;;  %v5495_v2 = vpack.c.bf16 %v857_v12, %v845_v13  ;;  %v7463_v26 = vsub.f32 %v517_v58, %v666_v10  ;;  %v10121_v32 = vand.u32 4294901760, %v7420_v31  ;;  %v528_v16 = vld [vmem:[#allocation11 + $0x1e0] sm:$0xff] }
  0xfa   : > { %10597 = vst [vmem:[#allocation59_spill] sm:$0xff] %v7452_v9  ;;  %10598 = vst [vmem:[#allocation60_spill] sm:$0xff] %v7454_v11  ;;  %5442 = vmatprep.subr.bf16.mxu1 %v7452_v9  ;;  %v10123_v20 = vand.u32 4294901760, %v7424_v53  ;;  %v7467_v44 = vsub.f32 %v521_v63, %v670_v49  ;;  %v863_v59 = vand.u32 4294901760, %v862_v8  ;;  %v875_v61 = vand.u32 4294901760, %v874_v21  ;;  %v537_v9 = vld [vmem:[#allocation11 + $0x228] sm:$0xff] }
  0xfb   : > { %10599 = vst [vmem:[#allocation61_spill] sm:$0xff] %v7463_v26  ;;  %v7469_v38 = vpack.c.bf16 %v672_v27, %v668_v57  ;;  %5496 = vmatpush1.bf16.msra.mxu0 %v5495_v2  ;;  %v868_v12 = vsub.f32 %v7420_v31, %v10121_v32  ;;  %v674_v10 = vand.u32 4294901760, %v525_v56  ;;  %v678_v13 = vand.u32 4294901760, %v529_v55 }
  0xfc   : > { %10600 = vst [vmem:[#allocation62_spill] sm:$0xff] %v7467_v44  ;;  %v880_v58 = vsub.f32 %v7424_v53, %v10123_v20  ;;  %v5497_v37 = vpack.c.bf16 %v875_v61, %v863_v59  ;;  %v10128_v63 = vand.u32 4294901760, %v7433_v36  ;;  %v10131_v49 = vand.u32 4294901760, %v7437_v7 }
  0xfd   : > { %10601 = vst [vmem:[#allocation63_spill] sm:$0xff] %v7469_v38  ;;  %5444 = vmatpush1.bf16.msra.mxu1 %v7469_v38  ;;  %v676_v8 = vand.u32 4294901760, %v524_v5  ;;  %v7480_v21 = vsub.f32 %v516_v54, %v668_v57  ;;  %v869_v2 = vand.u32 4294901760, %v868_v12  ;;  %v7482_v32 = vpack.c.bf16 %v678_v13, %v674_v10  ;;  %v533_v38 = vld [vmem:[#allocation11 + $0x208] sm:$0xff] }
  0xfe   : > { %v881_v47 = vand.u32 4294901760, %v880_v58  ;;  %5498 = vmatprep.subr.bf16.mxu0 %v5497_v37  ;;  %v7484_v43 = vsub.f32 %v520_v22, %v672_v27  ;;  %v886_v61 = vsub.f32 %v7433_v36, %v10128_v63  ;;  %v898_v59 = vsub.f32 %v7437_v7, %v10131_v49  ;;  %v532_v27 = vld [vmem:[#allocation11 + $0x200] sm:$0xff] }
  0xff   : > { %10602 = vst [vmem:[#allocation64_spill] sm:$0xff] %v7480_v21  ;;  %10603 = vst [vmem:[#allocation65_spill] sm:$0xff] %v7482_v32  ;;  %v680_v20 = vand.u32 4294901760, %v528_v16  ;;  %5446 = vmatprep.subr.bf16.mxu1 %v7482_v32  ;;  %v7493_v57 = vsub.f32 %v525_v56, %v674_v10  ;;  %v10136_v37 = vand.u32 4294901760, %v7450_v4  ;;  %v10139_v22 = vand.u32 4294901760, %v7454_v11  ;;  %v536_v49 = vld [vmem:[#allocation11 + $0x220] sm:$0xff] }
 0x100   : > { %10604 = vst [vmem:[#allocation66_spill] sm:$0xff] %v7484_v43  ;;  %v5499_v54 = vpack.c.bf16 %v881_v47, %v869_v2  ;;  %v7497_v12 = vsub.f32 %v529_v55, %v678_v13  ;;  %v887_v58 = vand.u32 4294901760, %v886_v61  ;;  %v899_v63 = vand.u32 4294901760, %v898_v59 }
 0x101   : > { %10605 = vst [vmem:[#allocation67_spill] sm:$0xff] %v7493_v57  ;;  %v7499_v35 = vpack.c.bf16 %v680_v20, %v676_v8  ;;  %v892_v47 = vsub.f32 %v7450_v4, %v10136_v37  ;;  %v904_v56 = vsub.f32 %v7454_v11, %v10139_v22  ;;  %v682_v10 = vand.u32 4294901760, %v533_v38 }
 0x102   : > { %10606 = vst [vmem:[#allocation68_spill] sm:$0xff] %v7497_v12  ;;  %5500 = vmatpush1.bf16.msra.mxu0 %v5499_v54  ;;  %v686_v2 = vand.u32 4294901760, %v537_v9  ;;  %v5501_v32 = vpack.c.bf16 %v899_v63, %v887_v58  ;;  %v10144_v55 = vand.u32 4294901760, %v7463_v26  ;;  %v10147_v13 = vand.u32 4294901760, %v7467_v44 }
 0x103   : > { %10607 = vst [vmem:[#allocation69_spill] sm:$0xff] %v7499_v35  ;;  %5448 = vmatpush1.bf16.msra.mxu1 %v7499_v35  ;;  %v684_v61 = vand.u32 4294901760, %v532_v27  ;;  %v7510_v59 = vsub.f32 %v524_v5, %v676_v8  ;;  %v893_v54 = vand.u32 4294901760, %v892_v47  ;;  %v905_v52 = vand.u32 4294901760, %v904_v56  ;;  %v541_v35 = vld [vmem:[#allocation11 + $0x248] sm:$0xff] }
 0x104   : > { %v7512_v37 = vpack.c.bf16 %v686_v2, %v682_v10  ;;  %5502 = vmatprep.subr.bf16.mxu0 %v5501_v32  ;;  %v7514_v6 = vsub.f32 %v528_v16, %v680_v20  ;;  %v910_v63 = vsub.f32 %v7463_v26, %v10144_v55  ;;  %v922_v58 = vsub.f32 %v7467_v44, %v10147_v13  ;;  %v540_v20 = vld [vmem:[#allocation11 + $0x240] sm:$0xff] }
 0x105   : > { %10608 = vst [vmem:[#allocation70_spill] sm:$0xff] %v7510_v59  ;;  %v688_v22 = vand.u32 4294901760, %v536_v49  ;;  %v5503_v5 = vpack.c.bf16 %v905_v52, %v893_v54  ;;  %v7523_v8 = vsub.f32 %v533_v38, %v682_v10  ;;  %v10152_v32 = vand.u32 4294901760, %v7480_v21  ;;  %v544_v13 = vld [vmem:[#allocation11 + $0x260] sm:$0xff] }
 0x106   : > { %10609 = vst [vmem:[#allocation71_spill] sm:$0xff] %v7512_v37  ;;  %10610 = vst [vmem:[#allocation72_spill] sm:$0xff] %v7514_v6  ;;  %5450 = vmatprep.subr.bf16.mxu1 %v7512_v37  ;;  %v10155_v16 = vand.u32 4294901760, %v7484_v43  ;;  %v7527_v47 = vsub.f32 %v537_v9, %v686_v2  ;;  %v911_v56 = vand.u32 4294901760, %v910_v63  ;;  %v923_v55 = vand.u32 4294901760, %v922_v58 }
 0x107   : > { %10611 = vst [vmem:[#allocation73_spill] sm:$0xff] %v7523_v8  ;;  %v7529_v19 = vpack.c.bf16 %v688_v22, %v684_v61  ;;  %5504 = vmatpush1.bf16.msra.mxu0 %v5503_v5  ;;  %v916_v52 = vsub.f32 %v7480_v21, %v10152_v32  ;;  %v690_v10 = vand.u32 4294901760, %v541_v35  ;;  %v694_v54 = vand.u32 4294901760, %v545_v50 }
 0x108   : > { %10612 = vst [vmem:[#allocation74_spill] sm:$0xff] %v7527_v47  ;;  %v928_v38 = vsub.f32 %v7484_v43, %v10155_v16  ;;  %v5505_v37 = vpack.c.bf16 %v923_v55, %v911_v56  ;;  %v10160_v9 = vand.u32 4294901760, %v7493_v57  ;;  %v10163_v2 = vand.u32 4294901760, %v7497_v12 }
 0x109   : > { %10613 = vst [vmem:[#allocation75_spill] sm:$0xff] %v7529_v19  ;;  %5452 = vmatpush1.bf16.msra.mxu1 %v7529_v19  ;;  %v692_v63 = vand.u32 4294901760, %v540_v20  ;;  %v7540_v58 = vsub.f32 %v532_v27, %v684_v61  ;;  %v917_v5 = vand.u32 4294901760, %v916_v52  ;;  %v7542_v32 = vpack.c.bf16 %v694_v54, %v690_v10  ;;  %v549_v19 = vld [vmem:[#allocation11 + $0x288] sm:$0xff] }
 0x10a   : > { %v929_v1 = vand.u32 4294901760, %v928_v38  ;;  %5506 = vmatprep.subr.bf16.mxu0 %v5505_v37  ;;  %v7544_v48 = vsub.f32 %v536_v49, %v688_v22  ;;  %v934_v55 = vsub.f32 %v7493_v57, %v10160_v9  ;;  %v946_v56 = vsub.f32 %v7497_v12, %v10163_v2  ;;  %v548_v22 = vld [vmem:[#allocation11 + $0x280] sm:$0xff] }
 0x10b   : > { %10614 = vst [vmem:[#allocation76_spill] sm:$0xff] %v7540_v58  ;;  %10615 = vst [vmem:[#allocation77_spill] sm:$0xff] %v7542_v32  ;;  %v696_v16 = vand.u32 4294901760, %v544_v13  ;;  %5454 = vmatprep.subr.bf16.mxu1 %v7542_v32  ;;  %v7553_v61 = vsub.f32 %v541_v35, %v690_v10  ;;  %v10168_v37 = vand.u32 4294901760, %v7510_v59  ;;  %v10171_v49 = vand.u32 4294901760, %v7514_v6  ;;  %v552_v2 = vld [vmem:[#allocation11 + $0x2a0] sm:$0xff] }
 0x10c   : > { %10616 = vst [vmem:[#allocation78_spill] sm:$0xff] %v7544_v48  ;;  %v5507_v27 = vpack.c.bf16 %v929_v1, %v917_v5  ;;  %v7557_v52 = vsub.f32 %v545_v50, %v694_v54  ;;  %v935_v38 = vand.u32 4294901760, %v934_v55  ;;  %v947_v9 = vand.u32 4294901760, %v946_v56 }
 0x10d   : > { %10617 = vst [vmem:[#allocation79_spill] sm:$0xff] %v7553_v61  ;;  %v7559_v30 = vpack.c.bf16 %v696_v16, %v692_v63  ;;  %v940_v1 = vsub.f32 %v7510_v59, %v10168_v37  ;;  %v952_v35 = vsub.f32 %v7514_v6, %v10171_v49  ;;  %v698_v10 = vand.u32 4294901760, %v549_v19 }
 0x10e   : > { %10618 = vst [vmem:[#allocation80_spill] sm:$0xff] %v7557_v52  ;;  %5508 = vmatpush1.bf16.msra.mxu0 %v5507_v27  ;;  %v702_v5 = vand.u32 4294901760, %v553_v42  ;;  %v5509_v32 = vpack.c.bf16 %v947_v9, %v935_v38  ;;  %v10176_v50 = vand.u32 4294901760, %v7523_v8  ;;  %v10179_v54 = vand.u32 4294901760, %v7527_v47 }
 0x10f   : > { %10619 = vst [vmem:[#allocation81_spill] sm:$0xff] %v7559_v30  ;;  %5456 = vmatpush1.bf16.msra.mxu1 %v7559_v30  ;;  %v700_v55 = vand.u32 4294901760, %v548_v22  ;;  %v7570_v56 = vsub.f32 %v540_v20, %v692_v63  ;;  %v941_v27 = vand.u32 4294901760, %v940_v1  ;;  %v953_v25 = vand.u32 4294901760, %v952_v35  ;;  %v557_v30 = vld [vmem:[#allocation11 + $0x2c8] sm:$0xff] }
 0x110   : > { %v7572_v37 = vpack.c.bf16 %v702_v5, %v698_v10  ;;  %5510 = vmatprep.subr.bf16.mxu0 %v5509_v32  ;;  %v7574_v23 = vsub.f32 %v544_v13, %v696_v16  ;;  %v958_v9 = vsub.f32 %v7523_v8, %v10176_v50  ;;  %v970_v38 = vsub.f32 %v7527_v47, %v10179_v54  ;;  %v556_v16 = vld [vmem:[#allocation11 + $0x2c0] sm:$0xff] }
 0x111   : > { %10620 = vst [vmem:[#allocation82_spill] sm:$0xff] %v7570_v56  ;;  %v704_v49 = vand.u32 4294901760, %v552_v2  ;;  %v5511_v20 = vpack.c.bf16 %v953_v25, %v941_v27  ;;  %v7583_v63 = vsub.f32 %v549_v19, %v698_v10  ;;  %v10184_v32 = vand.u32 4294901760, %v7540_v58  ;;  %v560_v54 = vld [vmem:[#allocation11 + $0x2e0] sm:$0xff] }
 0x112   : > { %10621 = vst [vmem:[#allocation83_spill] sm:$0xff] %v7572_v37  ;;  %10622 = vst [vmem:[#allocation84_spill] sm:$0xff] %v7574_v23  ;;  %5458 = vmatprep.subr.bf16.mxu1 %v7572_v37  ;;  %v10187_v13 = vand.u32 4294901760, %v7544_v48  ;;  %v7587_v1 = vsub.f32 %v553_v42, %v702_v5  ;;  %v959_v35 = vand.u32 4294901760, %v958_v9  ;;  %v971_v50 = vand.u32 4294901760, %v970_v38 }
 0x113   : > { %10623 = vst [vmem:[#allocation85_spill] sm:$0xff] %v7583_v63  ;;  %v7589_v8 = vpack.c.bf16 %v704_v49, %v700_v55  ;;  %5512 = vmatpush1.bf16.msra.mxu0 %v5511_v20  ;;  %v964_v25 = vsub.f32 %v7540_v58, %v10184_v32  ;;  %v706_v10 = vand.u32 4294901760, %v557_v30  ;;  %v710_v27 = vand.u32 4294901760, %v561_v17 }
 0x114   : > { %10624 = vst [vmem:[#allocation86_spill] sm:$0xff] %v7587_v1  ;;  %v976_v19 = vsub.f32 %v7544_v48, %v10187_v13  ;;  %v5513_v37 = vpack.c.bf16 %v971_v50, %v959_v35  ;;  %v10192_v42 = vand.u32 4294901760, %v7553_v61  ;;  %v10195_v5 = vand.u32 4294901760, %v7557_v52  ;;  %v569_v48 = vld [vmem:[#allocation11 + $0x328] sm:$0xff] }
 0x115   : > { %10625 = vst [vmem:[#allocation87_spill] sm:$0xff] %v7589_v8  ;;  %5460 = vmatpush1.bf16.msra.mxu1 %v7589_v8  ;;  %v708_v9 = vand.u32 4294901760, %v556_v16  ;;  %v7600_v38 = vsub.f32 %v548_v22, %v700_v55  ;;  %v965_v20 = vand.u32 4294901760, %v964_v25  ;;  %v7602_v32 = vpack.c.bf16 %v710_v27, %v706_v10  ;;  %v565_v8 = vld [vmem:[#allocation11 + $0x308] sm:$0xff] }
 0x116   : > { %v977_v47 = vand.u32 4294901760, %v976_v19  ;;  %5514 = vmatprep.subr.bf16.mxu0 %v5513_v37  ;;  %v7604_v58 = vsub.f32 %v552_v2, %v704_v49  ;;  %v982_v50 = vsub.f32 %v7553_v61, %v10192_v42  ;;  %v994_v35 = vsub.f32 %v7557_v52, %v10195_v5  ;;  %v564_v49 = vld [vmem:[#allocation11 + $0x300] sm:$0xff] }
 0x117   : > { %10626 = vst [vmem:[#allocation88_spill] sm:$0xff] %v7600_v38  ;;  %10627 = vst [vmem:[#allocation89_spill] sm:$0xff] %v7602_v32  ;;  %v712_v13 = vand.u32 4294901760, %v560_v54  ;;  %5462 = vmatprep.subr.bf16.mxu1 %v7602_v32  ;;  %v7613_v55 = vsub.f32 %v557_v30, %v706_v10  ;;  %v10200_v37 = vand.u32 4294901760, %v7570_v56  ;;  %v10203_v2 = vand.u32 4294901760, %v7574_v23  ;;  %v568_v5 = vld [vmem:[#allocation11 + $0x320] sm:$0xff] }
 0x118   : > { %10628 = vst [vmem:[#allocation90_spill] sm:$0xff] %v7604_v58  ;;  %v5515_v22 = vpack.c.bf16 %v977_v47, %v965_v20  ;;  %v7617_v25 = vsub.f32 %v561_v17, %v710_v27  ;;  %v983_v19 = vand.u32 4294901760, %v982_v50  ;;  %v995_v42 = vand.u32 4294901760, %v994_v35 }
 0x119   : > { %10629 = vst [vmem:[#allocation91_spill] sm:$0xff] %v7613_v55  ;;  %v7619_v61 = vpack.c.bf16 %v712_v13, %v708_v9  ;;  %v988_v47 = vsub.f32 %v7570_v56, %v10200_v37  ;;  %v1000_v30 = vsub.f32 %v7574_v23, %v10203_v2  ;;  %v714_v10 = vand.u32 4294901760, %v565_v8  ;;  %v577_v23 = vld [vmem:[#allocation11 + $0x368] sm:$0xff] }
 0x11a   : > { %10630 = vst [vmem:[#allocation92_spill] sm:$0xff] %v7617_v25  ;;  %5516 = vmatpush1.bf16.msra.mxu0 %v5515_v22  ;;  %v718_v20 = vand.u32 4294901760, %v569_v48  ;;  %v5517_v32 = vpack.c.bf16 %v995_v42, %v983_v19  ;;  %v10208_v17 = vand.u32 4294901760, %v7583_v63  ;;  %v10211_v27 = vand.u32 4294901760, %v7587_v1 }
 0x11b   : > { %10631 = vst [vmem:[#allocation93_spill] sm:$0xff] %v7619_v61  ;;  %5464 = vmatpush1.bf16.msra.mxu1 %v7619_v61  ;;  %v716_v50 = vand.u32 4294901760, %v564_v49  ;;  %v7630_v35 = vsub.f32 %v556_v16, %v708_v9  ;;  %v989_v22 = vand.u32 4294901760, %v988_v47  ;;  %v1001_v52 = vand.u32 4294901760, %v1000_v30  ;;  %v573_v61 = vld [vmem:[#allocation11 + $0x348] sm:$0xff] }
 0x11c   : > { %v7632_v37 = vpack.c.bf16 %v718_v20, %v714_v10  ;;  %5518 = vmatprep.subr.bf16.mxu0 %v5517_v32  ;;  %v7634_v56 = vsub.f32 %v560_v54, %v712_v13  ;;  %v1006_v42 = vsub.f32 %v7583_v63, %v10208_v17  ;;  %v1018_v19 = vsub.f32 %v7587_v1, %v10211_v27  ;;  %v572_v13 = vld [vmem:[#allocation11 + $0x340] sm:$0xff] }
 0x11d   : > { %10632 = vst [vmem:[#allocation94_spill] sm:$0xff] %v7630_v35  ;;  %v720_v2 = vand.u32 4294901760, %v568_v5  ;;  %v5519_v16 = vpack.c.bf16 %v1001_v52, %v989_v22  ;;  %v7643_v9 = vsub.f32 %v565_v8, %v714_v10  ;;  %v10216_v32 = vand.u32 4294901760, %v7600_v38  ;;  %v576_v27 = vld [vmem:[#allocation11 + $0x360] sm:$0xff] }
 0x11e   : > { %10633 = vst [vmem:[#allocation95_spill] sm:$0xff] %v7632_v37  ;;  %10634 = vst [vmem:[#allocation96_spill] sm:$0xff] %v7634_v56  ;;  %5466 = vmatprep.subr.bf16.mxu1 %v7632_v37  ;;  %v10219_v54 = vand.u32 4294901760, %v7604_v58  ;;  %v7647_v47 = vsub.f32 %v569_v48, %v718_v20  ;;  %v1007_v30 = vand.u32 4294901760, %v1006_v42  ;;  %v1019_v17 = vand.u32 4294901760, %v1018_v19 }
 0x11f   : > { %10635 = vst [vmem:[#allocation97_spill] sm:$0xff] %v7643_v9  ;;  %v7649_v63 = vpack.c.bf16 %v720_v2, %v716_v50  ;;  %5520 = vmatpush1.bf16.msra.mxu0 %v5519_v16  ;;  %v1012_v52 = vsub.f32 %v7600_v38, %v10216_v32  ;;  %v722_v10 = vand.u32 4294901760, %v573_v61  ;;  %v726_v22 = vand.u32 4294901760, %v577_v23 }
 0x120   : > { %10636 = vst [vmem:[#allocation98_spill] sm:$0xff] %v7647_v47  ;;  %v1024_v8 = vsub.f32 %v7604_v58, %v10219_v54  ;;  %v5521_v37 = vpack.c.bf16 %v1019_v17, %v1007_v30  ;;  %v10224_v48 = vand.u32 4294901760, %v7613_v55  ;;  %v10227_v20 = vand.u32 4294901760, %v7617_v25  ;;  %v585_v58 = vld [vmem:[#allocation11 + $0x3a8] sm:$0xff] }
 0x121   : > { %10637 = vst [vmem:[#allocation99_spill] sm:$0xff] %v7649_v63  ;;  %5468 = vmatpush1.bf16.msra.mxu1 %v7649_v63  ;;  %v724_v42 = vand.u32 4294901760, %v572_v13  ;;  %v7660_v19 = vsub.f32 %v564_v49, %v716_v50  ;;  %v1013_v16 = vand.u32 4294901760, %v1012_v52  ;;  %v7662_v32 = vpack.c.bf16 %v726_v22, %v722_v10  ;;  %v581_v63 = vld [vmem:[#allocation11 + $0x388] sm:$0xff] }
 0x122   : > { %v1025_v1 = vand.u32 4294901760, %v1024_v8  ;;  %5522 = vmatprep.subr.bf16.mxu0 %v5521_v37  ;;  %v7664_v38 = vsub.f32 %v568_v5, %v720_v2  ;;  %v1030_v17 = vsub.f32 %v7613_v55, %v10224_v48  ;;  %v1042_v30 = vsub.f32 %v7617_v25, %v10227_v20  ;;  %v580_v2 = vld [vmem:[#allocation11 + $0x380] sm:$0xff] }
 0x123   : > { %10638 = vst [vmem:[#allocation100_spill] sm:$0xff] %v7660_v19  ;;  %10639 = vst [vmem:[#allocation101_spill] sm:$0xff] %v7662_v32  ;;  %v728_v54 = vand.u32 4294901760, %v576_v27  ;;  %5470 = vmatprep.subr.bf16.mxu1 %v7662_v32  ;;  %v7673_v50 = vsub.f32 %v573_v61, %v722_v10  ;;  %v10232_v37 = vand.u32 4294901760, %v7630_v35  ;;  %v10235_v5 = vand.u32 4294901760, %v7634_v56  ;;  %v584_v20 = vld [vmem:[#allocation11 + $0x3a0] sm:$0xff] }
 0x124   : > { %10640 = vst [vmem:[#allocation102_spill] sm:$0xff] %v7664_v38  ;;  %v5523_v49 = vpack.c.bf16 %v1025_v1, %v1013_v16  ;;  %v7677_v52 = vsub.f32 %v577_v23, %v726_v22  ;;  %v1031_v8 = vand.u32 4294901760, %v1030_v17  ;;  %v1043_v48 = vand.u32 4294901760, %v1042_v30 }
 0x125   : > { %10641 = vst [vmem:[#allocation103_spill] sm:$0xff] %v7673_v50  ;;  %v7679_v55 = vpack.c.bf16 %v728_v54, %v724_v42  ;;  %v1036_v1 = vsub.f32 %v7630_v35, %v10232_v37  ;;  %v1048_v61 = vsub.f32 %v7634_v56, %v10235_v5  ;;  %v730_v10 = vand.u32 4294901760, %v581_v63  ;;  %v593_v56 = vld [vmem:[#allocation11 + $0x3e8] sm:$0xff] }
 0x126   : > { %10642 = vst [vmem:[#allocation104_spill] sm:$0xff] %v7677_v52  ;;  %5524 = vmatpush1.bf16.msra.mxu0 %v5523_v49  ;;  %v734_v16 = vand.u32 4294901760, %v585_v58  ;;  %v5525_v32 = vpack.c.bf16 %v1043_v48, %v1031_v8  ;;  %v10240_v23 = vand.u32 4294901760, %v7643_v9  ;;  %v10243_v22 = vand.u32 4294901760, %v7647_v47 }
 0x127   : > { %10643 = vst [vmem:[#allocation105_spill] sm:$0xff] %v7679_v55  ;;  %5472 = vmatpush1.bf16.msra.mxu1 %v7679_v55  ;;  %v732_v17 = vand.u32 4294901760, %v580_v2  ;;  %v7690_v30 = vsub.f32 %v572_v13, %v724_v42  ;;  %v1037_v49 = vand.u32 4294901760, %v1036_v1  ;;  %v1049_v25 = vand.u32 4294901760, %v1048_v61  ;;  %v589_v55 = vld [vmem:[#allocation11 + $0x3c8] sm:$0xff] }
 0x128   : > { %v7692_v37 = vpack.c.bf16 %v734_v16, %v730_v10  ;;  %5526 = vmatprep.subr.bf16.mxu0 %v5525_v32  ;;  %v7694_v35 = vsub.f32 %v576_v27, %v728_v54  ;;  %v1054_v48 = vsub.f32 %v7643_v9, %v10240_v23  ;;  %v1066_v8 = vsub.f32 %v7647_v47, %v10243_v22  ;;  %v588_v54 = vld [vmem:[#allocation11 + $0x3c0] sm:$0xff] }
 0x129   : > { %10644 = vst [vmem:[#allocation106_spill] sm:$0xff] %v7690_v30  ;;  %v736_v5 = vand.u32 4294901760, %v584_v20  ;;  %v5527_v13 = vpack.c.bf16 %v1049_v25, %v1037_v49  ;;  %v7703_v42 = vsub.f32 %v581_v63, %v730_v10  ;;  %v10248_v32 = vand.u32 4294901760, %v7660_v19  ;;  %v592_v22 = vld [vmem:[#allocation11 + $0x3e0] sm:$0xff] }
 0x12a   : > { %10645 = vst [vmem:[#allocation107_spill] sm:$0xff] %v7692_v37  ;;  %10646 = vst [vmem:[#allocation108_spill] sm:$0xff] %v7694_v35  ;;  %5474 = vmatprep.subr.bf16.mxu1 %v7692_v37  ;;  %v10251_v27 = vand.u32 4294901760, %v7664_v38  ;;  %v7707_v1 = vsub.f32 %v585_v58, %v734_v16  ;;  %v1055_v61 = vand.u32 4294901760, %v1054_v48  ;;  %v1067_v23 = vand.u32 4294901760, %v1066_v8 }
 0x12b   : > { %10647 = vst [vmem:[#allocation109_spill] sm:$0xff] %v7703_v42  ;;  %v7709_v9 = vpack.c.bf16 %v736_v5, %v732_v17  ;;  %5528 = vmatpush1.bf16.msra.mxu0 %v5527_v13  ;;  %v1060_v25 = vsub.f32 %v7660_v19, %v10248_v32  ;;  %v738_v10 = vand.u32 4294901760, %v589_v55  ;;  %v742_v49 = vand.u32 4294901760, %v593_v56 }
 0x12c   : > { %10648 = vst [vmem:[#allocation110_spill] sm:$0xff] %v7707_v1  ;;  %v1072_v63 = vsub.f32 %v7664_v38, %v10251_v27  ;;  %v5529_v37 = vpack.c.bf16 %v1067_v23, %v1055_v61  ;;  %v10256_v58 = vand.u32 4294901760, %v7673_v50  ;;  %v10259_v16 = vand.u32 4294901760, %v7677_v52  ;;  %v465_v38 = vld [vmem:[#allocation2] sm:$0xff] }
 0x12d   : > { %10649 = vst [vmem:[#allocation111_spill] sm:$0xff] %v7709_v9  ;;  %5476 = vmatpush1.bf16.msra.mxu1 %v7709_v9  ;;  %v740_v48 = vand.u32 4294901760, %v588_v54  ;;  %v7720_v8 = vsub.f32 %v580_v2, %v732_v17  ;;  %v1061_v13 = vand.u32 4294901760, %v1060_v25  ;;  %v7722_v32 = vpack.c.bf16 %v742_v49, %v738_v10  ;;  %v466_v9 = vld [vmem:[#allocation2 + $0x8] sm:$0xff] }
 0x12e   : > { %v1073_v47 = vand.u32 4294901760, %v1072_v63  ;;  %5530 = vmatprep.subr.bf16.mxu0 %v5529_v37  ;;  %v7724_v19 = vsub.f32 %v584_v20, %v736_v5  ;;  %v1078_v23 = vsub.f32 %v7673_v50, %v10256_v58  ;;  %v1090_v61 = vsub.f32 %v7677_v52, %v10259_v16  ;;  %v7737_v5 = vld [vmem:[#allocation11 + $0x18] sm:$0xff] }
 0x12f   : > { %10650 = vst [vmem:[#allocation112_spill] sm:$0xff] %v7720_v8  ;;  %10651 = vst [vmem:[#allocation113_spill] sm:$0xff] %v7722_v32  ;;  %v744_v27 = vand.u32 4294901760, %v592_v22  ;;  %5478 = vmatprep.subr.bf16.mxu1 %v7722_v32  ;;  %v7733_v17 = vsub.f32 %v589_v55, %v738_v10  ;;  %v10260_v37 = vand.u32 4294901760, %v7690_v30  ;;  %v10263_v20 = vand.u32 4294901760, %v7694_v35  ;;  %v7753_v16 = vld [vmem:[#allocation11 + $0x38] sm:$0xff] }
 0x130   : > { %10652 = vst [vmem:[#allocation114_spill] sm:$0xff] %v7724_v19  ;;  %v5531_v2 = vpack.c.bf16 %v1073_v47, %v1061_v13  ;;  %v7739_v25 = vsub.f32 %v593_v56, %v742_v49  ;;  %v1079_v63 = vand.u32 4294901760, %v1078_v23  ;;  %v1091_v58 = vand.u32 4294901760, %v1090_v61 }
 0x131   : > { %10653 = vst [vmem:[#allocation115_spill] sm:$0xff] %v7733_v17  ;;  %v7741_v50 = vpack.c.bf16 %v744_v27, %v740_v48  ;;  %v1084_v47 = vsub.f32 %v7690_v30, %v10260_v37  ;;  %v1096_v55 = vsub.f32 %v7694_v35, %v10263_v20  ;;  %v7749_v10 = vand.u32 4294901760, %v466_v9  ;;  %v7878_v35 = vld [vmem:[#allocation11 + $0xd0] sm:$0xff] }
 0x132   : > { %10654 = vst [vmem:[#allocation116_spill] sm:$0xff] %v7739_v25  ;;  %5532 = vmatpush1.bf16.msra.mxu0 %v5531_v2  ;;  %v7751_v13 = vand.u32 4294901760, %v465_v38  ;;  %v5533_v56 = vpack.c.bf16 %v1091_v58, %v1079_v63  ;;  %v10264_v49 = vand.u32 4294901760, %v7703_v42  ;;  %v10269_v23 = vand.u32 4294901760, %v7707_v1 }
 0x133   : > { %10655 = vst [vmem:[#allocation117_spill] sm:$0xff] %v7741_v50  ;;  %10656 = vst [vmem:[#allocation118_spill] sm:$0xff] %v7749_v10  ;;  %5480 = vmatpush1.bf16.msra.mxu1 %v7741_v50  ;;  %v1085_v2 = vand.u32 4294901760, %v1084_v47  ;;  %v1097_v37 = vand.u32 4294901760, %v1096_v55  ;;  %v7760_v32 = vsub.f32 %v466_v9, %v7749_v10  ;;  %1148 = vmatprep.mubr.f32.mxu0 %v7749_v10  ;;  %v10272_v55 = vand.u32 4294901760, %v7753_v16 }
 0x134   : > { %10657 = vst [vmem:[#allocation119_spill] sm:$0xff] %v7751_v13  ;;  %v7763_v20 = vsub.f32 %v465_v38, %v7751_v13  ;;  %5534 = vmatprep.subr.bf16.mxu0 %v5533_v56  ;;  %v7766_v58 = vsub.f32 %v588_v54, %v740_v48  ;;  %v1102_v63 = vsub.f32 %v7703_v42, %v10264_v49  ;;  %v7782_v48 = vld [vmem:[#allocation11 + $0x10] sm:$0xff] }
 0x135   : > { %10658 = vst [vmem:[#allocation120_spill] sm:$0xff] %v7760_v32  ;;  %v1114_v47 = vsub.f32 %v7707_v1, %v10269_v23  ;;  %v5535_v9 = vpack.c.bf16 %v1097_v37, %v1085_v2  ;;  %v7776_v61 = vand.u32 4294901760, %v7760_v32  ;;  %v7784_v56 = vld [vmem:[#allocation11 + $0x30] sm:$0xff]  ;;  %v7786_v49 = vsub.f32 %v592_v22, %v744_v27 }
 0x136   : > { %10659 = vst [vmem:[#allocation121_spill] sm:$0xff] %v7763_v20  ;;  %10660 = vst [vmem:[#allocation122_spill] sm:$0xff] %v7766_v58  ;;  %v7779_v38 = vand.u32 4294901760, %v7763_v20  ;;  %v1103_v50 = vand.u32 4294901760, %v1102_v63  ;;  %v10664_v23 = vand.u32 4294901760, %v7737_v5  ;;  %v10666_v1 = vand.u32 4294901760, %v7720_v8 }
 0x137   : > { %10661 = vst [vmem:[#allocation123_spill] sm:$0xff] %v7776_v61  ;;  %10663 = vst [vmem:[#allocation125_spill] sm:$0xff] %v7786_v49  ;;  %v1115_v10 = vand.u32 4294901760, %v1114_v47  ;;  %5536 = vmatpush1.bf16.msra.mxu0 %v5535_v9  ;;  %v749_v2 = vsub.f32 %v7760_v32, %v7776_v61  ;;  %v10283_v27 = vand.u32 4294901760, %v7724_v19  ;;  %v10287_v47 = vand.u32 4294901760, %v7782_v48  ;;  %v7808_v61 = vld [vmem:[#allocation11 + $0x78] sm:$0xff] }
 0x138   : > { %10662 = vst [vmem:[#allocation124_spill] sm:$0xff] %v7779_v38  ;;  %v7792_v37 = vpack.c.bf16 %v10272_v55, %v10664_v23  ;;  %v755_v54 = vsub.f32 %v7763_v20, %v7779_v38  ;;  %v1108_v22 = vsub.f32 %v7720_v8, %v10666_v1  ;;  %v10286_v23 = vand.u32 4294901760, %v7784_v56  ;;  %v7806_v55 = vld [vmem:[#allocation11 + $0x58] sm:$0xff]  ;;  %v7815_v1 = vld [vmem:[#allocation11 + $0x50] sm:$0xff] }
 0x139   : > { %v5537_v63 = vpack.c.bf16 %v1115_v10, %v1103_v50  ;;  %v10290_v9 = vand.u32 4294901760, %v7733_v17  ;;  %v750_v38 = vand.u32 4294901760, %v749_v2  ;;  %v1120_v50 = vsub.f32 %v7724_v19, %v10283_v27  ;;  %v7829_v19 = vld [vmem:[#allocation11 + $0x70] sm:$0xff]  ;;  %v7835_v8 = vld [vmem:[#allocation11 + $0x98] sm:$0xff] }
 0x13a   : > { %10665 = vst [vmem:[#allocation126_spill] sm:$0xff] %v7792_v37  ;;  %5802 = vmatprep.subr.bf16.mxu1 %v7792_v37  ;;  %v7810_v20 = vand.u32 4294901760, %v755_v54  ;;  %v1109_v42 = vand.u32 4294901760, %v1108_v22  ;;  %v7821_v10 = vpack.c.bf16 %v10286_v23, %v10287_v47  ;;  %v10294_v22 = vand.u32 4294901760, %v7739_v25 }
 0x13b   : > { %5538 = vmatprep.subr.bf16.mxu0 %v5537_v63  ;;  %v1126_v2 = vsub.f32 %v7733_v17, %v10290_v9  ;;  %751 = vmatprep.mubr.f32.mxu1 %v750_v38  ;;  %v1121_v54 = vand.u32 4294901760, %v1120_v50  ;;  %v10295_v37 = vand.u32 4294901760, %v7806_v55  ;;  %v10298_v63 = vand.u32 4294901760, %v7766_v58 }
 0x13c   : > { %10667 = vst [vmem:[#allocation127_spill] sm:$0xff] %v7810_v20  ;;  %10668 = vst [vmem:[#allocation128_spill] sm:$0xff] %v7821_v10  ;;  %757 = vmatmul.mubr.f32.vlgmr.msra.gmra.mrb[0].mxu1 %v7810_v20  ;;  %v10303_v23 = vand.u32 4294901760, %v7786_v49  ;;  %v1138_v27 = vsub.f32 %v7739_v25, %v10294_v22  ;;  %v10669_v20 = vand.u32 4294901760, %v7808_v61  ;;  %v10671_v25 = vand.u32 4294901760, %v7815_v1 }
 0x13d   : > { %v5539_v9 = vpack.c.bf16 %v1121_v54, %v1109_v42  ;;  %5804 = vmatpush1.bf16.msra.mxu1 %v7821_v10  ;;  %v1127_v50 = vand.u32 4294901760, %v1126_v2  ;;  %v1132_v47 = vsub.f32 %v7766_v58, %v10298_v63  ;;  %v10310_v2 = vand.u32 4294901760, %v7829_v19  ;;  %v7854_v54 = vld [vmem:[#allocation11 + $0xb8] sm:$0xff]  ;;  %2035 = vmatprep.mubr.f32.mxu1 %v750_v38  ;;  %v7860_v10 = vld [vmem:[#allocation11 + $0xb0] sm:$0xff] }
 0x13e   : > { %v7845_v17 = vpack.c.bf16 %v10669_v20, %v10295_v37  ;;  %v1144_v42 = vsub.f32 %v7786_v49, %v10303_v23  ;;  %v1139_v22 = vand.u32 4294901760, %v1138_v27  ;;  %v7858_v37 = vld [vmem:[#allocation11 + $0x90] sm:$0xff]  ;;  %v7868_v49 = vld [vmem:[#allocation11 + $0xd8] sm:$0xff]  ;;  %v10313_v20 = vand.u32 4294901760, %v7854_v54 }
 0x13f   : > { %5540 = vmatpush1.bf16.msra.mxu0 %v5539_v9  ;;  %v1133_v63 = vand.u32 4294901760, %v1132_v47  ;;  %v7866_v23 = vpack.c.bf16 %v10310_v2, %v10671_v25  ;;  %v7870_v38 = vld [vmem:[#allocation11 + $0xf8] sm:$0xff]  ;;  %v5545_v9 = vpack.c.bf16 %v7324_v34, %v7322_v33  ;;  %v10673_v25 = vand.u32 4294901760, %v7835_v8 }
 0x140   : > { %10670 = vst [vmem:[#allocation129_spill] sm:$0xff] %v7845_v17  ;;  %5806 = vmatprep.subr.bf16.mxu1 %v7845_v17  ;;  %v1145_v58 = vand.u32 4294901760, %v1144_v42  ;;  %v5541_v27 = vpack.c.bf16 %v1139_v22, %v1127_v50  ;;  %v7892_v47 = vld [vmem:[#allocation11 + $0x138] sm:$0xff]  ;;  %v10675_v42 = vand.u32 4294901760, %v7858_v37  ;;  %v7904_v50 = vld [vmem:[#allocation11 + $0x130] sm:$0xff]  ;;  %v5549_v2 = vpack.c.bf16 %v7317_v29, %v7315_v28 }
 0x141   : > { %10672 = vst [vmem:[#allocation130_spill] sm:$0xff] %v7866_v23  ;;  %5808 = vmatpush1.bf16.msra.mxu1 %v7866_v23  ;;  %v7884_v22 = vpack.c.bf16 %v10313_v20, %v10673_v25  ;;  %v10676_v23 = vand.u32 4294901760, %v7860_v10  ;;  %v7902_v20 = vld [vmem:[#allocation11 + $0x110] sm:$0xff]  ;;  %v10327_v34 = vand.u32 4294901760, %v7878_v35 }
 0x142   : > { %v5543_v17 = vpack.c.bf16 %v1145_v58, %v1133_v63  ;;  %5542 = vmatprep.subr.bf16.mxu0 %v5541_v27  ;;  %v7888_v58 = vld [vmem:[#allocation11 + $0xf0] sm:$0xff]  ;;  %v7890_v63 = vld [vmem:[#allocation11 + $0x118] sm:$0xff]  ;;  %v5547_v27 = vpack.c.bf16 %v7310_v24, %v7306_v18  ;;  %v10679_v24 = vand.u32 4294901760, %v7870_v38 }
 0x143   : > { %10674 = vst [vmem:[#allocation131_spill] sm:$0xff] %v7884_v22  ;;  %v7900_v25 = vpack.c.bf16 %v10676_v23, %v10675_v42  ;;  %5810 = vmatprep.subr.bf16.mxu1 %v7884_v22  ;;  %v5551_v23 = vpack.c.bf16 %v7331_v41, %v7329_v40  ;;  %v10684_v22 = vand.u32 4294901760, %v7892_v47  ;;  %v7942_v29 = vld [vmem:[#allocation11 + $0x150] sm:$0xff]  ;;  %v5553_v41 = vpack.c.bf16 %v7338_v46, %v7336_v45  ;;  %v7950_v40 = vld [vmem:[#allocation11 + $0x1b8] sm:$0xff] }
 0x144   : > { %5544 = vmatpush1.bf16.msra.mxu0 %v5543_v17  ;;  %v10678_v17 = vand.u32 4294901760, %v7868_v49  ;;  %v7944_v28 = vld [vmem:[#allocation11 + $0x170] sm:$0xff]  ;;  %v7981_v46 = vld [vmem:[#allocation11 + $0x1f8] sm:$0xff] }
 0x145   : > { %10677 = vst [vmem:[#allocation132_spill] sm:$0xff] %v7900_v25  ;;  %5546 = vmatprep.subr.bf16.mxu0 %v5545_v9  ;;  %5812 = vmatpush1.bf16.msra.mxu1 %v7900_v25  ;;  %v10681_v9 = vand.u32 4294901760, %v7888_v58  ;;  %v7966_v45 = vld [vmem:[#allocation11 + $0x190] sm:$0xff] }
 0x146   : > { %v7913_v18 = vpack.c.bf16 %v10679_v24, %v10678_v17  ;;  %v7924_v24 = vld [vmem:[#allocation11 + $0x158] sm:$0xff] }
 0x147   : > { %1150 = vmatmul.mubr.f32.vlgmr.msra.gmra.mrb[0].mxu0 %v7751_v13  ;;  %v7926_v17 = vld [vmem:[#allocation11 + $0x178] sm:$0xff]  ;;  %v7934_v42 = vpack.c.bf16 %v10681_v9, %v10327_v34  ;;  %v10686_v9 = vand.u32 4294901760, %v7902_v20  ;;  %v10687_v34 = vand.u32 4294901760, %v7904_v50  ;;  %v10696_v13 = vand.u32 4294901760, %v7784_v56 }
 0x148   : > { %10680 = vst [vmem:[#allocation133_spill] sm:$0xff] %v7913_v18  ;;  %5814 = vmatprep.subr.bf16.mxu1 %v7913_v18  ;;  %5548 = vmatpush1.bf16.msra.mxu0 %v5547_v27  ;;  %v10683_v18 = vand.u32 4294901760, %v7890_v63  ;;  %v7946_v27 = vld [vmem:[#allocation11 + $0x198] sm:$0xff]  ;;  %v10338_v33 = vand.u32 4294901760, %v7926_v17 }
 0x149   : > { %10682 = vst [vmem:[#allocation134_spill] sm:$0xff] %v7934_v42  ;;  %5550 = vmatprep.subr.bf16.mxu0 %v5549_v2  ;;  %5816 = vmatpush1.bf16.msra.mxu1 %v7934_v42  ;;  %v7979_v2 = vld [vmem:[#allocation11 + $0x1d8] sm:$0xff]  ;;  %v10690_v42 = vand.u32 4294901760, %v7737_v5  ;;  %v8003_v30 = vsub.f32 %v7784_v56, %v10696_v13 }
 0x14a   : > { %v7940_v25 = vpack.c.bf16 %v10684_v22, %v10683_v18  ;;  %v7957_v18 = vpack.c.bf16 %v10687_v34, %v10686_v9  ;;  %v10339_v22 = vand.u32 4294901760, %v7924_v24  ;;  %1350 = vmatprep.mubr.f32.mxu0 %v7760_v32  ;;  %v5555_v34 = vpack.c.bf16 %v7361_v0, %v7359_v60  ;;  %v7977_v32 = vld [vmem:[#allocation11 + $0x1b0] sm:$0xff]  ;;  %v8044_v13 = vld [vmem:[#allocation11 + $0x218] sm:$0xff] }
 0x14b   : > { %v10692_v0 = vand.u32 4294901760, %v7753_v16  ;;  %10697 = vst [vmem:[#allocation141_spill] sm:$0xff] %v8003_v30 }
 0x14c   : > { %10685 = vst [vmem:[#allocation135_spill] sm:$0xff] %v7940_v25  ;;  %10688 = vst [vmem:[#allocation136_spill] sm:$0xff] %v7957_v18  ;;  %5818 = vmatprep.subr.bf16.mxu1 %v7940_v25  ;;  %5552 = vmatpush1.bf16.msra.mxu0 %v5551_v23  ;;  %v7974_v9 = vpack.c.bf16 %v10338_v33, %v10339_v22  ;;  %v7986_v23 = vsub.f32 %v7737_v5, %v10690_v42  ;;  %v10694_v22 = vand.u32 4294901760, %v7782_v48 }
 0x14d   : > { %v7991_v60 = vsub.f32 %v7753_v16, %v10692_v0  ;;  %5554 = vmatprep.subr.bf16.mxu0 %v5553_v41  ;;  %v5557_v33 = vpack.c.bf16 %v7377_v15, %v7375_v14  ;;  %5820 = vmatpush1.bf16.msra.mxu1 %v7957_v18  ;;  %v10698_v5 = vand.u32 4294901760, %v7942_v29  ;;  %v10699_v0 = vand.u32 4294901760, %v7944_v28  ;;  %v8023_v15 = vld [vmem:[#allocation11 + $0x1d0] sm:$0xff]  ;;  %v8046_v14 = vld [vmem:[#allocation11 + $0x238] sm:$0xff] }
 0x14e   : > { %10689 = vst [vmem:[#allocation137_spill] sm:$0xff] %v7974_v9  ;;  %10691 = vst [vmem:[#allocation138_spill] sm:$0xff] %v7986_v23  ;;  %v7998_v25 = vsub.f32 %v7782_v48, %v10694_v22  ;;  %5822 = vmatprep.subr.bf16.mxu1 %v7974_v9  ;;  %v10701_v48 = vand.u32 4294901760, %v7946_v27  ;;  %v10702_v42 = vand.u32 4294901760, %v7950_v40  ;;  %v10706_v9 = vand.u32 4294901760, %v7808_v61 }
 0x14f   : > { %10693 = vst [vmem:[#allocation139_spill] sm:$0xff] %v7991_v60  ;;  %v8010_v41 = vpack.c.bf16 %v10699_v0, %v10698_v5  ;;  %v8025_v5 = vld [vmem:[#allocation11 + $0x1f0] sm:$0xff]  ;;  %v10704_v0 = vand.u32 4294901760, %v7806_v55  ;;  %v5559_v18 = vpack.c.bf16 %v7394_v51, %v7390_v39  ;;  %v10714_v51 = vand.u32 4294901760, %v7858_v37 }
 0x150   : > { %10695 = vst [vmem:[#allocation140_spill] sm:$0xff] %v7998_v25  ;;  %v8018_v22 = vpack.c.bf16 %v10702_v42, %v10701_v48  ;;  %v8035_v48 = vsub.f32 %v7808_v61, %v10706_v9  ;;  %v10708_v42 = vand.u32 4294901760, %v7815_v1  ;;  %5556 = vmatpush1.bf16.msra.mxu0 %v5555_v34  ;;  %v10711_v61 = vand.u32 4294901760, %v7835_v8 }
 0x151   : > { %10700 = vst [vmem:[#allocation142_spill] sm:$0xff] %v8010_v41  ;;  %v8030_v16 = vsub.f32 %v7806_v55, %v10704_v0  ;;  %v10709_v55 = vand.u32 4294901760, %v7829_v19  ;;  %5558 = vmatprep.subr.bf16.mxu0 %v5557_v33  ;;  %v8068_v39 = vsub.f32 %v7858_v37, %v10714_v51  ;;  %5824 = vmatpush1.bf16.msra.mxu1 %v8010_v41  ;;  %v10721_v51 = vand.u32 4294901760, %v7979_v2  ;;  %v8095_v33 = vld [vmem:[#allocation11 + $0x230] sm:$0xff] }
 0x152   : > { %10703 = vst [vmem:[#allocation143_spill] sm:$0xff] %v8018_v22  ;;  %10707 = vst [vmem:[#allocation145_spill] sm:$0xff] %v8035_v48  ;;  %v8040_v56 = vsub.f32 %v7815_v1, %v10708_v42  ;;  %v8056_v9 = vsub.f32 %v7835_v8, %v10711_v61  ;;  %v10712_v1 = vand.u32 4294901760, %v7854_v54  ;;  %v5561_v42 = vpack.c.bf16 %v7407_v3, %v7403_v62  ;;  %v8093_v3 = vld [vmem:[#allocation11 + $0x210] sm:$0xff] }
 0x153   : > { %10705 = vst [vmem:[#allocation144_spill] sm:$0xff] %v8030_v16  ;;  %v8051_v0 = vsub.f32 %v7829_v19, %v10709_v55  ;;  %10715 = vst [vmem:[#allocation148_spill] sm:$0xff] %v8068_v39  ;;  %v10716_v19 = vand.u32 4294901760, %v7966_v45  ;;  %v10717_v8 = vand.u32 4294901760, %v7977_v32  ;;  %v10719_v61 = vand.u32 4294901760, %v7860_v10  ;;  %5826 = vmatprep.subr.bf16.mxu1 %v8018_v22  ;;  %v8114_v39 = vld [vmem:[#allocation11 + $0x258] sm:$0xff] }
 0x154   : > { %v8061_v34 = vsub.f32 %v7854_v54, %v10712_v1  ;;  %v1960_v54 = vand.u32 4294901760, %v8023_v15  ;;  %v10722_v37 = vand.u32 4294901760, %v7981_v46  ;;  %v10724_v62 = vand.u32 4294901760, %v7868_v49  ;;  %5560 = vmatpush1.bf16.msra.mxu0 %v5559_v18 }
 0x155   : > { %10710 = vst [vmem:[#allocation146_spill] sm:$0xff] %v8051_v0  ;;  %v8075_v55 = vpack.c.bf16 %v10717_v8, %v10716_v19  ;;  %v8082_v1 = vsub.f32 %v7860_v10, %v10719_v61  ;;  %v1966_v19 = vand.u32 4294901760, %v8044_v13  ;;  %v1970_v8 = vand.u32 4294901760, %v8046_v14  ;;  %5562 = vmatprep.subr.bf16.mxu0 %v5561_v42 }
 0x156   : > { %10713 = vst [vmem:[#allocation147_spill] sm:$0xff] %v8061_v34  ;;  %v8089_v41 = vpack.c.bf16 %v10722_v37, %v10721_v51  ;;  %v8100_v10 = vsub.f32 %v7868_v49, %v10724_v62  ;;  %v10725_v61 = vand.u32 4294901760, %v7870_v38  ;;  %v10727_v51 = vand.u32 4294901760, %v7878_v35  ;;  %v8116_v34 = vld [vmem:[#allocation11 + $0x278] sm:$0xff] }
 0x157   : > { %10718 = vst [vmem:[#allocation149_spill] sm:$0xff] %v8075_v55  ;;  %10720 = vst [vmem:[#allocation150_spill] sm:$0xff] %v8082_v1  ;;  %v5563_v1 = vpack.c.bf16 %v7424_v53, %v7420_v31  ;;  %v10728_v62 = vand.u32 4294901760, %v7888_v58  ;;  %v10734_v53 = vand.u32 4294901760, %v7902_v20  ;;  %5828 = vmatpush1.bf16.msra.mxu1 %v8075_v55  ;;  %v10738_v42 = vand.u32 4294901760, %v7904_v50  ;;  %v542_v55 = vld [vmem:[#allocation11 + $0x250] sm:$0xff] }
 0x158   : > { %10723 = vst [vmem:[#allocation151_spill] sm:$0xff] %v8089_v41  ;;  %v8105_v22 = vsub.f32 %v7870_v38, %v10725_v61  ;;  %v8110_v37 = vsub.f32 %v7878_v35, %v10727_v51  ;;  %v10730_v38 = vand.u32 4294901760, %v7890_v63  ;;  %v10732_v35 = vand.u32 4294901760, %v7892_v47  ;;  %5830 = vmatprep.subr.bf16.mxu1 %v8089_v41 }
 0x159   : > { %v8121_v49 = vsub.f32 %v7888_v58, %v10728_v62  ;;  %v5565_v51 = vpack.c.bf16 %v7437_v7, %v7433_v36  ;;  %v8138_v31 = vsub.f32 %v7902_v20, %v10734_v53  ;;  %v10736_v58 = vand.u32 4294901760, %v8025_v5  ;;  %5564 = vmatpush1.bf16.msra.mxu0 %v5563_v1 }
 0x15a   : > { %10726 = vst [vmem:[#allocation152_spill] sm:$0xff] %v8105_v22  ;;  %v8126_v61 = vsub.f32 %v7890_v63, %v10730_v38  ;;  %v8131_v18 = vsub.f32 %v7892_v47, %v10732_v35  ;;  %v1968_v62 = vand.u32 4294901760, %v8093_v3  ;;  %v1972_v47 = vand.u32 4294901760, %v8095_v33 }
 0x15b   : > { %10729 = vst [vmem:[#allocation153_spill] sm:$0xff] %v8121_v49  ;;  %10735 = vst [vmem:[#allocation156_spill] sm:$0xff] %v8138_v31  ;;  %v8143_v63 = vpack.c.bf16 %v10736_v58, %v1960_v54  ;;  %v8150_v38 = vsub.f32 %v7904_v50, %v10738_v42  ;;  %v8153_v35 = vpack.c.bf16 %v1970_v8, %v1966_v19  ;;  %v1974_v53 = vand.u32 4294901760, %v8114_v39  ;;  %v546_v58 = vld [vmem:[#allocation11 + $0x270] sm:$0xff] }
 0x15c   : > { %10731 = vst [vmem:[#allocation154_spill] sm:$0xff] %v8126_v61  ;;  %10733 = vst [vmem:[#allocation155_spill] sm:$0xff] %v8131_v18  ;;  %v1978_v20 = vand.u32 4294901760, %v8116_v34  ;;  %v10741_v7 = vand.u32 4294901760, %v7924_v24  ;;  %v10743_v31 = vand.u32 4294901760, %v7926_v17  ;;  %v10745_v42 = vand.u32 4294901760, %v7942_v29  ;;  %5566 = vmatprep.subr.bf16.mxu0 %v5565_v51 }
 0x15d   : > { %10737 = vst [vmem:[#allocation157_spill] sm:$0xff] %v8143_v63  ;;  %10739 = vst [vmem:[#allocation158_spill] sm:$0xff] %v8150_v38  ;;  %v5567_v38 = vpack.c.bf16 %v7454_v11, %v7450_v4  ;;  %v551_v18 = vld [vmem:[#allocation11 + $0x298] sm:$0xff]  ;;  %v10747_v49 = vand.u32 4294901760, %v7944_v28  ;;  %v5569_v1 = vpack.c.bf16 %v7467_v44, %v7463_v26  ;;  %5832 = vmatpush1.bf16.msra.mxu1 %v8143_v63  ;;  %v550_v26 = vld [vmem:[#allocation11 + $0x290] sm:$0xff]  ;;  %v10761_v4 = vand.u32 4294901760, %v7981_v46 }
 0x15e   : > { %10740 = vst [vmem:[#allocation159_spill] sm:$0xff] %v8153_v35  ;;  %v8160_v36 = vsub.f32 %v7924_v24, %v10741_v7  ;;  %v8165_v50 = vsub.f32 %v7926_v17, %v10743_v31  ;;  %v8170_v41 = vsub.f32 %v7942_v29, %v10745_v42  ;;  %v555_v61 = vld [vmem:[#allocation11 + $0x2b8] sm:$0xff]  ;;  %v10749_v24 = vand.u32 4294901760, %v7946_v27  ;;  %5834 = vmatprep.subr.bf16.mxu1 %v8153_v35 }
 0x15f   : > { %v8177_v7 = vsub.f32 %v7944_v28, %v10747_v49  ;;  %v10751_v17 = vand.u32 4294901760, %v7950_v40  ;;  %v10753_v42 = vand.u32 4294901760, %v7966_v45  ;;  %v8197_v28 = vpack.c.bf16 %v1972_v47, %v1968_v62  ;;  %5568 = vmatpush1.bf16.msra.mxu0 %v5567_v38  ;;  %v559_v35 = vld [vmem:[#allocation11 + $0x2d8] sm:$0xff] }
 0x160   : > { %10742 = vst [vmem:[#allocation160_spill] sm:$0xff] %v8160_v36  ;;  %10744 = vst [vmem:[#allocation161_spill] sm:$0xff] %v8165_v50  ;;  %v8182_v31 = vsub.f32 %v7946_v27, %v10749_v24  ;;  %v1976_v27 = vand.u32 4294901760, %v542_v55  ;;  %v1980_v49 = vand.u32 4294901760, %v546_v58  ;;  %v10756_v24 = vand.u32 4294901760, %v7977_v32  ;;  %5570 = vmatprep.subr.bf16.mxu0 %v5569_v1  ;;  %v562_v1 = vld [vmem:[#allocation11 + $0x2f0] sm:$0xff] }
 0x161   : > { %10746 = vst [vmem:[#allocation162_spill] sm:$0xff] %v8170_v41  ;;  %10748 = vst [vmem:[#allocation163_spill] sm:$0xff] %v8177_v7  ;;  %v8187_v29 = vsub.f32 %v7950_v40, %v10751_v17  ;;  %v8194_v11 = vsub.f32 %v7966_v45, %v10753_v42  ;;  %v8205_v51 = vpack.c.bf16 %v1978_v20, %v1974_v53  ;;  %v1982_v17 = vand.u32 4294901760, %v551_v18  ;;  %v554_v45 = vld [vmem:[#allocation11 + $0x2b0] sm:$0xff] }
 0x162   : > { %10750 = vst [vmem:[#allocation164_spill] sm:$0xff] %v8182_v31  ;;  %10755 = vst [vmem:[#allocation167_spill] sm:$0xff] %v8197_v28  ;;  %v8202_v40 = vsub.f32 %v7977_v32, %v10756_v24  ;;  %v1986_v44 = vand.u32 4294901760, %v555_v61  ;;  %v10759_v42 = vand.u32 4294901760, %v7979_v2  ;;  %v8218_v32 = vsub.f32 %v8023_v15, %v1960_v54  ;;  %5836 = vmatpush1.bf16.msra.mxu1 %v8197_v28 }
 0x163   : > { %10752 = vst [vmem:[#allocation165_spill] sm:$0xff] %v8187_v29  ;;  %10754 = vst [vmem:[#allocation166_spill] sm:$0xff] %v8194_v11  ;;  %v8215_v11 = vsub.f32 %v7981_v46, %v10761_v4  ;;  %v5571_v24 = vpack.c.bf16 %v7484_v43, %v7480_v21  ;;  %v10764_v29 = vand.u32 4294901760, %v8025_v5  ;;  %v8231_v46 = vsub.f32 %v8046_v14, %v1970_v8  ;;  %v558_v8 = vld [vmem:[#allocation11 + $0x2d0] sm:$0xff] }
 0x164   : > { %10757 = vst [vmem:[#allocation168_spill] sm:$0xff] %v8202_v40  ;;  %10758 = vst [vmem:[#allocation169_spill] sm:$0xff] %v8205_v51  ;;  %v8210_v63 = vsub.f32 %v7979_v2, %v10759_v42  ;;  %v563_v40 = vld [vmem:[#allocation11 + $0x2f8] sm:$0xff]  ;;  %v8228_v2 = vsub.f32 %v8044_v13, %v1966_v19  ;;  %v5573_v15 = vpack.c.bf16 %v7497_v12, %v7493_v57  ;;  %v1984_v38 = vand.u32 4294901760, %v550_v26 }
 0x165   : > { %10762 = vst [vmem:[#allocation171_spill] sm:$0xff] %v8215_v11  ;;  %10763 = vst [vmem:[#allocation172_spill] sm:$0xff] %v8218_v32  ;;  %v8225_v31 = vsub.f32 %v8025_v5, %v10764_v29  ;;  %v8237_v4 = vsub.f32 %v8093_v3, %v1968_v62  ;;  %v8239_v54 = vpack.c.bf16 %v1980_v49, %v1976_v27  ;;  %v1988_v5 = vand.u32 4294901760, %v554_v45  ;;  %v571_v12 = vld [vmem:[#allocation11 + $0x338] sm:$0xff]  ;;  %v10830_v32 = vld [vmem:[#allocation125_spill] sm:$0xff] }
 0x166   : > { %10760 = vst [vmem:[#allocation170_spill] sm:$0xff] %v8210_v63  ;;  %10766 = vst [vmem:[#allocation174_spill] sm:$0xff] %v8228_v2  ;;  %v8242_v29 = vsub.f32 %v8095_v33, %v1972_v47  ;;  %5838 = vmatprep.subr.bf16.mxu1 %v8205_v51  ;;  %v8245_v13 = vpack.c.bf16 %v1986_v44, %v1982_v17  ;;  %v1990_v14 = vand.u32 4294901760, %v559_v35  ;;  %v1994_v19 = vand.u32 4294901760, %v563_v40  ;;  %v10774_v33 = vld [vmem:[#allocation73_spill] sm:$0xff]  ;;  %v10775_v47 = vld [vmem:[#allocation74_spill] sm:$0xff] }
 0x167   : > { %10765 = vst [vmem:[#allocation173_spill] sm:$0xff] %v8225_v31  ;;  %10767 = vst [vmem:[#allocation175_spill] sm:$0xff] %v8231_v46  ;;  %5572 = vmatpush1.bf16.msra.mxu0 %v5571_v24  ;;  %v8248_v42 = vsub.f32 %v8114_v39, %v1974_v53  ;;  %v8251_v3 = vsub.f32 %v8116_v34, %v1978_v20  ;;  %v5575_v62 = vpack.c.bf16 %v7514_v6, %v7510_v59  ;;  %v567_v51 = vld [vmem:[#allocation11 + $0x318] sm:$0xff]  ;;  %v10779_v39 = vld [vmem:[#allocation76_spill] sm:$0xff] }
 0x168   : > { %10768 = vst [vmem:[#allocation176_spill] sm:$0xff] %v8237_v4  ;;  %10769 = vst [vmem:[#allocation177_spill] sm:$0xff] %v8239_v54  ;;  %v5577_v28 = vpack.c.bf16 %v10775_v47, %v10774_v33  ;;  %5574 = vmatprep.subr.bf16.mxu0 %v5573_v15  ;;  %v8257_v57 = vsub.f32 %v542_v55, %v1976_v27  ;;  %v8259_v43 = vsub.f32 %v546_v58, %v1980_v49  ;;  %v10780_v53 = vld [vmem:[#allocation78_spill] sm:$0xff]  ;;  %v10783_v47 = vld [vmem:[#allocation96_spill] sm:$0xff] }
 0x169   : > { %10770 = vst [vmem:[#allocation178_spill] sm:$0xff] %v8242_v29  ;;  %10771 = vst [vmem:[#allocation179_spill] sm:$0xff] %v8245_v13  ;;  %v8261_v24 = vsub.f32 %v551_v18, %v1982_v17  ;;  %v5579_v21 = vpack.c.bf16 %v10780_v53, %v10779_v39  ;;  %5840 = vmatpush1.bf16.msra.mxu1 %v8239_v54  ;;  %v8266_v34 = vpack.c.bf16 %v1988_v5, %v1984_v38  ;;  %v10782_v59 = vld [vmem:[#allocation94_spill] sm:$0xff]  ;;  %v10788_v53 = vld [vmem:[#allocation79_spill] sm:$0xff] }
 0x16a   : > { %10772 = vst [vmem:[#allocation180_spill] sm:$0xff] %v8248_v42  ;;  %10773 = vst [vmem:[#allocation181_spill] sm:$0xff] %v8251_v3  ;;  %v1992_v20 = vand.u32 4294901760, %v558_v8  ;;  %v1996_v6 = vand.u32 4294901760, %v562_v1  ;;  %5842 = vmatprep.subr.bf16.mxu1 %v8245_v13  ;;  %v8271_v55 = vsub.f32 %v555_v61, %v1986_v44  ;;  %v8273_v58 = vpack.c.bf16 %v1994_v19, %v1990_v14  ;;  %v8275_v49 = vld [vmem:[#allocation11 + $0x310] sm:$0xff]  ;;  %v10789_v39 = vld [vmem:[#allocation80_spill] sm:$0xff] }
 0x16b   : > { %10776 = vst [vmem:[#allocation182_spill] sm:$0xff] %v8257_v57  ;;  %10777 = vst [vmem:[#allocation183_spill] sm:$0xff] %v8259_v43  ;;  %v1998_v18 = vand.u32 4294901760, %v567_v51  ;;  %v2002_v27 = vand.u32 4294901760, %v571_v12  ;;  %v8277_v17 = vld [vmem:[#allocation11 + $0x330] sm:$0xff]  ;;  %5576 = vmatpush1.bf16.msra.mxu0 %v5575_v62  ;;  %v8279_v15 = vsub.f32 %v550_v26, %v1984_v38  ;;  %v8281_v54 = vsub.f32 %v554_v45, %v1988_v5  ;;  %v10791_v13 = vld [vmem:[#allocation84_spill] sm:$0xff] }
 0x16c   : > { %10778 = vst [vmem:[#allocation184_spill] sm:$0xff] %v8261_v24  ;;  %10781 = vst [vmem:[#allocation185_spill] sm:$0xff] %v8266_v34  ;;  %v5581_v33 = vpack.c.bf16 %v10789_v39, %v10788_v53  ;;  %v10790_v24 = vld [vmem:[#allocation82_spill] sm:$0xff]  ;;  %v8287_v61 = vld [vmem:[#allocation11 + $0x358] sm:$0xff]  ;;  %5578 = vmatprep.subr.bf16.mxu0 %v5577_v28  ;;  %v8291_v43 = vsub.f32 %v559_v35, %v1990_v14  ;;  %v8300_v39 = vpack.c.bf16 %v1996_v6, %v1992_v20 }
 0x16d   : > { %10784 = vst [vmem:[#allocation186_spill] sm:$0xff] %v8271_v55  ;;  %10785 = vst [vmem:[#allocation187_spill] sm:$0xff] %v8273_v58  ;;  %v5583_v44 = vpack.c.bf16 %v10791_v13, %v10790_v24  ;;  %v8289_v55 = vld [vmem:[#allocation11 + $0x378] sm:$0xff]  ;;  %v10793_v57 = vld [vmem:[#allocation85_spill] sm:$0xff]  ;;  %5844 = vmatpush1.bf16.msra.mxu1 %v8266_v34  ;;  %v2000_v13 = vand.u32 4294901760, %v8275_v49  ;;  %v8311_v45 = vsub.f32 %v563_v40, %v1994_v19 }
 0x16e   : > { %10786 = vst [vmem:[#allocation188_spill] sm:$0xff] %v8279_v15  ;;  %10787 = vst [vmem:[#allocation189_spill] sm:$0xff] %v8281_v54  ;;  %v10794_v3 = vld [vmem:[#allocation86_spill] sm:$0xff]  ;;  %v10795_v26 = vld [vmem:[#allocation97_spill] sm:$0xff]  ;;  %5846 = vmatprep.subr.bf16.mxu1 %v8273_v58  ;;  %v8313_v15 = vpack.c.bf16 %v2002_v27, %v1998_v18  ;;  %v8317_v53 = vsub.f32 %v558_v8, %v1992_v20  ;;  %v8319_v24 = vsub.f32 %v562_v1, %v1996_v6 }
 0x16f   : > { %10792 = vst [vmem:[#allocation190_spill] sm:$0xff] %v8291_v43  ;;  %v5585_v62 = vpack.c.bf16 %v10794_v3, %v10793_v57  ;;  %v10796_v38 = vld [vmem:[#allocation98_spill] sm:$0xff]  ;;  %v10797_v5 = vld [vmem:[#allocation100_spill] sm:$0xff]  ;;  %10799 = vst [vmem:[#allocation191_spill] sm:$0xff] %v8300_v39  ;;  %5580 = vmatpush1.bf16.msra.mxu0 %v5579_v21  ;;  %v8321_v43 = vsub.f32 %v567_v51, %v1998_v18  ;;  %v8323_v42 = vsub.f32 %v571_v12, %v2002_v27 }
 0x170   : > { %v10798_v54 = vld [vmem:[#allocation102_spill] sm:$0xff]  ;;  %v10800_v14 = vld [vmem:[#allocation103_spill] sm:$0xff]  ;;  %10801 = vst [vmem:[#allocation192_spill] sm:$0xff] %v8311_v45  ;;  %10802 = vst [vmem:[#allocation193_spill] sm:$0xff] %v8313_v15  ;;  %5582 = vmatprep.subr.bf16.mxu0 %v5581_v33  ;;  %v10811_v20 = vand.u32 4294901760, %v8277_v17 }
 0x171   : > { %v8304_v28 = vld [vmem:[#allocation11 + $0x350] sm:$0xff]  ;;  %10803 = vst [vmem:[#allocation194_spill] sm:$0xff] %v8317_v53  ;;  %10804 = vst [vmem:[#allocation195_spill] sm:$0xff] %v8319_v24  ;;  %v8325_v3 = vld [vmem:[#allocation11 + $0x398] sm:$0xff]  ;;  %5848 = vmatpush1.bf16.msra.mxu1 %v8300_v39  ;;  %v10823_v39 = vand.u32 4294901760, %v7991_v60 }
 0x172   : > { %v8306_v35 = vld [vmem:[#allocation11 + $0x370] sm:$0xff]  ;;  %10805 = vst [vmem:[#allocation196_spill] sm:$0xff] %v8321_v43  ;;  %10806 = vst [vmem:[#allocation197_spill] sm:$0xff] %v8323_v42  ;;  %v8327_v58 = vld [vmem:[#allocation11 + $0x3b8] sm:$0xff]  ;;  %v8342_v18 = vpack.c.bf16 %v10811_v20, %v2000_v13  ;;  %5850 = vmatprep.subr.bf16.mxu1 %v8313_v15  ;;  %v8393_v15 = vsub.f32 %v8275_v49, %v2000_v13  ;;  %v10832_v46 = vand.u32 4294901760, %v8325_v3  ;;  %v10841_v49 = vand.u32 4294901760, %v8035_v48 }
 0x173   : > { %v10807_v40 = vld [vmem:[#allocation88_spill] sm:$0xff]  ;;  %v10808_v19 = vld [vmem:[#allocation90_spill] sm:$0xff]  ;;  %v10813_v33 = vld [vmem:[#allocation109_spill] sm:$0xff]  ;;  %5584 = vmatpush1.bf16.msra.mxu0 %v5583_v44  ;;  %v10822_v44 = vand.u32 4294901760, %v7986_v23  ;;  %v2062_v21 = vsub.f32 %v7991_v60, %v10823_v39 }
 0x174   : > { %v5587_v45 = vpack.c.bf16 %v10808_v19, %v10807_v40  ;;  %v8333_v8 = vld [vmem:[#allocation11 + $0x390] sm:$0xff]  ;;  %v10810_v1 = vld [vmem:[#allocation108_spill] sm:$0xff]  ;;  %10812 = vst [vmem:[#allocation198_spill] sm:$0xff] %v8342_v18  ;;  %v10815_v19 = vand.u32 4294901760, %v8287_v61  ;;  %v10816_v40 = vand.u32 4294901760, %v8289_v55  ;;  %v10820_v57 = vld [vmem:[#allocation91_spill] sm:$0xff]  ;;  %5586 = vmatprep.subr.bf16.mxu0 %v5585_v62  ;;  %v2086_v13 = vsub.f32 %v8035_v48, %v10841_v49 }
 0x175   : > { %v8335_v6 = vld [vmem:[#allocation11 + $0x3b0] sm:$0xff]  ;;  %v10818_v42 = vld [vmem:[#allocation112_spill] sm:$0xff]  ;;  %v8363_v29 = vld [vmem:[#allocation11 + $0x3d8] sm:$0xff]  ;;  %v2050_v24 = vsub.f32 %v7986_v23, %v10822_v44  ;;  %5852 = vmatpush1.bf16.msra.mxu1 %v8342_v18  ;;  %v10826_v62 = vand.u32 4294901760, %v8304_v28  ;;  %10831 = vst [vmem:[#allocation201_spill] sm:$0xff] %v8393_v15  ;;  %v10833_v18 = vand.u32 4294901760, %v8327_v58 }
 0x176   : > { %v10809_v51 = vld [vmem:[#allocation106_spill] sm:$0xff]  ;;  %v8353_v12 = vpack.c.bf16 %v10816_v40, %v10815_v19  ;;  %v10821_v34 = vld [vmem:[#allocation92_spill] sm:$0xff]  ;;  %v8365_v4 = vld [vmem:[#allocation11 + $0x3f8] sm:$0xff]  ;;  %v10827_v40 = vand.u32 4294901760, %v8306_v35  ;;  %v10835_v44 = vand.u32 4294901760, %v8333_v8  ;;  %v10836_v39 = vand.u32 4294901760, %v8335_v6 }
 0x177   : > { %v10814_v27 = vld [vmem:[#allocation110_spill] sm:$0xff]  ;;  %v5589_v53 = vpack.c.bf16 %v10821_v34, %v10820_v57  ;;  %v10824_v34 = vld [vmem:[#allocation115_spill] sm:$0xff]  ;;  %v10825_v57 = vld [vmem:[#allocation116_spill] sm:$0xff]  ;;  %v8400_v60 = vpack.c.bf16 %v10833_v18, %v10832_v46  ;;  %5588 = vmatpush1.bf16.msra.mxu0 %v5587_v45  ;;  %v2051_v18 = vand.u32 4294901760, %v2050_v24  ;;  %v10847_v49 = vand.u32 4294901760, %v8365_v4 }
 0x178   : > { %10817 = vst [vmem:[#allocation199_spill] sm:$0xff] %v8353_v12  ;;  %v10819_v43 = vld [vmem:[#allocation114_spill] sm:$0xff]  ;;  %v8386_v2 = vpack.c.bf16 %v10827_v40, %v10826_v62  ;;  %5854 = vmatprep.subr.bf16.mxu1 %v8353_v12  ;;  %v8408_v31 = vpack.c.bf16 %v10836_v39, %v10835_v44  ;;  %v10838_v12 = vand.u32 4294901760, %v7998_v25  ;;  %v2063_v40 = vand.u32 4294901760, %v2062_v21 }
 0x179   : > { %v8368_v19 = vld [vmem:[#allocation11 + $0x3d0] sm:$0xff]  ;;  %10834 = vst [vmem:[#allocation202_spill] sm:$0xff] %v8400_v60  ;;  %5590 = vmatprep.subr.bf16.mxu0 %v5589_v53  ;;  %v10839_v62 = vand.u32 4294901760, %v8003_v30  ;;  %v10840_v44 = vand.u32 4294901760, %v8030_v16  ;;  %v10842_v21 = vand.u32 4294901760, %v8277_v17  ;;  %v10849_v53 = vld [vmem:[#allocation147_spill] sm:$0xff]  ;;  %v10856_v24 = vpack.c.bf16 %v10796_v38, %v10795_v26 }
 0x17a   : > { %v8370_v20 = vld [vmem:[#allocation11 + $0x3f0] sm:$0xff]  ;;  %10828 = vst [vmem:[#allocation200_spill] sm:$0xff] %v8386_v2  ;;  %10837 = vst [vmem:[#allocation203_spill] sm:$0xff] %v8408_v31  ;;  %v2056_v46 = vsub.f32 %v7998_v25, %v10838_v12  ;;  %5856 = vmatpush1.bf16.msra.mxu1 %v8386_v2  ;;  %v10850_v48 = vand.u32 4294901760, %v8289_v55  ;;  %v10879_v26 = vld [vmem:[#allocation127_spill] sm:$0xff] }
 0x17b   : > { %v10829_v23 = vld [vmem:[#allocation122_spill] sm:$0xff]  ;;  %v2068_v45 = vsub.f32 %v8003_v30, %v10839_v62  ;;  %v2074_v39 = vsub.f32 %v8030_v16, %v10840_v44  ;;  %v8431_v12 = vsub.f32 %v8277_v17, %v10842_v21  ;;  %v10844_v62 = vand.u32 4294901760, %v8287_v61  ;;  %5858 = vmatprep.subr.bf16.mxu1 %v8400_v60 }
 0x17c   : > { %v10846_v44 = vand.u32 4294901760, %v8363_v29  ;;  %v8449_v17 = vsub.f32 %v8289_v55, %v10850_v48  ;;  %v10851_v21 = vpack.c.bf16 %v10783_v47, %v10782_v59  ;;  %v2057_v16 = vand.u32 4294901760, %v2056_v46 }
 0x17d   : > { %10843 = vst [vmem:[#allocation204_spill] sm:$0xff] %v8431_v12  ;;  %v8436_v15 = vsub.f32 %v8287_v61, %v10844_v62  ;;  %v10852_v61 = vand.u32 4294901760, %v8368_v19  ;;  %v10853_v62 = vand.u32 4294901760, %v8370_v20  ;;  %v5865_v30 = vpack.c.bf16 %v2063_v40, %v2051_v18 }
 0x17e   : > { %v8443_v2 = vpack.c.bf16 %v10847_v49, %v10846_v44  ;;  %5592 = vmatpush1.bf16.msra.mxu0 %v10851_v21  ;;  %v10855_v44 = vld [vmem:[#allocation148_spill] sm:$0xff]  ;;  %v2069_v48 = vand.u32 4294901760, %v2068_v45  ;;  %v10857_v55 = vand.u32 4294901760, %v8040_v56  ;;  %v10858_v21 = vld [vmem:[#allocation150_spill] sm:$0xff]  ;;  %5860 = vmatpush1.bf16.msra.mxu1 %v8408_v31  ;;  %v2075_v25 = vand.u32 4294901760, %v2074_v39  ;;  %v10866_v45 = vld [vmem:[#allocation153_spill] sm:$0xff] }
 0x17f   : > { %10845 = vst [vmem:[#allocation205_spill] sm:$0xff] %v8436_v15  ;;  %v8458_v60 = vpack.c.bf16 %v10853_v62, %v10852_v61  ;;  %5594 = vmatprep.subr.bf16.mxu0 %v10856_v24  ;;  %v2087_v61 = vand.u32 4294901760, %v2086_v13  ;;  %v10859_v46 = vand.u32 4294901760, %v8051_v0  ;;  %v10860_v49 = vand.u32 4294901760, %v8056_v9 }
 0x180   : > { %10848 = vst [vmem:[#allocation206_spill] sm:$0xff] %v8443_v2  ;;  %v2080_v47 = vsub.f32 %v8040_v56, %v10857_v55  ;;  %5862 = vmatprep.subr.bf16.mxu1 %v8443_v2  ;;  %v10861_v40 = vand.u32 4294901760, %v10849_v53  ;;  %v10862_v39 = vand.u32 4294901760, %v8304_v28  ;;  %v10863_v59 = vand.u32 4294901760, %v8306_v35 }
 0x181   : > { %10854 = vst [vmem:[#allocation147_spill] sm:$0xff] %v8458_v60  ;;  %v2092_v62 = vsub.f32 %v8051_v0, %v10859_v46  ;;  %v2098_v24 = vsub.f32 %v8056_v9, %v10860_v49  ;;  %v10864_v2 = vpack.c.bf16 %v10798_v54, %v10797_v5  ;;  %v10867_v31 = vpack.c.bf16 %v7677_v52, %v10800_v14 }
 0x182   : > { %v2110_v18 = vsub.f32 %v10849_v53, %v10861_v40  ;;  %v8485_v46 = vsub.f32 %v8304_v28, %v10862_v39  ;;  %v8490_v49 = vsub.f32 %v8306_v35, %v10863_v59  ;;  %v10865_v40 = vand.u32 4294901760, %v10855_v44  ;;  %v10869_v35 = vld [vmem:[#allocation154_spill] sm:$0xff]  ;;  %5864 = vmatpush1.bf16.msra.mxu1 %v8458_v60 }
 0x183   : > { %5596 = vmatpush1.bf16.msra.mxu0 %v10864_v2  ;;  %v5867_v28 = vpack.c.bf16 %v2069_v48, %v2057_v16  ;;  %v2081_v39 = vand.u32 4294901760, %v2080_v47  ;;  %v10868_v38 = vand.u32 4294901760, %v10858_v21  ;;  %v5869_v2 = vpack.c.bf16 %v2087_v61, %v2075_v25  ;;  %5866 = vmatprep.subr.bf16.mxu1 %v5865_v30 }
 0x184   : > { %v2104_v55 = vsub.f32 %v10855_v44, %v10865_v40  ;;  %5598 = vmatprep.subr.bf16.mxu0 %v10867_v31  ;;  %v2093_v54 = vand.u32 4294901760, %v2092_v62  ;;  %v2099_v5 = vand.u32 4294901760, %v2098_v24  ;;  %v10870_v40 = vld [vmem:[#allocation155_spill] sm:$0xff]  ;;  %v2111_v13 = vand.u32 4294901760, %v2110_v18  ;;  %v10876_v24 = vld [vmem:[#allocation156_spill] sm:$0xff] }
 0x185   : > { %v2116_v59 = vsub.f32 %v10858_v21, %v10868_v38  ;;  %v10871_v52 = vand.u32 4294901760, %v8100_v10  ;;  %v10872_v31 = vand.u32 4294901760, %v8105_v22  ;;  %v10873_v38 = vand.u32 4294901760, %v8110_v37  ;;  %2041 = vmatmul.mubr.f32.vlgmr.msra.gmra.mrb[2].mxu1 %v10879_v26 }
 0x186   : > { %v10874_v25 = vpack.c.bf16 %v10810_v1, %v10809_v51  ;;  %v2105_v61 = vand.u32 4294901760, %v2104_v55  ;;  %v10875_v30 = vand.u32 4294901760, %v10866_v45  ;;  %v10880_v60 = vand.u32 4294901760, %v10869_v35  ;;  %5868 = vmatpush1.bf16.msra.mxu1 %v5867_v28 }
 0x187   : > { %v2122_v16 = vsub.f32 %v8100_v10, %v10871_v52  ;;  %v2134_v47 = vsub.f32 %v8105_v22, %v10872_v31  ;;  %v2128_v48 = vsub.f32 %v8110_v37, %v10873_v38  ;;  %v10877_v52 = vld [vmem:[#allocation158_spill] sm:$0xff]  ;;  %v10878_v31 = vpack.c.bf16 %v10814_v27, %v10813_v33  ;;  %5870 = vmatprep.subr.bf16.mxu1 %v5869_v2 }
 0x188   : > { %5600 = vmatpush1.bf16.msra.mxu0 %v10874_v25  ;;  %v2140_v62 = vsub.f32 %v10866_v45, %v10875_v30  ;;  %v2117_v38 = vand.u32 4294901760, %v2116_v59  ;;  %v2146_v25 = vsub.f32 %v10869_v35, %v10880_v60  ;;  %v10881_v30 = vand.u32 4294901760, %v8325_v3  ;;  %v10883_v59 = vld [vmem:[#allocation118_spill] sm:$0xff] }
 0x189   : > { %5602 = vmatprep.subr.bf16.mxu0 %v10878_v31  ;;  %v5871_v44 = vpack.c.bf16 %v2093_v54, %v2081_v39  ;;  %v10882_v31 = vand.u32 4294901760, %v10870_v40  ;;  %2432 = vmatprep.mubr.f32.mxu1 %v10883_v59  ;;  %v5873_v27 = vpack.c.bf16 %v2111_v13, %v2099_v5  ;;  %v2123_v60 = vand.u32 4294901760, %v2122_v16 }
 0x18a   : > { %v8537_v18 = vsub.f32 %v8325_v3, %v10881_v30  ;;  %v2135_v33 = vand.u32 4294901760, %v2134_v47  ;;  %v2129_v55 = vand.u32 4294901760, %v2128_v48  ;;  %v10884_v1 = vpack.c.bf16 %v10819_v43, %v10818_v42  ;;  %v10891_v30 = vld [vmem:[#allocation165_spill] sm:$0xff]  ;;  %v10914_v42 = vld [vmem:[#allocation178_spill] sm:$0xff] }
 0x18b   : > { %v2158_v26 = vsub.f32 %v10870_v40, %v10882_v31  ;;  %v2141_v51 = vand.u32 4294901760, %v2140_v62  ;;  %v10885_v3 = vand.u32 4294901760, %v10876_v24  ;;  %v10886_v28 = vand.u32 4294901760, %v10877_v52  ;;  %5872 = vmatpush1.bf16.msra.mxu1 %v5871_v44 }
 0x18c   : > { %5604 = vmatpush1.bf16.msra.mxu0 %v10884_v1  ;;  %v10887_v5 = vpack.c.bf16 %v10825_v57, %v10824_v34  ;;  %v5875_v13 = vpack.c.bf16 %v2117_v38, %v2105_v61  ;;  %v2147_v2 = vand.u32 4294901760, %v2146_v25  ;;  %v10888_v16 = vand.u32 4294901760, %v8160_v36  ;;  %5874 = vmatprep.subr.bf16.mxu1 %v5873_v27  ;;  %v10898_v34 = vld [vmem:[#allocation166_spill] sm:$0xff] }
 0x18d   : > { %v2152_v54 = vsub.f32 %v10876_v24, %v10885_v3  ;;  %v2164_v39 = vsub.f32 %v10877_v52, %v10886_v28  ;;  %v10889_v47 = vand.u32 4294901760, %v8165_v50  ;;  %v2159_v62 = vand.u32 4294901760, %v2158_v26  ;;  %v10890_v3 = vld [vmem:[#allocation164_spill] sm:$0xff] }
 0x18e   : > { %5606 = vmatprep.subr.bf16.mxu0 %v10887_v5  ;;  %v2170_v1 = vsub.f32 %v8160_v36, %v10888_v16  ;;  %v10892_v5 = vand.u32 4294901760, %v8327_v58  ;;  %v10893_v38 = vand.u32 4294901760, %v8333_v8  ;;  %v10894_v16 = vand.u32 4294901760, %v8335_v6  ;;  %v11015_v36 = vld [vmem:[#allocation205_spill] sm:$0xff] }
 0x18f   : > { %v2182_v48 = vsub.f32 %v8165_v50, %v10889_v47  ;;  %v5877_v26 = vpack.c.bf16 %v2135_v33, %v2123_v60  ;;  %v10895_v47 = vpack.c.bf16 %v10830_v32, %v10829_v23  ;;  %v5879_v43 = vpack.c.bf16 %v2141_v51, %v2129_v55  ;;  %5876 = vmatpush1.bf16.msra.mxu1 %v5875_v13  ;;  %v10908_v23 = vld [vmem:[#allocation175_spill] sm:$0xff] }
 0x190   : > { %v8568_v61 = vsub.f32 %v8327_v58, %v10892_v5  ;;  %v8573_v25 = vsub.f32 %v8333_v8, %v10893_v38  ;;  %v8578_v44 = vsub.f32 %v8335_v6, %v10894_v16  ;;  %v2153_v28 = vand.u32 4294901760, %v2152_v54  ;;  %v10897_v8 = vld [vmem:[#allocation24_spill] sm:$0xff] }
 0x191   : > { %5608 = vmatpush1.bf16.msra.mxu0 %v10895_v47  ;;  %v2165_v58 = vand.u32 4294901760, %v2164_v39  ;;  %v10896_v5 = vand.u32 4294901760, %v8170_v41  ;;  %v2171_v38 = vand.u32 4294901760, %v2170_v1  ;;  %v2183_v57 = vand.u32 4294901760, %v2182_v48  ;;  %v10899_v16 = vld [vmem:[#allocation168_spill] sm:$0xff]  ;;  %v10903_v1 = vld [vmem:[#allocation121_spill] sm:$0xff]  ;;  %5878 = vmatprep.subr.bf16.mxu1 %v5877_v26 }
 0x192   : > { %5610 = vmatprep.subr.bf16.mxu0 %v10897_v8  ;;  %v5881_v33 = vpack.c.bf16 %v2159_v62, %v2147_v2  ;;  %v10900_v60 = vand.u32 4294901760, %v8177_v7  ;;  %v10901_v55 = vand.u32 4294901760, %v10890_v3  ;;  %v10902_v39 = vand.u32 4294901760, %v10891_v30  ;;  %v10904_v2 = vld [vmem:[#allocation172_spill] sm:$0xff] }
 0x193   : > { %v2176_v31 = vsub.f32 %v8170_v41, %v10896_v5  ;;  %v10905_v5 = vld [vmem:[#allocation173_spill] sm:$0xff]  ;;  %v5883_v6 = vpack.c.bf16 %v2165_v58, %v2153_v28  ;;  %v5885_v26 = vpack.c.bf16 %v2183_v57, %v2171_v38  ;;  %v10911_v48 = vand.u32 4294901760, %v10898_v34  ;;  %5880 = vmatpush1.bf16.msra.mxu1 %v5879_v43 }
 0x194   : > { %v2188_v51 = vsub.f32 %v8177_v7, %v10900_v60  ;;  %v2194_v54 = vsub.f32 %v10890_v3, %v10901_v55  ;;  %v2206_v47 = vsub.f32 %v10891_v30, %v10902_v39  ;;  %1353 = vmatmul.mubr.f32.vlgmr.msra.gmra.mrb[0].mxu0 %v10903_v1  ;;  %v10906_v60 = vld [vmem:[#allocation26_spill] sm:$0xff]  ;;  %v10909_v39 = vld [vmem:[#allocation123_spill] sm:$0xff]  ;;  %v10910_v1 = vld [vmem:[#allocation28_spill] sm:$0xff]  ;;  %v10912_v62 = vand.u32 4294901760, %v10899_v16  ;;  %5882 = vmatprep.subr.bf16.mxu1 %v5881_v33 }
 0x195   : > { %5612 = vmatpush1.bf16.msra.mxu0 %v10906_v60  ;;  %v2177_v8 = vand.u32 4294901760, %v2176_v31  ;;  %v10907_v55 = vld [vmem:[#allocation174_spill] sm:$0xff]  ;;  %1490 = vmatprep.mubr.f32.mxu0 %v10909_v39  ;;  %v2200_v13 = vsub.f32 %v10898_v34, %v10911_v48  ;;  %v10913_v60 = vld [vmem:[#allocation176_spill] sm:$0xff]  ;;  %v10916_v38 = vand.u32 4294901760, %v8215_v11  ;;  %v10917_v39 = vand.u32 4294901760, %v10904_v2  ;;  %v10998_v30 = vld [vmem:[#allocation81_spill] sm:$0xff] }
 0x196   : > { %5614 = vmatprep.subr.bf16.mxu0 %v10910_v1  ;;  %v2212_v27 = vsub.f32 %v10899_v16, %v10912_v62  ;;  %v2189_v31 = vand.u32 4294901760, %v2188_v51  ;;  %v2195_v58 = vand.u32 4294901760, %v2194_v54  ;;  %v2207_v32 = vand.u32 4294901760, %v2206_v47  ;;  %v10921_v47 = vld [vmem:[#allocation31_spill] sm:$0xff]  ;;  %v11012_v3 = vld [vmem:[#allocation201_spill] sm:$0xff] }
 0x197   : > { %v10915_v1 = vand.u32 4294901760, %v8210_v63  ;;  %v2230_v48 = vsub.f32 %v8215_v11, %v10916_v38  ;;  %v2224_v62 = vsub.f32 %v10904_v2, %v10917_v39  ;;  %v10918_v43 = vand.u32 4294901760, %v10905_v5  ;;  %v10924_v39 = vld [vmem:[#allocation180_spill] sm:$0xff]  ;;  %5884 = vmatpush1.bf16.msra.mxu1 %v5883_v6 }
 0x198   : > { %v10919_v54 = vand.u32 4294901760, %v8363_v29  ;;  %v10923_v38 = vand.u32 4294901760, %v10908_v23  ;;  %v10925_v2 = vld [vmem:[#allocation36_spill] sm:$0xff]  ;;  %v10926_v11 = vand.u32 4294901760, %v10913_v60  ;;  %v5889_v16 = vpack.c.bf16 %v2207_v32, %v2195_v58  ;;  %5886 = vmatprep.subr.bf16.mxu1 %v5885_v26 }
 0x199   : > { %v2218_v57 = vsub.f32 %v8210_v63, %v10915_v1  ;;  %v2236_v51 = vsub.f32 %v10905_v5, %v10918_v43  ;;  %5616 = vmatpush1.bf16.msra.mxu0 %v10921_v47  ;;  %v10922_v1 = vand.u32 4294901760, %v10907_v55  ;;  %v2201_v43 = vand.u32 4294901760, %v2200_v13  ;;  %v10932_v47 = vld [vmem:[#allocation39_spill] sm:$0xff] }
 0x19a   : > { %v8631_v33 = vsub.f32 %v8363_v29, %v10919_v54  ;;  %v2254_v28 = vsub.f32 %v10908_v23, %v10923_v38  ;;  %5618 = vmatprep.subr.bf16.mxu0 %v10925_v2  ;;  %v2213_v5 = vand.u32 4294901760, %v2212_v27  ;;  %v2248_v29 = vsub.f32 %v10913_v60, %v10926_v11  ;;  %v10927_v54 = vld [vmem:[#allocation181_spill] sm:$0xff]  ;;  %v10929_v38 = vld [vmem:[#allocation182_spill] sm:$0xff]  ;;  %v10954_v60 = vld [vmem:[#allocation51_spill] sm:$0xff] }
 0x19b   : > { %v2242_v14 = vsub.f32 %v10907_v55, %v10922_v1  ;;  %v5887_v63 = vpack.c.bf16 %v2189_v31, %v2177_v8  ;;  %v10928_v1 = vand.u32 4294901760, %v10914_v42  ;;  %v10488_v23 = vand.u32 4294901760, %v10929_v38 }
 0x19c   : > { %10920 = vst [vmem:[#allocation153_spill] sm:$0xff] %v8631_v33  ;;  %v2219_v59 = vand.u32 4294901760, %v2218_v57  ;;  %v2231_v2 = vand.u32 4294901760, %v2230_v48  ;;  %v2225_v13 = vand.u32 4294901760, %v2224_v62  ;;  %v2237_v27 = vand.u32 4294901760, %v2236_v51  ;;  %v10935_v57 = vld [vmem:[#allocation42_spill] sm:$0xff] }
 0x19d   : > { %v2260_v55 = vsub.f32 %v10914_v42, %v10928_v1  ;;  %v10930_v34 = vand.u32 4294901760, %v8365_v4  ;;  %5620 = vmatpush1.bf16.msra.mxu0 %v10932_v47  ;;  %v2243_v8 = vand.u32 4294901760, %v2242_v14  ;;  %v2255_v32 = vand.u32 4294901760, %v2254_v28  ;;  %5888 = vmatpush1.bf16.msra.mxu1 %v5887_v63  ;;  %v10937_v51 = vld [vmem:[#allocation183_spill] sm:$0xff]  ;;  %v10943_v42 = vld [vmem:[#allocation190_spill] sm:$0xff] }
 0x19e   : > { %v10933_v6 = vand.u32 4294901760, %v10924_v39  ;;  %v10934_v58 = vand.u32 4294901760, %v8368_v19  ;;  %5622 = vmatprep.subr.bf16.mxu0 %v10935_v57  ;;  %v5891_v48 = vpack.c.bf16 %v2213_v5, %v2201_v43  ;;  %v2249_v62 = vand.u32 4294901760, %v2248_v29  ;;  %5890 = vmatprep.subr.bf16.mxu1 %v5889_v16  ;;  %v10939_v57 = vld [vmem:[#allocation186_spill] sm:$0xff]  ;;  %v10940_v43 = vld [vmem:[#allocation188_spill] sm:$0xff] }
 0x19f   : > { %v8653_v11 = vsub.f32 %v8365_v4, %v10930_v34  ;;  %v10936_v4 = vand.u32 4294901760, %v10927_v54  ;;  %v2261_v14 = vand.u32 4294901760, %v2260_v55  ;;  %v2272_v28 = vsub.f32 %v10929_v38, %v10488_v23  ;;  %v10942_v55 = vld [vmem:[#allocation189_spill] sm:$0xff]  ;;  %v10944_v23 = vld [vmem:[#allocation47_spill] sm:$0xff]  ;;  %v10945_v38 = vld [vmem:[#allocation192_spill] sm:$0xff] }
 0x1a0   : > { %v2266_v31 = vsub.f32 %v10924_v39, %v10933_v6  ;;  %v8662_v26 = vsub.f32 %v8368_v19, %v10934_v58  ;;  %v10938_v6 = vld [vmem:[#allocation184_spill] sm:$0xff]  ;;  %v5893_v19 = vpack.c.bf16 %v2231_v2, %v2219_v59  ;;  %v5895_v58 = vpack.c.bf16 %v2237_v27, %v2225_v13  ;;  %v10941_v39 = vld [vmem:[#allocation45_spill] sm:$0xff]  ;;  %v10946_v16 = vld [vmem:[#allocation194_spill] sm:$0xff] }
 0x1a1   : > { %10931 = vst [vmem:[#allocation127_spill] sm:$0xff] %v8653_v11  ;;  %v2278_v34 = vsub.f32 %v10927_v54, %v10936_v4  ;;  %5624 = vmatpush1.bf16.msra.mxu0 %v10941_v39  ;;  %v5897_v4 = vpack.c.bf16 %v2255_v32, %v2243_v8  ;;  %v10492_v54 = vand.u32 4294901760, %v10942_v55  ;;  %v10947_v2 = vld [vmem:[#allocation195_spill] sm:$0xff]  ;;  %5892 = vmatpush1.bf16.msra.mxu1 %v5891_v48  ;;  %v2273_v29 = vand.u32 4294901760, %v2272_v28  ;;  %v10952_v48 = vld [vmem:[#allocation196_spill] sm:$0xff] }
 0x1a2   : > { %v2267_v63 = vand.u32 4294901760, %v2266_v31  ;;  %5626 = vmatprep.subr.bf16.mxu0 %v10944_v23  ;;  %v5899_v27 = vpack.c.bf16 %v2261_v14, %v2249_v62  ;;  %v10948_v5 = vand.u32 4294901760, %v10937_v51  ;;  %v10949_v32 = vand.u32 4294901760, %v10938_v6  ;;  %5894 = vmatprep.subr.bf16.mxu1 %v5893_v19  ;;  %v10953_v14 = vld [vmem:[#allocation197_spill] sm:$0xff] }
 0x1a3   : > { %v2279_v1 = vand.u32 4294901760, %v2278_v34  ;;  %v10950_v34 = vand.u32 4294901760, %v10939_v57  ;;  %v10951_v59 = vand.u32 4294901760, %v10940_v43  ;;  %v10955_v19 = vand.u32 4294901760, %v10943_v42  ;;  %v10956_v23 = vld [vmem:[#allocation201_spill] sm:$0xff] }
 0x1a4   : > { %v2284_v8 = vsub.f32 %v10937_v51, %v10948_v5  ;;  %v2290_v31 = vsub.f32 %v10938_v6, %v10949_v32  ;;  %v2308_v5 = vsub.f32 %v10942_v55, %v10492_v54  ;;  %v10958_v62 = vand.u32 4294901760, %v10945_v38  ;;  %v11011_v6 = vld [vmem:[#allocation196_spill] sm:$0xff] }
 0x1a5   : > { %v2302_v47 = vsub.f32 %v10939_v57, %v10950_v34  ;;  %v2296_v13 = vsub.f32 %v10940_v43, %v10951_v59  ;;  %5628 = vmatpush1.bf16.msra.mxu0 %v10954_v60  ;;  %v2314_v32 = vsub.f32 %v10943_v42, %v10955_v19  ;;  %v10957_v57 = vld [vmem:[#allocation53_spill] sm:$0xff]  ;;  %v5901_v59 = vpack.c.bf16 %v2279_v1, %v2267_v63 }
 0x1a6   : > { %5630 = vmatprep.subr.bf16.mxu0 %v10957_v57  ;;  %v2326_v28 = vsub.f32 %v10945_v38, %v10958_v62  ;;  %v10959_v60 = vand.u32 4294901760, %v10946_v16  ;;  %v10960_v54 = vand.u32 4294901760, %v10947_v2  ;;  %5896 = vmatpush1.bf16.msra.mxu1 %v5895_v58  ;;  %v2285_v19 = vand.u32 4294901760, %v2284_v8  ;;  %v10963_v42 = vld [vmem:[#allocation57_spill] sm:$0xff] }
 0x1a7   : > { %v2291_v34 = vand.u32 4294901760, %v2290_v31  ;;  %5898 = vmatprep.subr.bf16.mxu1 %v5897_v4  ;;  %v2303_v1 = vand.u32 4294901760, %v2302_v47  ;;  %v2297_v63 = vand.u32 4294901760, %v2296_v13  ;;  %v10961_v62 = vand.u32 4294901760, %v10952_v48  ;;  %v10966_v13 = vld [vmem:[#allocation59_spill] sm:$0xff] }
 0x1a8   : > { %v2320_v43 = vsub.f32 %v10946_v16, %v10959_v60  ;;  %v2332_v55 = vsub.f32 %v10947_v2, %v10960_v54  ;;  %v10962_v60 = vand.u32 4294901760, %v10953_v14  ;;  %v2309_v54 = vand.u32 4294901760, %v2308_v5 }
 0x1a9   : > { %v2338_v38 = vsub.f32 %v10952_v48, %v10961_v62  ;;  %5632 = vmatpush1.bf16.msra.mxu0 %v10963_v42  ;;  %v2315_v58 = vand.u32 4294901760, %v2314_v32  ;;  %v10964_v8 = vand.u32 4294901760, %v10956_v23  ;;  %v10965_v4 = vand.u32 4294901760, %v8431_v12 }
 0x1aa   : > { %v2350_v16 = vsub.f32 %v10953_v14, %v10962_v60  ;;  %5634 = vmatprep.subr.bf16.mxu0 %v10966_v13  ;;  %v2327_v57 = vand.u32 4294901760, %v2326_v28  ;;  %v2321_v62 = vand.u32 4294901760, %v2320_v43  ;;  %v2333_v39 = vand.u32 4294901760, %v2332_v55  ;;  %5900 = vmatpush1.bf16.msra.mxu1 %v5899_v27 }
 0x1ab   : > { %v2344_v31 = vsub.f32 %v10956_v23, %v10964_v8  ;;  %v2356_v47 = vsub.f32 %v8431_v12, %v10965_v4  ;;  %v10967_v60 = vand.u32 4294901760, %v8370_v20  ;;  %v5903_v32 = vpack.c.bf16 %v2285_v19, %v2273_v29  ;;  %5902 = vmatprep.subr.bf16.mxu1 %v5901_v59  ;;  %v10970_v12 = vld [vmem:[#allocation63_spill] sm:$0xff]  ;;  %v10971_v19 = vld [vmem:[#allocation65_spill] sm:$0xff] }
 0x1ac   : > { %v10968_v8 = vand.u32 4294901760, %v8436_v15  ;;  %v10969_v4 = vand.u32 4294901760, %v8449_v17  ;;  %v5905_v43 = vpack.c.bf16 %v2303_v1, %v2291_v34  ;;  %v2339_v55 = vand.u32 4294901760, %v2338_v38  ;;  %v10973_v1 = vld [vmem:[#allocation138_spill] sm:$0xff] }
 0x1ad   : > { %v8735_v5 = vsub.f32 %v8370_v20, %v10967_v60  ;;  %v2351_v28 = vand.u32 4294901760, %v2350_v16  ;;  %v10503_v48 = vand.u32 4294901760, %v8490_v49  ;;  %5636 = vmatpush1.bf16.msra.mxu0 %v10970_v12  ;;  %v5907_v20 = vpack.c.bf16 %v2309_v54, %v2297_v63  ;;  %v10975_v54 = vld [vmem:[#allocation140_spill] sm:$0xff] }
 0x1ae   : > { %v2362_v42 = vsub.f32 %v8436_v15, %v10968_v8  ;;  %v2374_v13 = vsub.f32 %v8449_v17, %v10969_v4  ;;  %v2345_v60 = vand.u32 4294901760, %v2344_v31  ;;  %v2357_v27 = vand.u32 4294901760, %v2356_v47  ;;  %5638 = vmatprep.subr.bf16.mxu0 %v10971_v19  ;;  %5904 = vmatpush1.bf16.msra.mxu1 %v5903_v32  ;;  %v10974_v4 = vld [vmem:[#allocation139_spill] sm:$0xff]  ;;  %v10976_v31 = vld [vmem:[#allocation141_spill] sm:$0xff]  ;;  %v10982_v47 = vld [vmem:[#allocation148_spill] sm:$0xff] }
 0x1af   : > { %v5909_v8 = vpack.c.bf16 %v2327_v57, %v2315_v58  ;;  %v5911_v15 = vpack.c.bf16 %v2333_v39, %v2321_v62  ;;  %v10972_v23 = vand.u32 4294901760, %v8485_v46  ;;  %v10504_v38 = vand.u32 4294901760, %v8568_v61  ;;  %5906 = vmatprep.subr.bf16.mxu1 %v5905_v43  ;;  %v10977_v57 = vld [vmem:[#allocation144_spill] sm:$0xff]  ;;  %v10978_v58 = vld [vmem:[#allocation145_spill] sm:$0xff] }
 0x1b0   : > { %v2363_v16 = vand.u32 4294901760, %v2362_v42  ;;  %v2375_v34 = vand.u32 4294901760, %v2374_v13  ;;  %v5913_v29 = vpack.c.bf16 %v2351_v28, %v2339_v55  ;;  %v2380_v39 = vsub.f32 %v8490_v49, %v10503_v48  ;;  %v10979_v42 = vld [vmem:[#allocation69_spill] sm:$0xff]  ;;  %v10981_v28 = vld [vmem:[#allocation71_spill] sm:$0xff]  ;;  %v10997_v55 = vld [vmem:[#allocation178_spill] sm:$0xff] }
 0x1b1   : > { %v2368_v59 = vsub.f32 %v8485_v46, %v10972_v23  ;;  %5640 = vmatpush1.bf16.msra.mxu0 %v10979_v42  ;;  %v5915_v13 = vpack.c.bf16 %v2357_v27, %v2345_v60  ;;  %v10980_v32 = vand.u32 4294901760, %v8537_v18  ;;  %v2398_v23 = vsub.f32 %v8568_v61, %v10504_v38  ;;  %v10999_v12 = vld [vmem:[#allocation180_spill] sm:$0xff] }
 0x1b2   : > { %5642 = vmatprep.subr.bf16.mxu0 %v10981_v28  ;;  %v10505_v62 = vand.u32 4294901760, %v8578_v44  ;;  %5908 = vmatpush1.bf16.msra.mxu1 %v5907_v20  ;;  %v5917_v27 = vpack.c.bf16 %v2375_v34, %v2363_v16  ;;  %v10983_v20 = vld [vmem:[#allocation75_spill] sm:$0xff]  ;;  %v10984_v34 = vand.u32 4294901760, %v8573_v25 }
 0x1b3   : > { %v2386_v63 = vsub.f32 %v8537_v18, %v10980_v32  ;;  %v2369_v48 = vand.u32 4294901760, %v2368_v59  ;;  %5910 = vmatprep.subr.bf16.mxu1 %v5909_v8  ;;  %v2381_v59 = vand.u32 4294901760, %v2380_v39  ;;  %v10985_v39 = vld [vmem:[#allocation77_spill] sm:$0xff]  ;;  %v2399_v28 = vand.u32 4294901760, %v2398_v23  ;;  %v10996_v32 = vld [vmem:[#allocation176_spill] sm:$0xff]  ;;  %v11001_v23 = vld [vmem:[#allocation182_spill] sm:$0xff] }
 0x1b4   : > { %v2392_v43 = vsub.f32 %v8573_v25, %v10984_v34  ;;  %v2404_v60 = vsub.f32 %v8578_v44, %v10505_v62  ;;  %v10992_v62 = vand.u32 4294901760, %v8631_v33  ;;  %v11002_v8 = vld [vmem:[#allocation83_spill] sm:$0xff] }
 0x1b5   : > { %5644 = vmatpush1.bf16.msra.mxu0 %v10983_v20  ;;  %v2387_v16 = vand.u32 4294901760, %v2386_v63  ;;  %v10993_v63 = vand.u32 4294901760, %v8653_v11  ;;  %v5919_v19 = vpack.c.bf16 %v2381_v59, %v2369_v48  ;;  %v11006_v48 = vand.u32 4294901760, %v8662_v26 }
 0x1b6   : > { %5646 = vmatprep.subr.bf16.mxu0 %v10985_v39  ;;  %5912 = vmatpush1.bf16.msra.mxu1 %v5911_v15  ;;  %v2410_v41 = vsub.f32 %v8631_v33, %v10992_v62  ;;  %v2393_v42 = vand.u32 4294901760, %v2392_v43  ;;  %v11007_v59 = vand.u32 4294901760, %v8735_v5  ;;  %v11013_v15 = vld [vmem:[#allocation204_spill] sm:$0xff]  ;;  %v11016_v62 = vld [vmem:[#allocation89_spill] sm:$0xff] }
 0x1b7   : > { %5914 = vmatprep.subr.bf16.mxu1 %v5913_v29  ;;  %v2422_v20 = vsub.f32 %v8653_v11, %v10993_v63  ;;  %v11000_v29 = vld [vmem:[#allocation181_spill] sm:$0xff]  ;;  %v5921_v7 = vpack.c.bf16 %v2399_v28, %v2387_v16  ;;  %v2405_v63 = vand.u32 4294901760, %v2404_v60  ;;  %v2416_v43 = vsub.f32 %v8662_v26, %v11006_v48  ;;  %v11010_v28 = vld [vmem:[#allocation194_spill] sm:$0xff]  ;;  %v11014_v48 = vld [vmem:[#allocation87_spill] sm:$0xff] }
 0x1b8   : > { %v2428_v39 = vsub.f32 %v8735_v5, %v11007_v59  ;;  %v2411_v16 = vand.u32 4294901760, %v2410_v41  ;;  %v11019_v41 = vld [vmem:[#allocation99_spill] sm:$0xff]  ;;  %v11032_v59 = vld [vmem:[#allocation33_spill] sm:$0xff] }
 0x1b9   : > { %5648 = vmatpush1.bf16.msra.mxu0 %v10998_v30  ;;  %v11009_v30 = vld [vmem:[#allocation192_spill] sm:$0xff]  ;;  %v2423_v34 = vand.u32 4294901760, %v2422_v20  ;;  %v5923_v60 = vpack.c.bf16 %v2405_v63, %v2393_v42  ;;  %v2417_v20 = vand.u32 4294901760, %v2416_v43  ;;  %v11018_v42 = vld [vmem:[#allocation95_spill] sm:$0xff]  ;;  %v11022_v43 = vld [vmem:[#allocation105_spill] sm:$0xff] }
 0x1ba   : > { %5650 = vmatprep.subr.bf16.mxu0 %v11002_v8  ;;  %5916 = vmatpush1.bf16.msra.mxu1 %v5915_v13  ;;  %v2429_v38 = vand.u32 4294901760, %v2428_v39  ;;  %v11021_v39 = vpack.c.bf16 %v10974_v4, %v10973_v1  ;;  %v11033_v13 = vand.u32 4294901760, %v11032_v59  ;;  %v11043_v59 = vld [vmem:[#allocation30_spill] sm:$0xff] }
 0x1bb   : > { %5918 = vmatprep.subr.bf16.mxu1 %v5917_v27  ;;  %v5925_v8 = vpack.c.bf16 %v2423_v34, %v2411_v16  ;;  %v11024_v34 = vld [vmem:[#allocation119_spill] sm:$0xff] }
 0x1bc   : > { %v5927_v63 = vpack.c.bf16 %v2429_v38, %v2417_v20  ;;  %v11026_v38 = vld [vmem:[#allocation120_spill] sm:$0xff]  ;;  %v11028_v16 = vld [vmem:[#allocation111_spill] sm:$0xff]  ;;  %v11029_v20 = vld [vmem:[#allocation113_spill] sm:$0xff] }
 0x1bd   : > { %5652 = vmatpush1.bf16.msra.mxu0 %v11014_v48  ;;  %v11017_v48 = vld [vmem:[#allocation93_spill] sm:$0xff] }
 0x1be   : > { %5654 = vmatprep.subr.bf16.mxu0 %v11016_v62  ;;  %5920 = vmatpush1.bf16.msra.mxu1 %v5919_v19  ;;  %v11020_v19 = vld [vmem:[#allocation101_spill] sm:$0xff] }
 0x1bf   : > { %5922 = vmatprep.subr.bf16.mxu1 %v5921_v7  ;;  %v11023_v7 = vld [vmem:[#allocation107_spill] sm:$0xff] }
 0x1c1   : > { %5656 = vmatpush1.bf16.msra.mxu0 %v11017_v48 }
 0x1c2   : > { %5658 = vmatprep.subr.bf16.mxu0 %v11018_v42  ;;  %5924 = vmatpush1.bf16.msra.mxu1 %v5923_v60  ;;  %v11025_v60 = vpack.c.bf16 %v10976_v31, %v10975_v54 }
 0x1c3   : > { %5926 = vmatprep.subr.bf16.mxu1 %v5925_v8  ;;  %v11027_v8 = vpack.c.bf16 %v10978_v58, %v10977_v57 }
 0x1c5   : > { %5660 = vmatpush1.bf16.msra.mxu0 %v11019_v41 }
 0x1c6   : > { %5662 = vmatprep.subr.bf16.mxu0 %v11020_v19  ;;  %5928 = vmatpush1.bf16.msra.mxu1 %v5927_v63  ;;  %v11030_v63 = vld [vmem:[#allocation32_spill] sm:$0xff] }
 0x1c7   : > { %5930 = vmatprep.subr.bf16.mxu1 %v11021_v39  ;;  %v11031_v39 = vand.u32 4294901760, %v11030_v63  ;;  %v11041_v63 = vld [vmem:[#allocation29_spill] sm:$0xff] }
 0x1c8   : > { %v11042_v57 = vand.u32 4294901760, %v11041_v63  ;;  %v11052_v63 = vld [vmem:[#allocation118_spill] sm:$0xff] }
 0x1c9   : > { %5664 = vmatpush1.bf16.msra.mxu0 %v11022_v43  ;;  %2434 = vmatmul.mubr.f32.vlgmr.msra.gmra.mrb[2].mxu1 %v11024_v34  ;;  %v5673_v27 = vpack.c.bf16 %v11033_v13, %v11031_v39  ;;  %v11044_v13 = vand.u32 4294901760, %v11043_v59 }
 0x1ca   : > { %5666 = vmatprep.subr.bf16.mxu0 %v11023_v7  ;;  %5932 = vmatpush1.bf16.msra.mxu1 %v11025_v60  ;;  %v11034_v7 = vpack.c.bf16 %v8051_v0, %v8040_v56  ;;  %v11035_v60 = vpack.c.bf16 %v10849_v53, %v8056_v9  ;;  %v11046_v0 = vld [vmem:[#allocation124_spill] sm:$0xff] }
 0x1cb   : > { %2634 = vmatprep.mubr.f32.mxu1 %v11026_v38  ;;  %5934 = vmatprep.subr.bf16.mxu1 %v11027_v8  ;;  %v11036_v38 = vld [vmem:[#allocation117_spill] sm:$0xff]  ;;  %v5677_v39 = vpack.c.bf16 %v11044_v13, %v11042_v57  ;;  %v11055_v13 = vld [vmem:[#allocation38_spill] sm:$0xff] }
 0x1cc   : > { %v11037_v8 = vld [vmem:[#allocation25_spill] sm:$0xff] }
 0x1cd   : > { %5668 = vmatpush1.bf16.msra.mxu0 %v11028_v16  ;;  %v11038_v43 = vand.u32 4294901760, %v11037_v8  ;;  %v11039_v16 = vld [vmem:[#allocation27_spill] sm:$0xff]  ;;  %v11048_v8 = vld [vmem:[#allocation34_spill] sm:$0xff]  ;;  %v11053_v57 = vld [vmem:[#allocation37_spill] sm:$0xff] }
 0x1ce   : > { %5670 = vmatprep.subr.bf16.mxu0 %v11029_v20  ;;  %5936 = vmatpush1.bf16.msra.mxu1 %v11034_v7  ;;  %v11040_v58 = vand.u32 4294901760, %v11039_v16  ;;  %v11045_v7 = vpack.c.bf16 %v10858_v21, %v10982_v47  ;;  %v11049_v16 = vand.u32 4294901760, %v11048_v8  ;;  %v11054_v59 = vand.u32 4294901760, %v11053_v57 }
 0x1cf   : > { %5938 = vmatprep.subr.bf16.mxu1 %v11035_v60  ;;  %v11047_v60 = vpack.c.bf16 %v8105_v22, %v8100_v10  ;;  %v11057_v21 = vpack.c.bf16 %v10866_v45, %v8110_v37  ;;  %v11065_v22 = vld [vmem:[#allocation44_spill] sm:$0xff] }
 0x1d0   : > { %v5675_v20 = vpack.c.bf16 %v11040_v58, %v11038_v43  ;;  %v11050_v58 = vld [vmem:[#allocation35_spill] sm:$0xff] }
 0x1d1   : > { %5672 = vmatpush1.bf16.msra.mxu0 %v11036_v38  ;;  %v11056_v38 = vand.u32 4294901760, %v11055_v13  ;;  %v11066_v13 = vand.u32 4294901760, %v11065_v22 }
 0x1d2   : > { %5674 = vmatprep.subr.bf16.mxu0 %v5673_v27  ;;  %5940 = vmatpush1.bf16.msra.mxu1 %v11045_v7  ;;  %v11051_v27 = vand.u32 4294901760, %v11050_v58 }
 0x1d3   : > { %5942 = vmatprep.subr.bf16.mxu1 %v11047_v60  ;;  %v5681_v7 = vpack.c.bf16 %v11056_v38, %v11054_v59  ;;  %v11059_v60 = vld [vmem:[#allocation40_spill] sm:$0xff]  ;;  %v11067_v59 = vpack.c.bf16 %v10877_v52, %v10876_v24 }
 0x1d4   : > { %1494 = vmatmul.mubr.f32.vlgmr.msra.gmra.mrb[0].mxu0 %v11046_v0  ;;  %v5679_v43 = vpack.c.bf16 %v11051_v27, %v11049_v16  ;;  %v11060_v8 = vand.u32 4294901760, %v11059_v60  ;;  %v11061_v16 = vld [vmem:[#allocation41_spill] sm:$0xff]  ;;  %v11072_v60 = vld [vmem:[#allocation48_spill] sm:$0xff] }
 0x1d5   : > { %5676 = vmatpush1.bf16.msra.mxu0 %v5675_v20  ;;  %1757 = vmatprep.mubr.f32.mxu0 %v11052_v63  ;;  %v11058_v20 = vpack.c.bf16 %v10870_v40, %v10869_v35  ;;  %v11062_v58 = vand.u32 4294901760, %v11061_v16  ;;  %v11073_v16 = vand.u32 4294901760, %v11072_v60  ;;  %v11079_v35 = vld [vmem:[#allocation162_spill] sm:$0xff]  ;;  %v11082_v24 = vld [vmem:[#allocation164_spill] sm:$0xff] }
 0x1d6   : > { %5678 = vmatprep.subr.bf16.mxu0 %v5677_v39  ;;  %5944 = vmatpush1.bf16.msra.mxu1 %v11057_v21  ;;  %v11063_v39 = vld [vmem:[#allocation43_spill] sm:$0xff]  ;;  %v11068_v21 = vld [vmem:[#allocation160_spill] sm:$0xff] }
 0x1d7   : > { %5946 = vmatprep.subr.bf16.mxu1 %v11058_v20  ;;  %v5683_v27 = vpack.c.bf16 %v11062_v58, %v11060_v8  ;;  %v11064_v57 = vand.u32 4294901760, %v11063_v39  ;;  %v11069_v40 = vpack.c.bf16 %v8165_v50, %v11068_v21  ;;  %v11076_v39 = vld [vmem:[#allocation50_spill] sm:$0xff] }
 0x1d8   : > { %v11077_v22 = vand.u32 4294901760, %v11076_v39  ;;  %v11093_v21 = vld [vmem:[#allocation166_spill] sm:$0xff] }
 0x1d9   : > { %5680 = vmatpush1.bf16.msra.mxu0 %v5679_v43  ;;  %v5685_v38 = vpack.c.bf16 %v11066_v13, %v11064_v57  ;;  %v11070_v43 = vld [vmem:[#allocation46_spill] sm:$0xff]  ;;  %v11078_v13 = vld [vmem:[#allocation163_spill] sm:$0xff] }
 0x1da   : > { %5682 = vmatprep.subr.bf16.mxu0 %v5681_v7  ;;  %5948 = vmatpush1.bf16.msra.mxu1 %v11067_v59  ;;  %v11071_v20 = vand.u32 4294901760, %v11070_v43  ;;  %v11074_v7 = vld [vmem:[#allocation49_spill] sm:$0xff]  ;;  %v11080_v52 = vpack.c.bf16 %v11078_v13, %v11079_v35  ;;  %v11086_v43 = vld [vmem:[#allocation54_spill] sm:$0xff] }
 0x1db   : > { %5950 = vmatprep.subr.bf16.mxu1 %v11069_v40  ;;  %v11075_v58 = vand.u32 4294901760, %v11074_v7  ;;  %v11081_v59 = vld [vmem:[#allocation165_spill] sm:$0xff]  ;;  %v11084_v40 = vld [vmem:[#allocation52_spill] sm:$0xff]  ;;  %v11087_v60 = vand.u32 4294901760, %v11086_v43  ;;  %v11096_v35 = vld [vmem:[#allocation170_spill] sm:$0xff] }
 0x1dc   : > { %v5687_v8 = vpack.c.bf16 %v11073_v16, %v11071_v20  ;;  %v11083_v50 = vpack.c.bf16 %v11081_v59, %v11082_v24  ;;  %v11090_v7 = vld [vmem:[#allocation56_spill] sm:$0xff] }
 0x1dd   : > { %5684 = vmatpush1.bf16.msra.mxu0 %v5683_v27  ;;  %v5689_v57 = vpack.c.bf16 %v11077_v22, %v11075_v58  ;;  %v11085_v27 = vand.u32 4294901760, %v11084_v40  ;;  %v11091_v39 = vand.u32 4294901760, %v11090_v7  ;;  %v11092_v22 = vld [vmem:[#allocation168_spill] sm:$0xff] }
 0x1de   : > { %5686 = vmatprep.subr.bf16.mxu0 %v5685_v38  ;;  %5952 = vmatpush1.bf16.msra.mxu1 %v11080_v52  ;;  %v11088_v38 = vld [vmem:[#allocation55_spill] sm:$0xff]  ;;  %v11094_v13 = vpack.c.bf16 %v11092_v22, %v11093_v21  ;;  %v11100_v40 = vld [vmem:[#allocation60_spill] sm:$0xff]  ;;  %v11110_v21 = vld [vmem:[#allocation174_spill] sm:$0xff] }
 0x1df   : > { %5954 = vmatprep.subr.bf16.mxu1 %v11083_v50  ;;  %v5691_v20 = vpack.c.bf16 %v11087_v60, %v11085_v27  ;;  %v11089_v16 = vand.u32 4294901760, %v11088_v38  ;;  %v11095_v52 = vld [vmem:[#allocation171_spill] sm:$0xff]  ;;  %v11098_v50 = vld [vmem:[#allocation58_spill] sm:$0xff]  ;;  %v11101_v43 = vand.u32 4294901760, %v11100_v40  ;;  %v11107_v24 = vld [vmem:[#allocation172_spill] sm:$0xff] }
 0x1e0   : > { %v11097_v59 = vpack.c.bf16 %v11095_v52, %v11096_v35  ;;  %v11104_v38 = vld [vmem:[#allocation62_spill] sm:$0xff] }
 0x1e1   : > { %5688 = vmatpush1.bf16.msra.mxu0 %v5687_v8  ;;  %v5693_v58 = vpack.c.bf16 %v11091_v39, %v11089_v16  ;;  %v11099_v8 = vand.u32 4294901760, %v11098_v50  ;;  %v11105_v7 = vand.u32 4294901760, %v11104_v38  ;;  %v11106_v39 = vld [vmem:[#allocation173_spill] sm:$0xff]  ;;  %v11114_v50 = vld [vmem:[#allocation66_spill] sm:$0xff] }
 0x1e2   : > { %5690 = vmatprep.subr.bf16.mxu0 %v5689_v57  ;;  %5956 = vmatpush1.bf16.msra.mxu1 %v11094_v13  ;;  %v11102_v57 = vld [vmem:[#allocation61_spill] sm:$0xff]  ;;  %v11108_v22 = vpack.c.bf16 %v11106_v39, %v11107_v24  ;;  %v11109_v13 = vld [vmem:[#allocation175_spill] sm:$0xff]  ;;  %v11115_v40 = vand.u32 4294901760, %v11114_v50 }
 0x1e3   : > { %5958 = vmatprep.subr.bf16.mxu1 %v11097_v59  ;;  %v5695_v27 = vpack.c.bf16 %v11101_v43, %v11099_v8  ;;  %v11103_v60 = vand.u32 4294901760, %v11102_v57  ;;  %v11111_v52 = vpack.c.bf16 %v11109_v13, %v11110_v21  ;;  %v11112_v59 = vld [vmem:[#allocation64_spill] sm:$0xff] }
 0x1e4   : > { %v11118_v57 = vld [vmem:[#allocation68_spill] sm:$0xff] }
 0x1e5   : > { %5692 = vmatpush1.bf16.msra.mxu0 %v5691_v20  ;;  %v5697_v16 = vpack.c.bf16 %v11105_v7, %v11103_v60  ;;  %v11113_v20 = vand.u32 4294901760, %v11112_v59  ;;  %v11119_v38 = vand.u32 4294901760, %v11118_v57  ;;  %v11120_v7 = vpack.c.bf16 %v10997_v55, %v10996_v32  ;;  %v11124_v59 = vld [vmem:[#allocation72_spill] sm:$0xff] }
 0x1e6   : > { %5694 = vmatprep.subr.bf16.mxu0 %v5693_v58  ;;  %5960 = vmatpush1.bf16.msra.mxu1 %v11108_v22  ;;  %v11116_v58 = vld [vmem:[#allocation67_spill] sm:$0xff]  ;;  %v11121_v22 = vpack.c.bf16 %v11000_v29, %v10999_v12  ;;  %v11125_v50 = vand.u32 4294901760, %v11124_v59  ;;  %v11132_v55 = vld [vmem:[#allocation184_spill] sm:$0xff] }
 0x1e7   : > { %5962 = vmatprep.subr.bf16.mxu1 %v11111_v52  ;;  %v5699_v8 = vpack.c.bf16 %v11115_v40, %v11113_v20  ;;  %v11117_v43 = vand.u32 4294901760, %v11116_v58  ;;  %v11122_v52 = vld [vmem:[#allocation70_spill] sm:$0xff]  ;;  %v11143_v12 = vld [vmem:[#allocation188_spill] sm:$0xff] }
 0x1e8   : > { %v11128_v58 = vld [vmem:[#allocation74_spill] sm:$0xff] }
 0x1e9   : > { %5696 = vmatpush1.bf16.msra.mxu0 %v5695_v27  ;;  %v5701_v60 = vpack.c.bf16 %v11119_v38, %v11117_v43  ;;  %v11123_v27 = vand.u32 4294901760, %v11122_v52  ;;  %v11129_v57 = vand.u32 4294901760, %v11128_v58  ;;  %v11130_v38 = vpack.c.bf16 %v10937_v51, %v11001_v23  ;;  %v11136_v52 = vld [vmem:[#allocation78_spill] sm:$0xff] }
 0x1ea   : > { %5698 = vmatprep.subr.bf16.mxu0 %v5697_v16  ;;  %5964 = vmatpush1.bf16.msra.mxu1 %v11120_v7  ;;  %v11126_v16 = vld [vmem:[#allocation73_spill] sm:$0xff]  ;;  %v11131_v7 = vld [vmem:[#allocation186_spill] sm:$0xff]  ;;  %v11137_v59 = vand.u32 4294901760, %v11136_v52 }
 0x1eb   : > { %5966 = vmatprep.subr.bf16.mxu1 %v11121_v22  ;;  %v5703_v20 = vpack.c.bf16 %v11125_v50, %v11123_v27  ;;  %v11127_v40 = vand.u32 4294901760, %v11126_v16  ;;  %v11133_v29 = vpack.c.bf16 %v11131_v7, %v11132_v55  ;;  %v11140_v16 = vld [vmem:[#allocation80_spill] sm:$0xff] }
 0x1ec   : > { %v11141_v58 = vand.u32 4294901760, %v11140_v16 }
 0x1ed   : > { %5700 = vmatpush1.bf16.msra.mxu0 %v5699_v8  ;;  %v5705_v43 = vpack.c.bf16 %v11129_v57, %v11127_v40  ;;  %v11134_v8 = vld [vmem:[#allocation76_spill] sm:$0xff]  ;;  %v11142_v57 = vld [vmem:[#allocation189_spill] sm:$0xff] }
 0x1ee   : > { %5702 = vmatprep.subr.bf16.mxu0 %v5701_v60  ;;  %5968 = vmatpush1.bf16.msra.mxu1 %v11130_v38  ;;  %v11135_v22 = vand.u32 4294901760, %v11134_v8  ;;  %v11138_v60 = vld [vmem:[#allocation79_spill] sm:$0xff]  ;;  %v11144_v51 = vpack.c.bf16 %v11142_v57, %v11143_v12  ;;  %v11145_v38 = vld [vmem:[#allocation190_spill] sm:$0xff]  ;;  %v11149_v8 = vld [vmem:[#allocation84_spill] sm:$0xff] }
 0x1ef   : > { %5970 = vmatprep.subr.bf16.mxu1 %v11133_v29  ;;  %v11139_v50 = vand.u32 4294901760, %v11138_v60  ;;  %v11146_v7 = vpack.c.bf16 %v11009_v30, %v11145_v38  ;;  %v11147_v29 = vld [vmem:[#allocation82_spill] sm:$0xff]  ;;  %v11150_v52 = vand.u32 4294901760, %v11149_v8 }
 0x1f0   : > { %v5707_v27 = vpack.c.bf16 %v11137_v59, %v11135_v22  ;;  %v11153_v60 = vld [vmem:[#allocation86_spill] sm:$0xff] }
 0x1f1   : > { %5704 = vmatpush1.bf16.msra.mxu0 %v5703_v20  ;;  %v5709_v40 = vpack.c.bf16 %v11141_v58, %v11139_v50  ;;  %v11148_v20 = vand.u32 4294901760, %v11147_v29  ;;  %v11154_v16 = vand.u32 4294901760, %v11153_v60  ;;  %v11155_v58 = vpack.c.bf16 %v10947_v2, %v11010_v28  ;;  %v11159_v29 = vld [vmem:[#allocation90_spill] sm:$0xff] }
 0x1f2   : > { %5706 = vmatprep.subr.bf16.mxu0 %v5705_v43  ;;  %5972 = vmatpush1.bf16.msra.mxu1 %v11144_v51  ;;  %v11151_v43 = vld [vmem:[#allocation85_spill] sm:$0xff]  ;;  %v11156_v51 = vpack.c.bf16 %v10953_v14, %v11011_v6  ;;  %v11160_v8 = vand.u32 4294901760, %v11159_v29 }
 0x1f3   : > { %5974 = vmatprep.subr.bf16.mxu1 %v11146_v7  ;;  %v5711_v22 = vpack.c.bf16 %v11150_v52, %v11148_v20  ;;  %v11152_v59 = vand.u32 4294901760, %v11151_v43  ;;  %v11157_v7 = vld [vmem:[#allocation88_spill] sm:$0xff] }
 0x1f4   : > { %v11163_v43 = vld [vmem:[#allocation92_spill] sm:$0xff] }
 0x1f5   : > { %5708 = vmatpush1.bf16.msra.mxu0 %v5707_v27  ;;  %v5713_v50 = vpack.c.bf16 %v11154_v16, %v11152_v59  ;;  %v11158_v27 = vand.u32 4294901760, %v11157_v7  ;;  %v11164_v60 = vand.u32 4294901760, %v11163_v43  ;;  %v11165_v16 = vpack.c.bf16 %v11013_v15, %v11012_v3  ;;  %v11169_v7 = vld [vmem:[#allocation96_spill] sm:$0xff] }
 0x1f6   : > { %5710 = vmatprep.subr.bf16.mxu0 %v5709_v40  ;;  %5976 = vmatpush1.bf16.msra.mxu1 %v11155_v58  ;;  %v11161_v40 = vld [vmem:[#allocation91_spill] sm:$0xff]  ;;  %v11166_v58 = vpack.c.bf16 %v8449_v17, %v11015_v36  ;;  %v11170_v29 = vand.u32 4294901760, %v11169_v7 }
 0x1f7   : > { %5978 = vmatprep.subr.bf16.mxu1 %v11156_v51  ;;  %v5715_v20 = vpack.c.bf16 %v11160_v8, %v11158_v27  ;;  %v11162_v52 = vand.u32 4294901760, %v11161_v40  ;;  %v11173_v40 = vld [vmem:[#allocation98_spill] sm:$0xff] }
 0x1f8   : > { %v11174_v43 = vand.u32 4294901760, %v11173_v40 }
 0x1f9   : > { %5712 = vmatpush1.bf16.msra.mxu0 %v5711_v22  ;;  %v5717_v59 = vpack.c.bf16 %v11164_v60, %v11162_v52  ;;  %v11167_v22 = vld [vmem:[#allocation94_spill] sm:$0xff]  ;;  %v11175_v60 = vpack.c.bf16 %v8490_v49, %v8485_v46 }
 0x1fa   : > { %5714 = vmatprep.subr.bf16.mxu0 %v5713_v50  ;;  %5980 = vmatpush1.bf16.msra.mxu1 %v11165_v16  ;;  %v11168_v51 = vand.u32 4294901760, %v11167_v22  ;;  %v11171_v50 = vld [vmem:[#allocation97_spill] sm:$0xff]  ;;  %v11176_v16 = vpack.c.bf16 %v8568_v61, %v8537_v18  ;;  %v11179_v22 = vld [vmem:[#allocation102_spill] sm:$0xff] }
 0x1fb   : > { %5982 = vmatprep.subr.bf16.mxu1 %v11166_v58  ;;  %v11172_v8 = vand.u32 4294901760, %v11171_v50  ;;  %v11180_v7 = vand.u32 4294901760, %v11179_v22  ;;  %v11183_v50 = vld [vmem:[#allocation104_spill] sm:$0xff] }
 0x1fc   : > { %v5719_v27 = vpack.c.bf16 %v11170_v29, %v11168_v51  ;;  %v11184_v40 = vand.u32 4294901760, %v11183_v50 }
 0x1fd   : > { %5716 = vmatpush1.bf16.msra.mxu0 %v5715_v20  ;;  %v5721_v52 = vpack.c.bf16 %v11174_v43, %v11172_v8  ;;  %v11177_v20 = vld [vmem:[#allocation100_spill] sm:$0xff]  ;;  %v11185_v43 = vpack.c.bf16 %v8578_v44, %v8573_v25 }
 0x1fe   : > { %5718 = vmatprep.subr.bf16.mxu0 %v5717_v59  ;;  %5984 = vmatpush1.bf16.msra.mxu1 %v11175_v60  ;;  %v11178_v58 = vand.u32 4294901760, %v11177_v20  ;;  %v11181_v59 = vld [vmem:[#allocation103_spill] sm:$0xff]  ;;  %v11186_v60 = vpack.c.bf16 %v8653_v11, %v8631_v33  ;;  %v11189_v20 = vld [vmem:[#allocation108_spill] sm:$0xff]  ;;  %v11199_v11 = vld [vmem:[#allocation114_spill] sm:$0xff] }
 0x1ff   : > { %5986 = vmatprep.subr.bf16.mxu1 %v11176_v16  ;;  %v11182_v29 = vand.u32 4294901760, %v11181_v59  ;;  %v11190_v22 = vand.u32 4294901760, %v11189_v20  ;;  %v11193_v59 = vld [vmem:[#allocation110_spill] sm:$0xff] }
 0x200   : > { %v5723_v51 = vpack.c.bf16 %v11180_v7, %v11178_v58  ;;  %v11194_v50 = vand.u32 4294901760, %v11193_v59  ;;  %v11206_v59 = vld [vmem:[#allocation128_spill] sm:$0xff] }
 0x201   : > { %5720 = vmatpush1.bf16.msra.mxu0 %v5719_v27  ;;  %v5725_v8 = vpack.c.bf16 %v11184_v40, %v11182_v29  ;;  %v11187_v27 = vld [vmem:[#allocation106_spill] sm:$0xff]  ;;  %v11195_v40 = vpack.c.bf16 %v8735_v5, %v8662_v26 }
 0x202   : > { %5722 = vmatprep.subr.bf16.mxu0 %v5721_v52  ;;  %5988 = vmatpush1.bf16.msra.mxu1 %v11185_v43  ;;  %v11188_v16 = vand.u32 4294901760, %v11187_v27  ;;  %v11191_v52 = vld [vmem:[#allocation109_spill] sm:$0xff]  ;;  %v11196_v43 = vld [vmem:[#allocation126_spill] sm:$0xff]  ;;  %v11200_v27 = vand.u32 4294901760, %v11199_v11 }
 0x203   : > { %5990 = vmatprep.subr.bf16.mxu1 %v11186_v60  ;;  %v11192_v7 = vand.u32 4294901760, %v11191_v52  ;;  %v11197_v60 = vld [vmem:[#allocation112_spill] sm:$0xff] }
 0x204   : > { %v5727_v58 = vpack.c.bf16 %v11190_v22, %v11188_v16  ;;  %v11201_v16 = vld [vmem:[#allocation121_spill] sm:$0xff]  ;;  %v11204_v22 = vld [vmem:[#allocation116_spill] sm:$0xff] }
 0x205   : > { %5724 = vmatpush1.bf16.msra.mxu0 %v5723_v51  ;;  %v5729_v29 = vpack.c.bf16 %v11194_v50, %v11192_v7  ;;  %v11198_v51 = vand.u32 4294901760, %v11197_v60  ;;  %v11205_v52 = vand.u32 4294901760, %v11204_v22  ;;  %v11207_v50 = vld [vmem:[#allocation123_spill] sm:$0xff]  ;;  %v11220_v22 = vld [vmem:[#allocation134_spill] sm:$0xff] }
 0x206   : > { %5726 = vmatprep.subr.bf16.mxu0 %v5725_v8  ;;  %5992 = vmatpush1.bf16.msra.mxu1 %v11195_v40  ;;  %v11202_v8 = vld [vmem:[#allocation115_spill] sm:$0xff]  ;;  %v11208_v40 = vld [vmem:[#allocation129_spill] sm:$0xff] }
 0x207   : > { %5994 = vmatprep.subr.bf16.mxu1 %v11196_v43  ;;  %v5731_v33 = vpack.c.bf16 %v11200_v27, %v11198_v51  ;;  %v11203_v20 = vand.u32 4294901760, %v11202_v8  ;;  %v11211_v43 = vld [vmem:[#allocation125_spill] sm:$0xff]  ;;  %v11214_v27 = vld [vmem:[#allocation131_spill] sm:$0xff]  ;;  %v11216_v8 = vld [vmem:[#allocation132_spill] sm:$0xff] }
 0x208   : > { %v11212_v11 = vand.u32 4294901760, %v11211_v43  ;;  %v11219_v43 = vld [vmem:[#allocation28_spill] sm:$0xff] }
 0x209   : > { %5728 = vmatpush1.bf16.msra.mxu0 %v5727_v58  ;;  %2637 = vmatmul.mubr.f32.vlgmr.msra.gmra.mrb[2].mxu1 %v11201_v16  ;;  %v5733_v7 = vpack.c.bf16 %v11205_v52, %v11203_v20  ;;  %v11209_v58 = vld [vmem:[#allocation122_spill] sm:$0xff]  ;;  %v11215_v16 = vld [vmem:[#allocation24_spill] sm:$0xff]  ;;  %v11217_v20 = vld [vmem:[#allocation133_spill] sm:$0xff] }
 0x20a   : > { %5730 = vmatprep.subr.bf16.mxu0 %v5729_v29  ;;  %5996 = vmatpush1.bf16.msra.mxu1 %v11206_v59  ;;  %v11210_v60 = vand.u32 4294901760, %v11209_v58  ;;  %v11213_v29 = vld [vmem:[#allocation130_spill] sm:$0xff]  ;;  %v11221_v52 = vld [vmem:[#allocation135_spill] sm:$0xff]  ;;  %v11224_v58 = vld [vmem:[#allocation136_spill] sm:$0xff] }
 0x20b   : > { %2774 = vmatprep.mubr.f32.mxu1 %v11207_v50  ;;  %5998 = vmatprep.subr.bf16.mxu1 %v11208_v40  ;;  %v11223_v50 = vld [vmem:[#allocation36_spill] sm:$0xff] }
 0x20c   : > { %v5735_v51 = vpack.c.bf16 %v11212_v11, %v11210_v60  ;;  %v11226_v11 = vld [vmem:[#allocation137_spill] sm:$0xff] }
 0x20d   : > { %5732 = vmatpush1.bf16.msra.mxu0 %v5731_v33  ;;  %v11218_v33 = vld [vmem:[#allocation26_spill] sm:$0xff] }
 0x20e   : > { %5734 = vmatprep.subr.bf16.mxu0 %v5733_v7  ;;  %6000 = vmatpush1.bf16.msra.mxu1 %v11213_v29  ;;  %v11222_v7 = vld [vmem:[#allocation31_spill] sm:$0xff] }
 0x20f   : > { %6002 = vmatprep.subr.bf16.mxu1 %v11214_v27  ;;  %v9112_v60 = vpop.f32.mrb[0].mxu1 }
 0x210   : > { %11225 = vst [vmem:[#allocation195_spill] sm:$0xff] %v9112_v60  ;;  %v11236_v60 = vld [vmem:[#allocation51_spill] sm:$0xff] }
 0x211   : > { %5736 = vmatpush1.bf16.msra.mxu0 %v5735_v51  ;;  %v11227_v51 = vld [vmem:[#allocation39_spill] sm:$0xff] }
 0x212   : > { %5738 = vmatprep.subr.bf16.mxu0 %v11215_v16  ;;  %6004 = vmatpush1.bf16.msra.mxu1 %v11216_v8  ;;  %v9116_v16 = vpop.f32.mrb[1].mxu1 }
 0x213   : > { %6006 = vmatprep.subr.bf16.mxu1 %v11217_v20  ;;  %11228 = vst [vmem:[#allocation197_spill] sm:$0xff] %v9116_v16  ;;  %v11239_v16 = vld [vmem:[#allocation159_spill] sm:$0xff] }
 0x214   : > { %1759 = vmatmul.mubr.f32.vlgmr.msra.gmra.mrb[0].mxu0 %v11024_v34 }
 0x215   : > { %5740 = vmatpush1.bf16.msra.mxu0 %v11218_v33  ;;  %1894 = vmatprep.mubr.f32.mxu0 %v11052_v63  ;;  %v11229_v33 = vld [vmem:[#allocation42_spill] sm:$0xff] }
 0x216   : > { %5742 = vmatprep.subr.bf16.mxu0 %v11219_v43  ;;  %6008 = vmatpush1.bf16.msra.mxu1 %v11220_v22  ;;  %v11230_v43 = vld [vmem:[#allocation142_spill] sm:$0xff]  ;;  %v11231_v22 = vld [vmem:[#allocation143_spill] sm:$0xff] }
 0x217   : > { %6010 = vmatprep.subr.bf16.mxu1 %v11221_v52  ;;  %v11232_v52 = vld [vmem:[#allocation45_spill] sm:$0xff] }
 0x219   : > { %5744 = vmatpush1.bf16.msra.mxu0 %v11222_v7  ;;  %v11233_v7 = vld [vmem:[#allocation47_spill] sm:$0xff] }
 0x21a   : > { %5746 = vmatprep.subr.bf16.mxu0 %v11223_v50  ;;  %6012 = vmatpush1.bf16.msra.mxu1 %v11224_v58  ;;  %v11234_v50 = vld [vmem:[#allocation149_spill] sm:$0xff]  ;;  %v11235_v58 = vld [vmem:[#allocation151_spill] sm:$0xff] }
 0x21b   : > { %6014 = vmatprep.subr.bf16.mxu1 %v11226_v11  ;;  %v11237_v11 = vld [vmem:[#allocation53_spill] sm:$0xff] }
 0x21d   : > { %5748 = vmatpush1.bf16.msra.mxu0 %v11227_v51  ;;  %v11238_v51 = vld [vmem:[#allocation157_spill] sm:$0xff] }
 0x21e   : > { %5750 = vmatprep.subr.bf16.mxu0 %v11229_v33  ;;  %6016 = vmatpush1.bf16.msra.mxu1 %v11230_v43  ;;  %v11240_v33 = vld [vmem:[#allocation57_spill] sm:$0xff]  ;;  %v11241_v43 = vld [vmem:[#allocation59_spill] sm:$0xff] }
 0x21f   : > { %6018 = vmatprep.subr.bf16.mxu1 %v11231_v22  ;;  %v11242_v22 = vld [vmem:[#allocation167_spill] sm:$0xff] }
 0x221   : > { %5752 = vmatpush1.bf16.msra.mxu0 %v11232_v52  ;;  %v11243_v52 = vld [vmem:[#allocation169_spill] sm:$0xff] }
 0x222   : > { %5754 = vmatprep.subr.bf16.mxu0 %v11233_v7  ;;  %6020 = vmatpush1.bf16.msra.mxu1 %v11234_v50  ;;  %v11244_v7 = vld [vmem:[#allocation63_spill] sm:$0xff]  ;;  %v11245_v50 = vld [vmem:[#allocation65_spill] sm:$0xff] }
 0x223   : > { %6022 = vmatprep.subr.bf16.mxu1 %v11235_v58  ;;  %v11246_v58 = vld [vmem:[#allocation177_spill] sm:$0xff] }
 0x225   : > { %5756 = vmatpush1.bf16.msra.mxu0 %v11236_v60  ;;  %v11247_v60 = vld [vmem:[#allocation179_spill] sm:$0xff] }
 0x226   : > { %5758 = vmatprep.subr.bf16.mxu0 %v11237_v11  ;;  %6024 = vmatpush1.bf16.msra.mxu1 %v11238_v51  ;;  %v11248_v11 = vld [vmem:[#allocation69_spill] sm:$0xff]  ;;  %v11249_v51 = vld [vmem:[#allocation71_spill] sm:$0xff] }
 0x227   : > { %6026 = vmatprep.subr.bf16.mxu1 %v11239_v16  ;;  %v11250_v16 = vld [vmem:[#allocation185_spill] sm:$0xff] }
 0x229   : > { %5760 = vmatpush1.bf16.msra.mxu0 %v11240_v33  ;;  %v11251_v33 = vld [vmem:[#allocation187_spill] sm:$0xff] }
 0x22a   : > { %5762 = vmatprep.subr.bf16.mxu0 %v11241_v43  ;;  %6028 = vmatpush1.bf16.msra.mxu1 %v11242_v22  ;;  %v11252_v43 = vld [vmem:[#allocation75_spill] sm:$0xff]  ;;  %v11253_v22 = vld [vmem:[#allocation77_spill] sm:$0xff] }
 0x22b   : > { %6030 = vmatprep.subr.bf16.mxu1 %v11243_v52  ;;  %v11254_v52 = vld [vmem:[#allocation191_spill] sm:$0xff] }
 0x22d   : > { %5764 = vmatpush1.bf16.msra.mxu0 %v11244_v7  ;;  %v11255_v7 = vld [vmem:[#allocation193_spill] sm:$0xff] }
 0x22e   : > { %5766 = vmatprep.subr.bf16.mxu0 %v11245_v50  ;;  %6032 = vmatpush1.bf16.msra.mxu1 %v11246_v58  ;;  %v11256_v50 = vld [vmem:[#allocation81_spill] sm:$0xff]  ;;  %v11257_v58 = vld [vmem:[#allocation83_spill] sm:$0xff] }
 0x22f   : > { %6034 = vmatprep.subr.bf16.mxu1 %v11247_v60  ;;  %v11258_v60 = vld [vmem:[#allocation198_spill] sm:$0xff] }
 0x231   : > { %5768 = vmatpush1.bf16.msra.mxu0 %v11248_v11  ;;  %v11259_v11 = vld [vmem:[#allocation199_spill] sm:$0xff] }
 0x232   : > { %5770 = vmatprep.subr.bf16.mxu0 %v11249_v51  ;;  %6036 = vmatpush1.bf16.msra.mxu1 %v11250_v16  ;;  %v11260_v51 = vld [vmem:[#allocation87_spill] sm:$0xff] }
 0x233   : > { %6038 = vmatprep.subr.bf16.mxu1 %v11251_v33  ;;  %v11261_v33 = vld [vmem:[#allocation200_spill] sm:$0xff] }
 0x235   : > { %5772 = vmatpush1.bf16.msra.mxu0 %v11252_v43  ;;  %v11262_v43 = vld [vmem:[#allocation202_spill] sm:$0xff] }
 0x236   : > { %5774 = vmatprep.subr.bf16.mxu0 %v11253_v22  ;;  %6040 = vmatpush1.bf16.msra.mxu1 %v11254_v52  ;;  %v11263_v22 = vld [vmem:[#allocation203_spill] sm:$0xff] }
 0x237   : > { %6042 = vmatprep.subr.bf16.mxu1 %v11255_v7  ;;  %v11274_v7 = vld [vmem:[#allocation105_spill] sm:$0xff] }
 0x239   : > { %5776 = vmatpush1.bf16.msra.mxu0 %v11256_v50  ;;  %v11264_v50 = vld [vmem:[#allocation206_spill] sm:$0xff] }
 0x23a   : > { %5778 = vmatprep.subr.bf16.mxu0 %v11257_v58  ;;  %6044 = vmatpush1.bf16.msra.mxu1 %v11258_v60  ;;  %v11265_v58 = vand.u32 4294901760, %v10973_v1 }
 0x23b   : > { %6046 = vmatprep.subr.bf16.mxu1 %v11259_v11  ;;  %v11266_v11 = vand.u32 4294901760, %v10974_v4  ;;  %v11275_v4 = vld [vmem:[#allocation107_spill] sm:$0xff] }
 0x23d   : > { %5780 = vmatpush1.bf16.msra.mxu0 %v11260_v51  ;;  %v6057_v60 = vpack.c.bf16 %v11266_v11, %v11265_v58  ;;  %v11268_v51 = vand.u32 4294901760, %v10975_v54  ;;  %v11286_v58 = vand.u32 4294901760, %v8100_v10  ;;  %v11296_v10 = vld [vmem:[#allocation156_spill] sm:$0xff] }
 0x23e   : > { %5782 = vmatprep.subr.bf16.mxu0 %v11016_v62  ;;  %6048 = vmatpush1.bf16.msra.mxu1 %v11261_v33  ;;  %v11267_v62 = vld [vmem:[#allocation147_spill] sm:$0xff] }
 0x23f   : > { %6050 = vmatprep.subr.bf16.mxu1 %v11262_v43 }
 0x241   : > { %5784 = vmatpush1.bf16.msra.mxu0 %v11017_v48  ;;  %v11269_v48 = vand.u32 4294901760, %v10976_v31  ;;  %v11279_v31 = vand.u32 4294901760, %v8056_v9  ;;  %v11289_v9 = vld [vmem:[#allocation117_spill] sm:$0xff] }
 0x242   : > { %5786 = vmatprep.subr.bf16.mxu0 %v11018_v42  ;;  %6052 = vmatpush1.bf16.msra.mxu1 %v11263_v22  ;;  %v11270_v22 = vld [vmem:[#allocation144_spill] sm:$0xff] }
 0x243   : > { %6054 = vmatprep.subr.bf16.mxu1 %v11264_v50  ;;  %v6059_v42 = vpack.c.bf16 %v11269_v48, %v11268_v51  ;;  %v11271_v43 = vand.u32 4294901760, %v11270_v22  ;;  %v11272_v50 = vld [vmem:[#allocation145_spill] sm:$0xff]  ;;  %v11284_v22 = vld [vmem:[#allocation150_spill] sm:$0xff]  ;;  %v11287_v51 = vld [vmem:[#allocation152_spill] sm:$0xff] }
 0x244   : > { %v11273_v33 = vand.u32 4294901760, %v11272_v50  ;;  %v11288_v48 = vand.u32 4294901760, %v11287_v51 }
 0x245   : > { %5788 = vmatpush1.bf16.msra.mxu0 %v11019_v41  ;;  %v11276_v41 = vand.u32 4294901760, %v8040_v56  ;;  %v11285_v56 = vand.u32 4294901760, %v11284_v22 }
 0x246   : > { %5790 = vmatprep.subr.bf16.mxu0 %v11020_v19  ;;  %6056 = vmatpush1.bf16.msra.mxu1 %v11267_v62  ;;  %v6061_v1 = vpack.c.bf16 %v11273_v33, %v11271_v43  ;;  %v11277_v19 = vld [vmem:[#allocation146_spill] sm:$0xff]  ;;  %v11281_v43 = vld [vmem:[#allocation111_spill] sm:$0xff] }
 0x247   : > { %6058 = vmatprep.subr.bf16.mxu1 %v6057_v60  ;;  %v11278_v54 = vand.u32 4294901760, %v11277_v19  ;;  %v11280_v60 = vand.u32 4294901760, %v10849_v53  ;;  %v11290_v53 = vand.u32 4294901760, %v8110_v37  ;;  %v11294_v19 = vld [vmem:[#allocation155_spill] sm:$0xff] }
 0x249   : > { %5792 = vmatpush1.bf16.msra.mxu0 %v11274_v7  ;;  %2778 = vmatmul.mubr.f32.vlgmr.msra.gmra.mrb[2].mxu1 %v11046_v0  ;;  %v6063_v11 = vpack.c.bf16 %v11278_v54, %v11276_v41  ;;  %v6065_v33 = vpack.c.bf16 %v11280_v60, %v11279_v31  ;;  %v11282_v7 = vld [vmem:[#allocation113_spill] sm:$0xff]  ;;  %v11283_v0 = vand.u32 4294901760, %v10982_v47  ;;  %v11292_v47 = vld [vmem:[#allocation154_spill] sm:$0xff]  ;;  %v11295_v54 = vand.u32 4294901760, %v11294_v19  ;;  %v11314_v19 = vld [vmem:[#allocation168_spill] sm:$0xff] }
 0x24a   : > { %5794 = vmatprep.subr.bf16.mxu0 %v11275_v4  ;;  %6060 = vmatpush1.bf16.msra.mxu1 %v6059_v42  ;;  %v6069_v42 = vpack.c.bf16 %v11288_v48, %v11286_v58  ;;  %v11293_v41 = vand.u32 4294901760, %v11292_v47  ;;  %v11297_v31 = vand.u32 4294901760, %v11296_v10  ;;  %v11298_v60 = vld [vmem:[#allocation158_spill] sm:$0xff]  ;;  %v11306_v58 = vld [vmem:[#allocation163_spill] sm:$0xff]  ;;  %v11316_v10 = vand.u32 4294901760, %v11096_v35 }
 0x24b   : > { %3041 = vmatprep.mubr.f32.mxu1 %v11052_v63  ;;  %6062 = vmatprep.subr.bf16.mxu1 %v6061_v1  ;;  %v6067_v50 = vpack.c.bf16 %v11285_v56, %v11283_v0  ;;  %v11291_v1 = vand.u32 4294901760, %v10866_v45  ;;  %v11302_v0 = vld [vmem:[#allocation161_spill] sm:$0xff]  ;;  %v11304_v56 = vld [vmem:[#allocation162_spill] sm:$0xff]  ;;  %v11307_v51 = vand.u32 4294901760, %v11306_v58 }
 0x24c   : > { %v11303_v45 = vand.u32 4294901760, %v11302_v0  ;;  %v11312_v47 = vld [vmem:[#allocation166_spill] sm:$0xff]  ;;  %v11321_v0 = vand.u32 4294901760, %v11110_v21 }
 0x24d   : > { %5796 = vmatpush1.bf16.msra.mxu0 %v11281_v43  ;;  %v6071_v4 = vpack.c.bf16 %v11291_v1, %v11290_v53  ;;  %v11310_v53 = vld [vmem:[#allocation165_spill] sm:$0xff] }
 0x24e   : > { %5798 = vmatprep.subr.bf16.mxu0 %v11282_v7  ;;  %6064 = vmatpush1.bf16.msra.mxu1 %v6063_v11  ;;  %v6073_v11 = vpack.c.bf16 %v11295_v54, %v11293_v41  ;;  %v11300_v7 = vld [vmem:[#allocation160_spill] sm:$0xff]  ;;  %v11311_v1 = vand.u32 4294901760, %v11310_v53  ;;  %v11313_v41 = vand.u32 4294901760, %v11312_v47  ;;  %v11315_v54 = vand.u32 4294901760, %v11314_v19  ;;  %v11331_v53 = vld [vmem:[#allocation183_spill] sm:$0xff] }
 0x24f   : > { %6066 = vmatprep.subr.bf16.mxu1 %v6065_v33  ;;  %v11299_v33 = vand.u32 4294901760, %v11298_v60  ;;  %v11301_v37 = vand.u32 4294901760, %v11300_v7  ;;  %v11320_v7 = vand.u32 4294901760, %v11106_v39  ;;  %v11330_v39 = vand.u32 4294901760, %v11001_v23 }
 0x250   : > { %v11332_v21 = vand.u32 4294901760, %v11331_v53  ;;  %v11337_v19 = vand.u32 4294901760, %v11142_v57  ;;  %v11339_v23 = vand.u32 4294901760, %v11009_v30  ;;  %v11344_v57 = vand.u32 4294901760, %v11012_v3  ;;  %v11378_v53 = vld [vmem:[#allocation199_spill] sm:$0xff] }
 0x251   : > { %5800 = vmatpush1.bf16.msra.mxu0 %v11289_v9  ;;  %v6075_v43 = vpack.c.bf16 %v11299_v33, %v11297_v31  ;;  %v6077_v22 = vpack.c.bf16 %v11303_v45, %v11301_v37  ;;  %v11317_v31 = vld [vmem:[#allocation171_spill] sm:$0xff]  ;;  %v11322_v45 = vand.u32 4294901760, %v11109_v13  ;;  %v11333_v13 = vand.u32 4294901760, %v11132_v55 }
 0x252   : > { %6068 = vmatpush1.bf16.msra.mxu1 %v6067_v50  ;;  %v11305_v50 = vand.u32 4294901760, %v11304_v56  ;;  %v11318_v60 = vand.u32 4294901760, %v11317_v31  ;;  %v11323_v56 = vand.u32 4294901760, %v10996_v32  ;;  %v11340_v31 = vand.u32 4294901760, %v11010_v28 }
 0x253   : > { %6070 = vmatprep.subr.bf16.mxu1 %v6069_v42  ;;  %v11308_v42 = vld [vmem:[#allocation164_spill] sm:$0xff]  ;;  %v11341_v55 = vand.u32 4294901760, %v10947_v2  ;;  %v11346_v30 = vand.u32 4294901760, %v11015_v36  ;;  %v11347_v28 = vand.u32 4294901760, %v8449_v17  ;;  %v11348_v2 = vand.u32 4294901760, %v8485_v46  ;;  %v11354_v17 = vld [vmem:[#allocation153_spill] sm:$0xff] }
 0x254   : > { %1896 = vmatmul.mubr.f32.vlgmr.msra.gmra.mrb[0].mxu0 %v11024_v34  ;;  %v6079_v48 = vpack.c.bf16 %v11307_v51, %v11305_v50  ;;  %v11309_v9 = vand.u32 4294901760, %v11308_v42  ;;  %v6085_v33 = vpack.c.bf16 %v11318_v60, %v11316_v10  ;;  %v11324_v50 = vld [vmem:[#allocation178_spill] sm:$0xff]  ;;  %v11326_v51 = vld [vmem:[#allocation180_spill] sm:$0xff]  ;;  %v11328_v42 = vld [vmem:[#allocation181_spill] sm:$0xff]  ;;  %v11351_v3 = vand.u32 4294901760, %v8568_v61 }
 0x255   : > { %v11325_v35 = vand.u32 4294901760, %v11324_v50  ;;  %v6103_v60 = vpack.c.bf16 %v11341_v55, %v11340_v31  ;;  %v11353_v36 = vand.u32 4294901760, %v8578_v44  ;;  %v11356_v50 = vld [vmem:[#allocation127_spill] sm:$0xff]  ;;  %v11360_v61 = vld [vmem:[#allocation126_spill] sm:$0xff] }
 0x256   : > { %6072 = vmatpush1.bf16.msra.mxu1 %v6071_v4  ;;  %v6081_v4 = vpack.c.bf16 %v11311_v1, %v11309_v9  ;;  %v6095_v1 = vpack.c.bf16 %v11332_v21, %v11330_v39  ;;  %v11357_v46 = vand.u32 4294901760, %v11356_v50  ;;  %v11362_v44 = vld [vmem:[#allocation135_spill] sm:$0xff]  ;;  %v11377_v39 = vld [vmem:[#allocation198_spill] sm:$0xff]  ;;  %v11379_v21 = vld [vmem:[#allocation200_spill] sm:$0xff] }
 0x257   : > { %6074 = vmatprep.subr.bf16.mxu1 %v6073_v11  ;;  %v6083_v11 = vpack.c.bf16 %v11315_v54, %v11313_v41  ;;  %v6091_v58 = vpack.c.bf16 %v11325_v35, %v11323_v56  ;;  %v11336_v41 = vand.u32 4294901760, %v11143_v12  ;;  %v11343_v12 = vand.u32 4294901760, %v10953_v14  ;;  %v9414_v50 = vld [vmem:[%s7285_s27 + $0x30] sm:$0xff] }
 0x258   : > { %v11350_v14 = vand.u32 4294901760, %v8537_v18  ;;  %v11355_v56 = vand.u32 4294901760, %v11354_v17  ;;  %v11359_v18 = vand.u32 4294901760, %v8735_v5  ;;  %v11364_v5 = vld [vmem:[#allocation137_spill] sm:$0xff] }
 0x259   : > { %v6099_v54 = vpack.c.bf16 %v11337_v19, %v11336_v41 }
 0x25a   : > { %6076 = vmatpush1.bf16.msra.mxu1 %v6075_v43  ;;  %v11319_v43 = vand.u32 4294901760, %v11107_v24  ;;  %v11329_v24 = vand.u32 4294901760, %v11328_v42  ;;  %v6117_v35 = vpack.c.bf16 %v11357_v46, %v11355_v56  ;;  %v11374_v42 = vld [vmem:[#allocation179_spill] sm:$0xff] }
 0x25b   : > { %6078 = vmatprep.subr.bf16.mxu1 %v6077_v22  ;;  %v6089_v22 = vpack.c.bf16 %v11322_v45, %v11321_v0  ;;  %v6113_v45 = vpack.c.bf16 %v11351_v3, %v11350_v14  ;;  %v9417_v46 = vld [vmem:[%s7285_s27 + $0x38] sm:$0xff] }
 0x25c   : > { %v6087_v37 = vpack.c.bf16 %v11320_v7, %v11319_v43 }
 0x25e   : > { %6080 = vmatpush1.bf16.msra.mxu1 %v6079_v48  ;;  %v11327_v48 = vand.u32 4294901760, %v11326_v51  ;;  %v11372_v51 = vld [vmem:[#allocation169_spill] sm:$0xff] }
 0x25f   : > { %6082 = vmatprep.subr.bf16.mxu1 %v6081_v4  ;;  %v11334_v4 = vld [vmem:[#allocation186_spill] sm:$0xff] }
 0x260   : > { %v6093_v9 = vpack.c.bf16 %v11329_v24, %v11327_v48  ;;  %v11335_v32 = vand.u32 4294901760, %v11334_v4  ;;  %v11373_v48 = vld [vmem:[#allocation177_spill] sm:$0xff]  ;;  %v11375_v24 = vld [vmem:[#allocation187_spill] sm:$0xff]  ;;  %v11382_v4 = vld [vmem:[#allocation206_spill] sm:$0xff] }
 0x262   : > { %6084 = vmatpush1.bf16.msra.mxu1 %v6083_v11  ;;  %v6097_v47 = vpack.c.bf16 %v11335_v32, %v11333_v13  ;;  %v11338_v11 = vand.u32 4294901760, %v11145_v38  ;;  %v11345_v38 = vand.u32 4294901760, %v11013_v15  ;;  %v11352_v15 = vand.u32 4294901760, %v8573_v25  ;;  %v11361_v25 = vld [vmem:[#allocation134_spill] sm:$0xff]  ;;  %v11381_v13 = vld [vmem:[#allocation203_spill] sm:$0xff]  ;;  %v9335_v32 = vld [vmem:[%s7285_s27 + $0x8] sm:$0xff] }
 0x263   : > { %6086 = vmatprep.subr.bf16.mxu1 %v6085_v33  ;;  %v11342_v33 = vand.u32 4294901760, %v11011_v6  ;;  %v11349_v6 = vand.u32 4294901760, %v8490_v49  ;;  %v11358_v49 = vand.u32 4294901760, %v8662_v26  ;;  %v11363_v26 = vld [vmem:[#allocation136_spill] sm:$0xff]  ;;  %v3237_v41 = vand.u32 4294901760, %v9335_v32 }
 0x264   : > { %v6101_v10 = vpack.c.bf16 %v11339_v23, %v11338_v11  ;;  %v6107_v7 = vpack.c.bf16 %v11345_v38, %v11344_v57  ;;  %v9356_v11 = vld [vmem:[%s7285_s27 + $0x18] sm:$0xff]  ;;  %v9379_v57 = vld [vmem:[%s7285_s27 + $0x20] sm:$0xff]  ;;  %v9382_v38 = vld [vmem:[%s7285_s27 + $0x28] sm:$0xff] }
 0x265   : > { %v6105_v43 = vpack.c.bf16 %v11343_v12, %v11342_v33  ;;  %v6111_v0 = vpack.c.bf16 %v11349_v6, %v11348_v2  ;;  %v3243_v55 = vand.u32 4294901760, %v9356_v11  ;;  %v9389_v2 = vld [vmem:[%s10092_s5] sm:$0xf]  ;;  %v3246_v14 = vand.u32 4294901760, %v9379_v57 }
 0x266   : > { %6088 = vmatpush1.bf16.msra.mxu1 %v6087_v37  ;;  %v6109_v37 = vpack.c.bf16 %v11347_v28, %v11346_v30  ;;  %v3249_v3 = vand.u32 4294901760, %v9382_v38 }
 0x267   : > { %6090 = vmatprep.subr.bf16.mxu1 %v6089_v22  ;;  %v6115_v22 = vpack.c.bf16 %v11353_v36, %v11352_v15  ;;  %v6972_v36 = vmov 0.0|0.0   ;;  %v9406_v17 = vsub.f32 %v9379_v57, %v3246_v14 }
 0x268   : > { %6209 = vmatprep.subr.bf16.mxu0 %v6972_v36  ;;  %v9411_v56 = vsub.f32 %v9382_v38, %v3249_v3 }
 0x26a   : > { %6092 = vmatpush1.bf16.msra.mxu1 %v6091_v58  ;;  %v6119_v58 = vpack.c.bf16 %v11359_v18, %v11358_v49  ;;  %v3252_v18 = vand.u32 4294901760, %v9414_v50 }
 0x26b   : > { %6094 = vmatprep.subr.bf16.mxu1 %v6093_v9  ;;  %v11376_v9 = vld [vmem:[#allocation193_spill] sm:$0xff] }
 0x26e   : > { %6096 = vmatpush1.bf16.msra.mxu1 %v6095_v1  ;;  %v11380_v1 = vld [vmem:[#allocation202_spill] sm:$0xff] }
 0x26f   : > { %6098 = vmatprep.subr.bf16.mxu1 %v6097_v47 }
 0x272   : > { %6100 = vmatpush1.bf16.msra.mxu1 %v6099_v54  ;;  %v9353_v54 = vld [vmem:[%s7285_s27 + $0x10] sm:$0xff] }
 0x273   : > { %6102 = vmatprep.subr.bf16.mxu1 %v6101_v10  ;;  %v3240_v31 = vand.u32 4294901760, %v9353_v54 }
 0x275   : > { %v9371_v12 = vsub.f32 %v9353_v54, %v3240_v31 }
 0x276   : > { %6104 = vmatpush1.bf16.msra.mxu1 %v6103_v60 }
 0x277   : > { %6106 = vmatprep.subr.bf16.mxu1 %v6105_v43  ;;  %v9376_v43 = vsub.f32 %v9356_v11, %v3243_v55 }
 0x27a   : > { %6108 = vmatpush1.bf16.msra.mxu1 %v6107_v7 }
 0x27b   : > { %6110 = vmatprep.subr.bf16.mxu1 %v6109_v37  ;;  %v3341_v37 = vand.u32 4294901760, %v9371_v12 }
 0x27d   : > { %v3342_v15 = vsub.f32 %v9371_v12, %v3341_v37 }
 0x27e   : > { %6112 = vmatpush1.bf16.msra.mxu1 %v6111_v0  ;;  %v3348_v0 = vand.u32 4294901760, %v9376_v43 }
 0x27f   : > { %6114 = vmatprep.subr.bf16.mxu1 %v6113_v45  ;;  %v3343_v49 = vand.u32 4294901760, %v3342_v15  ;;  %v9480_v15 = vld [vmem:[%s7285_s27 + $0x50] sm:$0xff] }
 0x282   : > { %6116 = vmatpush1.bf16.msra.mxu1 %v6115_v22  ;;  %v3349_v22 = vsub.f32 %v9376_v43, %v3348_v0 }
 0x283   : > { %6118 = vmatprep.subr.bf16.mxu1 %v6117_v35 }
 0x286   : > { %6120 = vmatpush1.bf16.msra.mxu1 %v6119_v58  ;;  %v3255_v58 = vand.u32 4294901760, %v9417_v46 }
 0x287   : > { %6122 = vmatprep.subr.bf16.mxu1 %v11360_v61 }
 0x288   : > { %v9555_v38 = vpack.c.bf16 %v3255_v58, %v3252_v18 }
 0x289   : > { %3043 = vmatmul.mubr.f32.vlgmr.msra.gmra.mrb[2].mxu1 %v11024_v34 }
 0x28a   : > { %6124 = vmatpush1.bf16.msra.mxu1 %v11206_v59  ;;  %3178 = vmatprep.mubr.f32.mxu1 %v11052_v63  ;;  %v11365_v59 = vld [vmem:[#allocation142_spill] sm:$0xff]  ;;  %v11366_v63 = vld [vmem:[#allocation143_spill] sm:$0xff] }
 0x28b   : > { %6126 = vmatprep.subr.bf16.mxu1 %v11208_v40  ;;  %v11367_v40 = vld [vmem:[#allocation149_spill] sm:$0xff] }
 0x28e   : > { %6128 = vmatpush1.bf16.msra.mxu1 %v11213_v29  ;;  %v11368_v29 = vld [vmem:[#allocation151_spill] sm:$0xff] }
 0x28f   : > { %6130 = vmatprep.subr.bf16.mxu1 %v11214_v27  ;;  %v11369_v27 = vld [vmem:[#allocation157_spill] sm:$0xff] }
 0x292   : > { %6132 = vmatpush1.bf16.msra.mxu1 %v11216_v8  ;;  %v11370_v8 = vld [vmem:[#allocation159_spill] sm:$0xff] }
 0x293   : > { %6134 = vmatprep.subr.bf16.mxu1 %v11217_v20  ;;  %v11371_v20 = vld [vmem:[#allocation167_spill] sm:$0xff] }
 0x296   : > { %6136 = vmatpush1.bf16.msra.mxu1 %v11361_v25  ;;  %v3350_v25 = vand.u32 4294901760, %v3349_v22  ;;  %v9483_v22 = vld [vmem:[%s7285_s27 + $0x58] sm:$0xff] }
 0x297   : > { %6138 = vmatprep.subr.bf16.mxu1 %v11362_v44  ;;  %v3355_v44 = vand.u32 4294901760, %v9406_v17 }
 0x29a   : > { %6140 = vmatpush1.bf16.msra.mxu1 %v11363_v26  ;;  %v3362_v26 = vand.u32 4294901760, %v9411_v56 }
 0x29b   : > { %6142 = vmatprep.subr.bf16.mxu1 %v11364_v5  ;;  %v9429_v5 = vsub.f32 %v9414_v50, %v3252_v18 }
 0x29e   : > { %6144 = vmatpush1.bf16.msra.mxu1 %v11365_v59  ;;  %v9434_v59 = vsub.f32 %v9417_v46, %v3255_v58 }
 0x29f   : > { %6146 = vmatprep.subr.bf16.mxu1 %v11366_v63  ;;  %v6213_v63 = vpack.c.bf16 %v3350_v25, %v3343_v49 }
 0x2a2   : > { %6148 = vmatpush1.bf16.msra.mxu1 %v11367_v40  ;;  %v3356_v40 = vsub.f32 %v9406_v17, %v3355_v44 }
 0x2a3   : > { %6150 = vmatprep.subr.bf16.mxu1 %v11368_v29  ;;  %v3363_v29 = vsub.f32 %v9411_v56, %v3362_v26 }
 0x2a6   : > { %6152 = vmatpush1.bf16.msra.mxu1 %v11369_v27  ;;  %v9443_v27 = vld [vmem:[%s7285_s27 + $0x40] sm:$0xff] }
 0x2a7   : > { %6154 = vmatprep.subr.bf16.mxu1 %v11370_v8  ;;  %v9446_v8 = vld [vmem:[%s7285_s27 + $0x48] sm:$0xff] }
 0x2aa   : > { %6156 = vmatpush1.bf16.msra.mxu1 %v11371_v20  ;;  %v3369_v20 = vand.u32 4294901760, %v9429_v5 }
 0x2ab   : > { %6158 = vmatprep.subr.bf16.mxu1 %v11372_v51  ;;  %v3376_v51 = vand.u32 4294901760, %v9434_v59 }
 0x2ae   : > { %6160 = vmatpush1.bf16.msra.mxu1 %v11373_v48  ;;  %v3258_v48 = vand.u32 4294901760, %v9443_v27 }
 0x2af   : > { %6162 = vmatprep.subr.bf16.mxu1 %v11374_v42  ;;  %v3261_v42 = vand.u32 4294901760, %v9446_v8 }
 0x2b2   : > { %6164 = vmatpush1.bf16.msra.mxu1 %v11250_v16  ;;  %v10531_v16 = vlaneseq }
 0x2b3   : > { %6166 = vmatprep.subr.bf16.mxu1 %v11375_v24  ;;  %v11383_v24 = vld [vmem:[#allocation195_spill] sm:$0xff] }
 0x2b6   : > { %6168 = vmatpush1.bf16.msra.mxu1 %v11254_v52  ;;  %v9332_v52 = vld [vmem:[%s7285_s27] sm:$0xff] }
 0x2b7   : > { %6170 = vmatprep.subr.bf16.mxu1 %v11376_v9  ;;  %v3234_v47 = vand.u32 4294901760, %v9332_v52 }
 0x2b9   : > { %v9342_v19 = vsub.f32 %v9332_v52, %v3234_v47 }
 0x2ba   : > { %6172 = vmatpush1.bf16.msra.mxu1 %v11377_v39  ;;  %v11384_v39 = vld [vmem:[#allocation197_spill] sm:$0xff] }
 0x2bb   : > { %6174 = vmatprep.subr.bf16.mxu1 %v11378_v53  ;;  %v3327_v23 = vand.u32 4294901760, %v9342_v19 }
 0x2bd   : > { %v3328_v60 = vsub.f32 %v9342_v19, %v3327_v23 }
 0x2be   : > { %6176 = vmatpush1.bf16.msra.mxu1 %v11379_v21  ;;  %v3357_v21 = vand.u32 4294901760, %v3356_v40  ;;  %v9501_v40 = vpack.c.bf16 %v3243_v55, %v3240_v31 }
 0x2bf   : > { %6178 = vmatprep.subr.bf16.mxu1 %v11380_v1  ;;  %v3329_v30 = vand.u32 4294901760, %v3328_v60  ;;  %v3364_v1 = vand.u32 4294901760, %v3363_v29  ;;  %v3377_v60 = vsub.f32 %v9434_v59, %v3376_v51 }
 0x2c2   : > { %6180 = vmatpush1.bf16.msra.mxu1 %v11381_v13 }
 0x2c3   : > { %6182 = vmatprep.subr.bf16.mxu1 %v11382_v4  ;;  %v3370_v4 = vsub.f32 %v9429_v5, %v3369_v20 }
 0x2c5   : > { %v3371_v49 = vand.u32 4294901760, %v3370_v4 }
 0x2c6   : > { %6184 = vmatpush1.bf16.msra.mxu1 %v11267_v62  ;;  %v9350_v62 = vshrl.u32 %v10531_v16, 7 }
 0x2c7   : > { %6185 = vmatprep.subr.bf16.mxu1 %v6972_v36 }
 0x2c8   : > { %v600_v7 = vsub.s32 0, %v9350_v62  ;;  %v604_v6 = vsub.s32 1, %v9350_v62 }
 0x2c9   : > { %3180 = vmatmul.mubr.f32.vlgmr.msra.gmra.mrb[2].mxu1 %v11024_v34  ;;  %v9347_v34 = vsub.f32 %v9335_v32, %v3237_v41  ;;  %v3264_v32 = vand.u32 4294901760, %v9480_v15 }
 0x2ca   : > { %v601_v35 = vrot.slane %v9389_v2, %v600_v7  ;;  %v605_v61 = vrot.slane %v9389_v2, %v604_v6  ;;  %v9469_v7 = vsub.f32 %v9446_v8, %v3261_v42  ;;  %v6216_v6 = vpack.c.bf16 %v3364_v1, %v3357_v21 }
 0x2cb   : > { %v3334_v10 = vand.u32 4294901760, %v9347_v34 }
 0x2cc   : > { %v759_v9 = vadd.f32 %v11383_v24, %v601_v35  ;;  %v761_v53 = vadd.f32 %v11384_v39, %v605_v61  ;;  %v3378_v61 = vand.u32 4294901760, %v3377_v60  ;;  %v3390_v52 = vand.u32 4294901760, %v9469_v7  ;;  %v9515_v39 = vld [vmem:[%s7285_s27 + $0x68] sm:$0xff] }
 0x2cd   : > { %v3335_v33 = vsub.f32 %v9347_v34, %v3334_v10  ;;  %v9509_v24 = vsub.f32 %v9480_v15, %v3264_v32  ;;  %v3273_v21 = vand.u32 4294901760, %v9515_v39  ;;  %v9536_v60 = vpack.c.bf16 %v3249_v3, %v3246_v14 }
 0x2ce   : > { %v3391_v29 = vsub.f32 %v9469_v7, %v3390_v52 }
 0x2cf   : > { %v3336_v28 = vand.u32 4294901760, %v3335_v33  ;;  %v9464_v33 = vsub.f32 %v9443_v27, %v3258_v48  ;;  %v10537_v55 = vand.u32 4294901760, %v9509_v24 }
 0x2d0   : > { %v3392_v31 = vand.u32 4294901760, %v3391_v29 }
 0x2d1   : > { %v6210_v45 = vpack.c.bf16 %v3336_v28, %v3329_v30  ;;  %v3383_v25 = vand.u32 4294901760, %v9464_v33 }
 0x2d3   : > { %6211 = vmatpush3.bf16.msra.mxu0 %v6210_v45  ;;  %v9477_v45 = vpack.c.bf16 %v3237_v41, %v3234_v47  ;;  %v3267_v47 = vand.u32 4294901760, %v9483_v22  ;;  %v6219_v41 = vpack.c.bf16 %v3378_v61, %v3371_v49  ;;  %v3225_v49 = vld [vmem:[%s7285_s27 + $0x78] sm:$0xff] }
 0x2d4   : > { %6212 = vmatprep.subr.bf16.mxu0 %v6972_v36  ;;  %v3279_v3 = vand.u32 4294901760, %v3225_v49 }
 0x2d5   : > { %6187 = vmatpush3.bf16.msra.mxu1 %v9477_v45  ;;  %v9520_v54 = vsub.f32 %v9483_v22, %v3267_v47  ;;  %v6237_v22 = vpack.c.bf16 %v9376_v43, %v9371_v12 }
 0x2d6   : > { %6188 = vmatprep.subr.bf16.mxu1 %v6972_v36  ;;  %v9565_v50 = vsub.f32 %v3225_v49, %v3279_v3 }
 0x2d7   : > { %6214 = vmatpush3.bf16.msra.mxu0 %v6213_v63  ;;  %v3384_v63 = vsub.f32 %v9464_v33, %v3383_v25  ;;  %v10536_v1 = vand.u32 4294901760, %v9520_v54  ;;  %v11386_v12 = vand.u32 4294901760, %v9520_v54 }
 0x2d8   : > { %6215 = vmatprep.subr.bf16.mxu0 %v6972_v36 }
 0x2d9   : > { %6190 = vmatpush3.bf16.msra.mxu1 %v9501_v40  ;;  %v3405_v61 = vsub.f32 %v9520_v54, %v10536_v1 }
 0x2da   : > { %6191 = vmatprep.subr.bf16.mxu1 %v6972_v36 }
 0x2db   : > { %6217 = vmatpush3.bf16.msra.mxu0 %v6216_v6  ;;  %v3224_v6 = vld [vmem:[%s7285_s27 + $0x70] sm:$0xff]  ;;  %v3406_v29 = vand.u32 4294901760, %v3405_v61 }
 0x2dc   : > { %6218 = vmatprep.subr.bf16.mxu0 %v6972_v36  ;;  %v3276_v14 = vand.u32 4294901760, %v3224_v6 }
 0x2dd   : > { %6193 = vmatpush3.bf16.msra.mxu1 %v9536_v60 }
 0x2de   : > { %6194 = vmatprep.subr.bf16.mxu1 %v6972_v36 }
 0x2df   : > { %6220 = vmatpush3.bf16.msra.mxu0 %v6219_v41 }
 0x2e0   : > { %6221 = vmatprep.subr.bf16.mxu0 %v6972_v36 }
 0x2e1   : > { %6196 = vmatpush3.bf16.msra.mxu1 %v9555_v38 }
 0x2e2   : > { %6197 = vmatprep.subr.bf16.mxu1 %v6972_v36 }
 0x327   : > { %v1897_v13 = vpop.f32.mrb[0].mxu0 }
 0x328   : > { %v9471_v30 = vadd.f32 %v1897_v13, %v759_v9  ;;  %v1899_v28 = vpop.f32.mrb[1].mxu0  ;;  %v9512_v9 = vld [vmem:[%s7285_s27 + $0x60] sm:$0xff] }
 0x329   : > { %v9485_v35 = vadd.f32 %v1899_v28, %v761_v53  ;;  %v3385_v53 = vand.u32 4294901760, %v3384_v63  ;;  %v3270_v11 = vand.u32 4294901760, %v9512_v9  ;;  %v3398_v28 = vsub.f32 %v9509_v24, %v10537_v55 }
 0x32a   : > { %v9548_v63 = vsub.f32 %v9515_v39, %v3273_v21 }
 0x32b   : > { %v9530_v13 = vsub.f32 %v9512_v9, %v3270_v11  ;;  %v6222_v4 = vpack.c.bf16 %v3392_v31, %v3385_v53  ;;  %v3399_v57 = vand.u32 4294901760, %v3398_v28  ;;  %v9563_v53 = vsub.f32 %v3224_v6, %v3276_v14 }
 0x32c   : > { %v10534_v39 = vand.u32 4294901760, %v9548_v63  ;;  %v6974_v31 = vmov 0.0   ;;  %v10532_v6 = vand.u32 4294901760, %v9565_v50  ;;  %v9605_v15 = vpack.c.bf16 %v3273_v21, %v3270_v11 }
 0x32d   : > { %v10535_v41 = vand.u32 4294901760, %v9530_v13  ;;  %6223 = vmatpush3.bf16.msra.mxu0 %v6222_v4  ;;  %v6225_v46 = vpack.c.bf16 %v3406_v29, %v3399_v57  ;;  %5064 = vmatprep.mubr.msk.f32.mxu0 %vm6973_vm0, %v6974_v31  ;;  %v9579_v4 = vpack.c.bf16 %v3261_v42, %v3258_v48  ;;  %v10533_v28 = vand.u32 4294901760, %v9563_v53 }
 0x32e   : > { %6224 = vmatprep.subr.bf16.mxu0 %v6972_v36  ;;  %v3419_v58 = vsub.f32 %v9548_v63, %v10534_v39  ;;  %5029 = vmatprep.mubr.msk.f32.mxu1 %vm6973_vm0, %v6974_v31  ;;  %v3433_v27 = vsub.f32 %v9565_v50, %v10532_v6  ;;  %v9596_v57 = vpack.c.bf16 %v3267_v47, %v3264_v32  ;;  %v467_v39 = vld [vmem:[#allocation17] sm:$0xff] }
 0x32f   : > { %v3412_v9 = vsub.f32 %v9530_v13, %v10535_v41  ;;  %v3426_v61 = vsub.f32 %v9563_v53, %v10533_v28  ;;  %6199 = vmatpush3.bf16.msra.mxu1 %v9579_v4  ;;  %v9611_v32 = vpack.c.bf16 %v3279_v3, %v3276_v14  ;;  %v6240_v47 = vpack.c.bf16 %v9411_v56, %v9406_v17 }
 0x330   : > { %v3420_v49 = vand.u32 4294901760, %v3419_v58  ;;  %v3434_v42 = vand.u32 4294901760, %v3433_v27  ;;  %6200 = vmatprep.subr.bf16.mxu1 %v6972_v36  ;;  %v6246_v11 = vpack.c.bf16 %v9469_v7, %v9464_v33  ;;  %v6249_v21 = vpack.c.bf16 %v9520_v54, %v9509_v24 }
 0x331   : > { %v3413_v18 = vand.u32 4294901760, %v3412_v9  ;;  %6226 = vmatpush3.bf16.msra.mxu0 %v6225_v46  ;;  %v3427_v48 = vand.u32 4294901760, %v3426_v61  ;;  %v6234_v9 = vpack.c.bf16 %v9347_v34, %v9342_v19  ;;  %v6243_v46 = vpack.c.bf16 %v9434_v59, %v9429_v5 }
 0x332   : > { %6227 = vmatprep.subr.bf16.mxu0 %v6972_v36  ;;  %v6255_v14 = vpack.c.bf16 %v9565_v50, %v9563_v53  ;;  %v4776_v3 = vmul.f32 -1.442695, %v9485_v35  ;;  %v4775_v58 = vmul.f32 -1.442695, %v9471_v30  ;;  %v612_v27 = vsub.s32 3, %v9350_v62 }
 0x333   : > { %v6228_v8 = vpack.c.bf16 %v3420_v49, %v3413_v18  ;;  %v6231_v29 = vpack.c.bf16 %v3434_v42, %v3427_v48  ;;  %6202 = vmatpush3.bf16.msra.mxu1 %v9596_v57  ;;  %v6252_v18 = vpack.c.bf16 %v9548_v63, %v9530_v13  ;;  %v608_v49 = vsub.s32 2, %v9350_v62 }
 0x334   : > { %6203 = vmatprep.subr.bf16.mxu1 %v6972_v36  ;;  %6638 = vpow2.f32 %v4776_v3  ;;  %v613_v16 = vrot.slane %v9389_v2, %v612_v27  ;;  %v6288_v19 = vpack.c.bf16 %v3362_v26, %v3355_v44  ;;  %v6291_v34 = vpack.c.bf16 %v3376_v51, %v3369_v20  ;;  %v4778_v20 = vld [vmem:[%s454_s1] ss:$0 sm:$0xff] }
 0x335   : > { %6229 = vmatpush3.bf16.msra.mxu0 %v6228_v8  ;;  %6640 = vpow2.f32 %v4775_v58  ;;  %v609_v42 = vrot.slane %v9389_v2, %v608_v49  ;;  %v11389_v56 = vand.u32 4294901760, %v9563_v53  ;;  %v11390_v44 = vand.u32 4294901760, %v9565_v50  ;;  %v3911_v53 = vld [vmem:[#allocation9] sm:$0xff] (!%p4779_p11)  ;;  %v3912_v50 = vld [vmem:[#allocation9 + $0x8] sm:$0xff] (!%p4779_p11) }
 0x336   : > { %6230 = vmatprep.subr.bf16.mxu0 %v6972_v36 }
 0x337   : > { %6205 = vmatpush3.bf16.msra.mxu1 %v9605_v15  ;;  %v6303_v26 = vpack.c.bf16 %v11390_v44, %v11389_v56 }
 0x338   : > { %6206 = vmatprep.subr.bf16.mxu1 %v6972_v36 }
 0x339   : > { %6232 = vmatpush3.bf16.msra.mxu0 %v6231_v29 }
 0x33a   : > { %6233 = vmatprep.subr.bf16.mxu0 %v6972_v36 }
 0x33b   : > { %6208 = vmatpush3.bf16.msra.mxu1 %v9611_v32 }
 0x33e   : > { %v6639_v61 = vpop.eup %6638 }
 0x33f   : > { %v6641_v8 = vpop.eup %6640  ;;  %v3195_v48 = vadd.f32 1.0, %v6639_v61 }
 0x340   : > { %v3189_v29 = vadd.f32 1.0, %v6641_v8 }
 0x341   : > { %6642 = vrcp.f32 %v3195_v48 }
 0x342   : > { %6644 = vrcp.f32 %v3189_v29 }
 0x34b   : > { %v6643_v58 = vpop.eup %6642 }
 0x34c   : > { %v6645_v41 = vpop.eup %6644  ;;  %v3205_v1 = vmul.f32 %v6643_v58, %v467_v39  ;;  %v6282_v39 = vpack.c.bf16 %v3334_v10, %v3327_v23  ;;  %v6294_v23 = vpack.c.bf16 %v3390_v52, %v3383_v25  ;;  %v11385_v10 = vand.u32 4294901760, %v9509_v24  ;;  %v3920_v58 = vld [vmem:[#allocation9 + $0x48] sm:$0xff] (!%p4779_p11) }
 0x34e   : > { %v6297_v43 = vpack.c.bf16 %v11386_v12, %v11385_v10 }
 0x39c   : > { %v3181_v6 = vpop.f32.mrb[2].mxu1 }
 0x39d   : > { %v6477_v28 = vadd.f32 %v3181_v6, %v609_v42  ;;  %v3183_v35 = vpop.f32.mrb[3].mxu1  ;;  %v3919_v42 = vld [vmem:[#allocation9 + $0x40] sm:$0xff] (!%p4779_p11) }
 0x39e   : > { %v6478_v30 = vadd.f32 %v3183_v35, %v613_v16 }
 0x39f   : > { %6646 = vtanh.f32 %v6477_v28  ;;  %v6285_v28 = vpack.c.bf16 %v3348_v0, %v3341_v37  ;;  %v11387_v37 = vand.u32 4294901760, %v9530_v13  ;;  %v11388_v0 = vand.u32 4294901760, %v9548_v63 }
 0x3a0   : > { %v4777_v3 = vmul.f32 -1.442695, %v6478_v30 }
 0x3a1   : > { %v6300_v17 = vpack.c.bf16 %v11388_v0, %v11387_v37 }
 0x3a2   : > { %6648 = vpow2.f32 %v4777_v3 }
 0x3a9   : > { %v6647_v62 = vpop.eup %6646 }
 0x3aa   : > { %v3206_v61 = vmul.f32 %v6647_v62, %v6645_v41  ;;  %v3921_v62 = vld [vmem:[#allocation9 + $0x50] sm:$0xff] (!%p4779_p11) }
 0x3ac   : > { %v6649_v55 = vpop.eup %6648  ;;  %v3207_v49 = vadd.f32 %v3206_v61, %v3205_v1 }
 0x3ad   : > { %v3202_v8 = vadd.f32 1.0, %v6649_v55 }
 0x3ae   : > { %6650 = vtanh.f32 %v3207_v49  ;;  %3879 = vst [vmem:[#allocation17] sm:$0xff] %v3207_v49 }
 0x3af   : > { %6652 = vrcp.f32 %v3202_v8 }
 0x3b8   : > { %v6651_v2 = vpop.eup %6650 }
 0x3b9   : > { %v6653_v6 = vpop.eup %6652 }
 0x3ba   : > { %v3209_v27 = vmul.f32 %v6653_v6, %v6651_v2  ;;  %v3922_v2 = vld [vmem:[#allocation9 + $0x58] sm:$0xff] (!%p4779_p11) }
 0x3bc   : > { %v9632_v48 = vand.u32 4294901760, %v3209_v27  ;;  %3878 = vst [vmem:[#allocation15] sm:$0xff] %v3209_v27  ;;  %3880 = vst [vmem:[#allocation2 + $0x8] sm:$0xff] %v3209_v27 }
 0x3be   : > { %5065 = vmatmul.mubr.f32.vlgmr.msra.gmra.mrb[2].mxu0 %v9632_v48  ;;  %v3315_v16 = vsub.f32 %v3209_v27, %v9632_v48 }
 0x3bf   : > { %6235 = vmatpush3.bf16.msra.mxu0 %v6234_v9  ;;  %5099 = vmatprep.mubr.msk.f32.mxu0 %vm6973_vm0, %v6974_v31  ;;  %v3931_v9 = vand.u32 (!%p4779_p11), 4294901760, %v3912_v50 }
 0x3c0   : > { %6236 = vmatprep.subr.bf16.mxu0 %v6972_v36  ;;  %v3316_v55 = vand.u32 4294901760, %v3315_v16 }
 0x3c1   : > { %v9749_v30 = vsub.f32 (!%p4779_p11), %v3912_v50, %v3931_v9 }
 0x3c2   : > { %v3317_v1 = vsub.f32 %v3315_v16, %v3316_v55 }
 0x3c3   : > { %6238 = vmatpush3.bf16.msra.mxu0 %v6237_v22 }
 0x3c4   : > { %6239 = vmatprep.subr.bf16.mxu0 %v6972_v36  ;;  %v3318_v41 = vand.u32 4294901760, %v3317_v1  ;;  %v3958_v1 = vand.u32 (!%p4779_p11), 4294901760, %v3921_v62 }
 0x3c6   : > { %5030 = vmatmul.mubr.f32.vlgmr.msra.gmra.mrb[4].mxu1 %v3318_v41 }
 0x3c7   : > { %6241 = vmatpush3.bf16.msra.mxu0 %v6240_v47  ;;  %v3916_v47 = vld [vmem:[#allocation9 + $0x28] sm:$0xff] (!%p4779_p11) }
 0x3c8   : > { %6242 = vmatprep.subr.bf16.mxu0 %v6972_v36 }
 0x3cb   : > { %6244 = vmatpush3.bf16.msra.mxu0 %v6243_v46 }
 0x3cc   : > { %6245 = vmatprep.subr.bf16.mxu0 %v6972_v36 }
 0x3cf   : > { %6247 = vmatpush3.bf16.msra.mxu0 %v6246_v11 }
 0x3d0   : > { %6248 = vmatprep.subr.bf16.mxu0 %v6972_v36 }
 0x3d3   : > { %6250 = vmatpush3.bf16.msra.mxu0 %v6249_v21  ;;  %v3943_v21 = vand.u32 (!%p4779_p11), 4294901760, %v3916_v47 }
 0x3d4   : > { %6251 = vmatprep.subr.bf16.mxu0 %v6972_v36 }
 0x3d5   : > { %v9761_v6 = vsub.f32 (!%p4779_p11), %v3916_v47, %v3943_v21 }
 0x3d7   : > { %6253 = vmatpush3.bf16.msra.mxu0 %v6252_v18  ;;  %v3917_v18 = vld [vmem:[#allocation9 + $0x30] sm:$0xff] (!%p4779_p11) }
 0x3d8   : > { %6254 = vmatprep.subr.bf16.mxu0 %v6972_v36  ;;  %v3946_v27 = vand.u32 (!%p4779_p11), 4294901760, %v3917_v18 }
 0x3da   : > { %v9765_v41 = vsub.f32 (!%p4779_p11), %v3917_v18, %v3946_v27 }
 0x3db   : > { %6256 = vmatpush3.bf16.msra.mxu0 %v6255_v14  ;;  %v3918_v14 = vld [vmem:[#allocation9 + $0x38] sm:$0xff] (!%p4779_p11) }
 0x3dc   : > { %6257 = vmatprep.subr.bf16.mxu0 %v6972_v36 }
 0x3de   : > { %5100 = vmatmul.mubr.f32.vlgmr.msra.gmra.mrb[2].mxu0 %v3315_v16  ;;  %v3952_v16 = vand.u32 (!%p4779_p11), 4294901760, %v3919_v42 }
 0x3df   : > { %6259 = vmatpush3.bf16.msra.mxu0 %v9477_v45  ;;  %5134 = vmatprep.mubr.msk.f32.mxu0 %vm6973_vm0, %v6974_v31 }
 0x3e0   : > { %6260 = vmatprep.subr.bf16.mxu0 %v6972_v36 }
 0x3e3   : > { %6262 = vmatpush3.bf16.msra.mxu0 %v9501_v40 }
 0x3e4   : > { %6263 = vmatprep.subr.bf16.mxu0 %v6972_v36 }
 0x3e7   : > { %6265 = vmatpush3.bf16.msra.mxu0 %v9536_v60 }
 0x3e8   : > { %6266 = vmatprep.subr.bf16.mxu0 %v6972_v36 }
 0x3eb   : > { %6268 = vmatpush3.bf16.msra.mxu0 %v9555_v38 }
 0x3ec   : > { %6269 = vmatprep.subr.bf16.mxu0 %v6972_v36 }
 0x3ef   : > { %6271 = vmatpush3.bf16.msra.mxu0 %v9579_v4 }
 0x3f0   : > { %6272 = vmatprep.subr.bf16.mxu0 %v6972_v36 }
 0x3f3   : > { %6274 = vmatpush3.bf16.msra.mxu0 %v9596_v57 }
 0x3f4   : > { %6275 = vmatprep.subr.bf16.mxu0 %v6972_v36 }
 0x3f7   : > { %6277 = vmatpush3.bf16.msra.mxu0 %v9605_v15 }
 0x3f8   : > { %6278 = vmatprep.subr.bf16.mxu0 %v6972_v36 }
 0x3fb   : > { %6280 = vmatpush3.bf16.msra.mxu0 %v9611_v32 }
 0x3fc   : > { %6281 = vmatprep.subr.bf16.mxu0 %v6972_v36 }
 0x3fe   : > { %5135 = vmatmul.mubr.f32.vlgmr.msra.gmra.mrb[2].mxu0 %v3316_v55  ;;  %v3955_v55 = vand.u32 (!%p4779_p11), 4294901760, %v3920_v58 }
 0x3ff   : > { %6283 = vmatpush3.bf16.msra.mxu0 %v6282_v39  ;;  %5169 = vmatprep.mubr.msk.f32.mxu0 %vm6973_vm0, %v6974_v31 }
 0x400   : > { %6284 = vmatprep.subr.bf16.mxu0 %v6972_v36  ;;  %v9791_v37 = vpack.c.bf16 (!%p4779_p11), %v3955_v55, %v3952_v16 }
 0x403   : > { %6286 = vmatpush3.bf16.msra.mxu0 %v6285_v28  ;;  %v9769_v28 = vsub.f32 (!%p4779_p11), %v3919_v42, %v3952_v16 }
 0x404   : > { %6287 = vmatprep.subr.bf16.mxu0 %v6972_v36 }
 0x407   : > { %6289 = vmatpush3.bf16.msra.mxu0 %v6288_v19  ;;  %v3961_v19 = vand.u32 (!%p4779_p11), 4294901760, %v3922_v2 }
 0x408   : > { %6290 = vmatprep.subr.bf16.mxu0 %v6972_v36 }
 0x409   : > { %v9779_v12 = vsub.f32 (!%p4779_p11), %v3922_v2, %v3961_v19  ;;  %v9797_v0 = vpack.c.bf16 (!%p4779_p11), %v3961_v19, %v3958_v1 }
 0x40b   : > { %6292 = vmatpush3.bf16.msra.mxu0 %v6291_v34  ;;  %v9771_v34 = vsub.f32 (!%p4779_p11), %v3920_v58, %v3955_v55  ;;  %v4056_v58 = vand.u32 (!%p4779_p11), 4294901760, %v9761_v6 }
 0x40c   : > { %6293 = vmatprep.subr.bf16.mxu0 %v6972_v36 }
 0x40f   : > { %6295 = vmatpush3.bf16.msra.mxu0 %v6294_v23  ;;  %v9773_v23 = vsub.f32 (!%p4779_p11), %v3921_v62, %v3958_v1  ;;  %v4063_v1 = vand.u32 (!%p4779_p11), 4294901760, %v9765_v41 }
 0x410   : > { %6296 = vmatprep.subr.bf16.mxu0 %v6972_v36 }
 0x413   : > { %6298 = vmatpush3.bf16.msra.mxu0 %v6297_v43 }
 0x414   : > { %6299 = vmatprep.subr.bf16.mxu0 %v6972_v36 }
 0x417   : > { %6301 = vmatpush3.bf16.msra.mxu0 %v6300_v17 }
 0x418   : > { %6302 = vmatprep.subr.bf16.mxu0 %v6972_v36 }
 0x41b   : > { %6304 = vmatpush3.bf16.msra.mxu0 %v6303_v26 }
 0x41c   : > { %6305 = vmatprep.subr.bf16.mxu0 %v6972_v36 }
 0x41e   : > { %5170 = vmatmul.mubr.f32.vlgmr.msra.gmra.mrb[2].mxu0 %v9632_v48 }
 0x41f   : > { %6307 = vmatpush3.bf16.msra.mxu0 %v9477_v45  ;;  %5204 = vmatprep.mubr.msk.f32.mxu0 %vm6973_vm0, %v6974_v31  ;;  %v3913_v31 = vld [vmem:[#allocation9 + $0x10] sm:$0xff] (!%p4779_p11) }
 0x420   : > { %6308 = vmatprep.subr.bf16.mxu0 %v6972_v36  ;;  %v3934_v22 = vand.u32 (!%p4779_p11), 4294901760, %v3913_v31 }
 0x422   : > { %v9751_v3 = vsub.f32 (!%p4779_p11), %v3913_v31, %v3934_v22 }
 0x423   : > { %6310 = vmatpush3.bf16.msra.mxu0 %v9501_v40  ;;  %v11391_v40 = vlaneseq (!%p4779_p11) }
 0x424   : > { %6311 = vmatprep.subr.bf16.mxu0 %v6972_v36 }
 0x425   : > { %v9733_v24 = vand.u32 (!%p4779_p11), 127, %v11391_v40 }
 0x427   : > { %6313 = vmatpush3.bf16.msra.mxu0 %v9536_v60  ;;  %vm3888_vm1 = vcmp.lt.s32.totalorder (!%p4779_p11), %v9733_v24, 4 }
 0x428   : > { %6314 = vmatprep.subr.bf16.mxu0 %v6972_v36 }
 0x42b   : > { %6316 = vmatpush3.bf16.msra.mxu0 %v9555_v38 }
 0x42c   : > { %6317 = vmatprep.subr.bf16.mxu0 %v6972_v36 }
 0x42f   : > { %6319 = vmatpush3.bf16.msra.mxu0 %v9579_v4  ;;  %v6975_v4 = vmov (!%p4779_p11), 0.0|0.0  }
 0x430   : > { %6320 = vmatprep.subr.bf16.mxu0 %v6972_v36  ;;  %6329 = vmatprep.subr.bf16.mxu1 (!%p4779_p11), %v6975_v4 }
 0x433   : > { %6322 = vmatpush3.bf16.msra.mxu0 %v9596_v57  ;;  %v3928_v57 = vand.u32 (!%p4779_p11), 4294901760, %v3911_v53 }
 0x434   : > { %6323 = vmatprep.subr.bf16.mxu0 %v6972_v36 }
 0x435   : > { %v9745_v29 = vpack.c.bf16 (!%p4779_p11), %v3931_v9, %v3928_v57  ;;  %v9747_v35 = vsub.f32 (!%p4779_p11), %v3911_v53, %v3928_v57  ;;  %v6977_v53 = vmov (!%p4779_p11), 0.0  }
 0x436   : > { %5239 = vmatprep.mubr.msk.f32.mxu1 (!%p4779_p11), %vm6976_vm4, %v6977_v53 }
 0x437   : > { %6325 = vmatpush3.bf16.msra.mxu0 %v9605_v15  ;;  %v3914_v15 = vld [vmem:[#allocation9 + $0x18] sm:$0xff] (!%p4779_p11)  ;;  %6331 = vmatpush3.bf16.msra.mxu1 (!%p4779_p11), %v9745_v29 }
 0x438   : > { %6326 = vmatprep.subr.bf16.mxu0 %v6972_v36  ;;  %v3937_v46 = vand.u32 (!%p4779_p11), 4294901760, %v3914_v15  ;;  %6332 = vmatprep.subr.bf16.mxu1 (!%p4779_p11), %v6975_v4 }
 0x43a   : > { %v9753_v61 = vpack.c.bf16 (!%p4779_p11), %v3937_v46, %v3934_v22  ;;  %v9755_v49 = vsub.f32 (!%p4779_p11), %v3914_v15, %v3937_v46  ;;  %v4035_v22 = vand.u32 (!%p4779_p11), 4294901760, %v9751_v3 }
 0x43b   : > { %6328 = vmatpush3.bf16.msra.mxu0 %v9611_v32  ;;  %v3915_v32 = vld [vmem:[#allocation9 + $0x20] sm:$0xff] (!%p4779_p11) }
 0x43c   : > { %6401 = vmatprep.subr.bf16.mxu0 (!%p4779_p11), %v6975_v4  ;;  %v3940_v11 = vand.u32 (!%p4779_p11), 4294901760, %v3915_v32  ;;  %6334 = vmatpush3.bf16.msra.mxu1 (!%p4779_p11), %v9753_v61 }
 0x43d   : > { %6335 = vmatprep.subr.bf16.mxu1 (!%p4779_p11), %v6975_v4 }
 0x43e   : > { %5205 = vmatmul.mubr.f32.vlgmr.msra.gmra.mrb[2].mxu0 %v9632_v48  ;;  %v9757_v8 = vsub.f32 (!%p4779_p11), %v3915_v32, %v3940_v11  ;;  %v3949_v48 = vand.u32 (!%p4779_p11), 4294901760, %v3918_v14  ;;  %v9777_v10 = vpack.c.bf16 (!%p4779_p11), %v3943_v21, %v3940_v11  ;;  %v4042_v32 = vand.u32 (!%p4779_p11), 4294901760, %v9755_v49 }
 0x43f   : > { %6403 = vmatpush3.bf16.msra.mxu0 (!%p4779_p11), %v9745_v29  ;;  %5344 = vmatprep.mubr.msk.f32.mxu0 (!%p4779_p11), %vm6976_vm4, %v6977_v53  ;;  %v4036_v11 = vsub.f32 (!%p4779_p11), %v9751_v3, %v4035_v22 }
 0x440   : > { %6404 = vmatprep.subr.bf16.mxu0 (!%p4779_p11), %v6975_v4  ;;  %v9767_v39 = vsub.f32 (!%p4779_p11), %v3918_v14, %v3949_v48  ;;  %6337 = vmatpush3.bf16.msra.mxu1 (!%p4779_p11), %v9777_v10  ;;  %v9785_v43 = vpack.c.bf16 (!%p4779_p11), %v3949_v48, %v3946_v27  ;;  %v9844_v46 = vpack.c.bf16 (!%p4779_p11), %v4042_v32, %v4035_v22  ;;  %v4049_v42 = vand.u32 (!%p4779_p11), 4294901760, %v9757_v8 }
 0x441   : > { %6338 = vmatprep.subr.bf16.mxu1 (!%p4779_p11), %v6975_v4  ;;  %v4043_v21 = vsub.f32 (!%p4779_p11), %v9755_v49, %v4042_v32  ;;  %v4037_v18 = vand.u32 (!%p4779_p11), 4294901760, %v4036_v11  ;;  %v4057_v48 = vsub.f32 (!%p4779_p11), %v9761_v6, %v4056_v58 }
 0x442   : > { %v9852_v2 = vpack.c.bf16 (!%p4779_p11), %v4056_v58, %v4049_v42  ;;  %v4050_v27 = vsub.f32 (!%p4779_p11), %v9757_v8, %v4049_v42  ;;  %v4070_v19 = vand.u32 (!%p4779_p11), 4294901760, %v9767_v39 }
 0x443   : > { %6406 = vmatpush3.bf16.msra.mxu0 (!%p4779_p11), %v9753_v61  ;;  %v4044_v14 = vand.u32 (!%p4779_p11), 4294901760, %v4043_v21  ;;  %v4058_v55 = vand.u32 (!%p4779_p11), 4294901760, %v4057_v48 }
 0x444   : > { %6407 = vmatprep.subr.bf16.mxu0 (!%p4779_p11), %v6975_v4  ;;  %6340 = vmatpush3.bf16.msra.mxu1 (!%p4779_p11), %v9785_v43  ;;  %v4051_v16 = vand.u32 (!%p4779_p11), 4294901760, %v4050_v27 }
 0x445   : > { %6341 = vmatprep.subr.bf16.mxu1 (!%p4779_p11), %v6975_v4  ;;  %v9850_v62 = vpack.c.bf16 (!%p4779_p11), %v4044_v14, %v4037_v18 }
 0x447   : > { %6409 = vmatpush3.bf16.msra.mxu0 (!%p4779_p11), %v9777_v10 }
 0x448   : > { %6410 = vmatprep.subr.bf16.mxu0 (!%p4779_p11), %v6975_v4  ;;  %6343 = vmatpush3.bf16.msra.mxu1 (!%p4779_p11), %v9791_v37 }
 0x449   : > { %6344 = vmatprep.subr.bf16.mxu1 (!%p4779_p11), %v6975_v4 }
 0x44b   : > { %6412 = vmatpush3.bf16.msra.mxu0 (!%p4779_p11), %v9785_v43 }
 0x44c   : > { %6413 = vmatprep.subr.bf16.mxu0 (!%p4779_p11), %v6975_v4  ;;  %6346 = vmatpush3.bf16.msra.mxu1 (!%p4779_p11), %v9797_v0 }
 0x44d   : > { %6347 = vmatprep.subr.bf16.mxu1 (!%p4779_p11), %v6975_v4 }
 0x44f   : > { %6415 = vmatpush3.bf16.msra.mxu0 (!%p4779_p11), %v9791_v37 }
 0x450   : > { %6416 = vmatprep.subr.bf16.mxu0 (!%p4779_p11), %v6975_v4 }
 0x453   : > { %6418 = vmatpush3.bf16.msra.mxu0 (!%p4779_p11), %v9797_v0 }
 0x454   : > { %6419 = vmatprep.subr.bf16.mxu0 (!%p4779_p11), %v6975_v4 }
 0x499   : > { %v3320_v5 = vpop.f32.mrb[4].mxu1 }
 0x49a   : > { %v5031_v59 = vpop.f32.mrb[5].mxu1  ;;  %v3321_v51 = vadd.f32 %v4778_v20, %v3320_v5  ;;  %v3923_v5 = vld [vmem:[#allocation9 + $0x60] sm:$0xff] (!%p4779_p11) }
 0x49b   : > { %v3924_v59 = vld [vmem:[#allocation9 + $0x68] sm:$0xff] (!%p4779_p11)  ;;  %v3964_v20 = vand.u32 (!%p4779_p11), 4294901760, %v3923_v5 }
 0x49d   : > { %v9818_v40 = vsub.f32 (!%p4779_p11), %v3923_v5, %v3964_v20  ;;  %v4071_v5 = vsub.f32 (!%p4779_p11), %v9767_v39, %v4070_v19 }
 0x49f   : > { %v4105_v14 = vand.u32 (!%p4779_p11), 4294901760, %v9818_v40 }
 0x4a1   : > { %v4106_v48 = vsub.f32 (!%p4779_p11), %v9818_v40, %v4105_v14 }
 0x511   : > { %v3870_v33 = vpop.f32.mrb[2].mxu0 }
 0x512   : > { %v6480_v7 = vadd.f32 %v3870_v33, %v3321_v51  ;;  %v5206_v45 = vpop.f32.mrb[3].mxu0  ;;  %v3967_v51 = vand.u32 (!%p4779_p11), 4294901760, %v3924_v59 }
 0x513   : > { %v3926_v45 = vld [vmem:[#allocation9 + $0x78] sm:$0xff] (!%p4779_p11) }
 0x514   : > { %v3874_v25 = vmul.f32 0.2, %v6480_v7  ;;  %v9810_v33 = vpack.c.bf16 (!%p4779_p11), %v3967_v51, %v3964_v20  ;;  %v3925_v7 = vld [vmem:[#allocation9 + $0x70] sm:$0xff] (!%p4779_p11)  ;;  %v4072_v20 = vand.u32 (!%p4779_p11), 4294901760, %v4071_v5 }
 0x516   : > { %6654 = vtanh.f32 %v3874_v25  ;;  %6421 = vmatpush3.bf16.msra.mxu0 (!%p4779_p11), %v9810_v33  ;;  %6349 = vmatpush3.bf16.msra.mxu1 (!%p4779_p11), %v9810_v33  ;;  %v3970_v25 = vand.u32 (!%p4779_p11), 4294901760, %v3925_v7 }
 0x517   : > { %6422 = vmatprep.subr.bf16.mxu0 (!%p4779_p11), %v6975_v4  ;;  %6350 = vmatprep.subr.bf16.mxu1 (!%p4779_p11), %v6975_v4 }
 0x51d   : > { %3885 = sbr.rel (%p4779_p11) target bundleno = 2043 (0x7fb), region = 84 }
 0x520   : > { %v6655_v52 = vpop.eup %6654 }
 0x521   : > { %v3876_v36 = vmul.f32 2.5, %v6655_v52  ;;  %v3973_v52 = vand.u32 (!%p4779_p11), 4294901760, %v3926_v45 }
 0x523   : > { %3877 = vst [vmem:[%s7300_s11] sm:$0xff] %v3876_v36  ;;  %v3889_v54 = vsel (!%p4779_p11), %vm3888_vm1, %v3876_v36, -1e+30  ;;  %v9816_v36 = vpack.c.bf16 (!%p4779_p11), %v3973_v52, %v3970_v25 }
 0x524   : > { %3890 = vmax.xlane.f32.xlu0 %v3889_v54 }
 0x525   : > { %6424 = vmatpush3.bf16.msra.mxu0 %v9816_v36  ;;  %6352 = vmatpush3.bf16.msra.mxu1 %v9816_v36 }
 0x526   : > { %6425 = vmatprep.subr.bf16.mxu0 %v6975_v4  ;;  %6353 = vmatprep.subr.bf16.mxu1 %v6975_v4 }
 0x5b1   : > { %v3891_v13 = vpop.xlane.xlu0 %3890 }
 0x5b2   : > { %vm3892_vm2 = vcmp.eq.f32.partialorder %v3889_v54, %v3891_v13  ;;  %v9820_v54 = vsub.f32 %v3924_v59, %v3967_v51  ;;  %v9822_v13 = vsub.f32 %v3925_v7, %v3970_v25  ;;  %v4077_v51 = vand.u32 4294901760, %v9769_v28 }
 0x5b3   : > { %v9737_v60 = vsel %vm3892_vm2, %v9733_v24, 128  ;;  %v4084_v7 = vand.u32 4294901760, %v9771_v34 }
 0x5b4   : > { %v3895_v63 = vshra.s32 %v9737_v60, 16  ;;  %v3894_v17 = vand.u32 65535, %v9737_v60  ;;  %v9824_v60 = vsub.f32 %v3926_v45, %v3973_v52  ;;  %v4078_v52 = vsub.f32 %v9769_v28, %v4077_v51 }
 0x5b5   : > { %v9868_v25 = vpack.c.bf16 %v4084_v7, %v4077_v51  ;;  %v4112_v42 = vand.u32 4294901760, %v9820_v54 }
 0x5b6   : > { %v9740_v38 = vcvt.s32.f32 %v3895_v63  ;;  %v3896_v44 = vcvt.s32.f32 %v3894_v17  ;;  %v4021_v63 = vand.u32 4294901760, %v9747_v35  ;;  %v9858_v17 = vpack.c.bf16 %v4058_v55, %v4051_v16 }
 0x5b7   : > { %v6444_v27 = vpack.c.bf16 %v4112_v42, %v4105_v14  ;;  %v4113_v16 = vsub.f32 %v9820_v54, %v4112_v42  ;;  %v4107_v55 = vand.u32 4294901760, %v4106_v48 }
 0x5b8   : > { %3898 = vmin.xlane.f32.xlu0 %v9740_v38  ;;  %v4022_v31 = vsub.f32 %v9747_v35, %v4021_v63 }
 0x5ba   : > { %v4023_v9 = vand.u32 4294901760, %v4022_v31 }
 0x645   : > { %v9806_v56 = vpop.xlane.xlu0 %3898 }
 0x646   : > { %vm3900_vm3 = vcmp.eq.f32.partialorder %v9740_v38, %v9806_v56  ;;  %v4028_v38 = vand.u32 4294901760, %v9749_v30 }
 0x647   : > { %v3901_v26 = vsel %vm3900_vm3, %v3896_v44, inf  ;;  %v9860_v44 = vpack.c.bf16 %v4070_v19, %v4063_v1  ;;  %v4119_v19 = vand.u32 4294901760, %v9822_v13 }
 0x648   : > { %3902 = vmin.xlane.f32.xlu1 %v3901_v26  ;;  %v9835_v50 = vpack.c.bf16 %v4028_v38, %v4021_v63  ;;  %v4029_v57 = vsub.f32 %v9749_v30, %v4028_v38  ;;  %v4064_v26 = vsub.f32 %v9765_v41, %v4063_v1  ;;  %v4085_v63 = vsub.f32 %v9771_v34, %v4084_v7 }
 0x649   : > { %v4079_v38 = vand.u32 4294901760, %v4078_v52  ;;  %v4114_v1 = vand.u32 4294901760, %v4113_v16 }
 0x64a   : > { %v4030_v15 = vand.u32 4294901760, %v4029_v57  ;;  %v4065_v59 = vand.u32 4294901760, %v4064_v26  ;;  %v4086_v31 = vand.u32 4294901760, %v4085_v63  ;;  %v4091_v57 = vand.u32 4294901760, %v9773_v23 }
 0x64b   : > { %v4126_v26 = vand.u32 4294901760, %v9824_v60  ;;  %v6372_v5 = vpack.c.bf16 %v4114_v1, %v4107_v55 }
 0x64c   : > { %v9842_v47 = vpack.c.bf16 %v4030_v15, %v4023_v9  ;;  %v9866_v45 = vpack.c.bf16 %v4072_v20, %v4065_v59  ;;  %v4098_v9 = vand.u32 4294901760, %v9779_v12  ;;  %v9874_v15 = vpack.c.bf16 %v4086_v31, %v4079_v38 }
 0x64d   : > { %v4092_v32 = vsub.f32 %v9773_v23, %v4091_v57  ;;  %v6447_v59 = vpack.c.bf16 %v4126_v26, %v4119_v19  ;;  %v4120_v20 = vsub.f32 %v9822_v13, %v4119_v19  ;;  %v4127_v51 = vsub.f32 %v9824_v60, %v4126_v26 }
 0x64e   : > { %v9876_v22 = vpack.c.bf16 %v4098_v9, %v4091_v57  ;;  %v4099_v11 = vsub.f32 %v9779_v12, %v4098_v9  ;;  %v6378_v38 = vpack.c.bf16 %v9749_v30, %v9747_v35  ;;  %v6381_v31 = vpack.c.bf16 %v9755_v49, %v9751_v3 }
 0x64f   : > { %v4093_v21 = vand.u32 4294901760, %v4092_v32  ;;  %v4121_v7 = vand.u32 4294901760, %v4120_v20  ;;  %v4128_v52 = vand.u32 4294901760, %v4127_v51  ;;  %v6384_v57 = vpack.c.bf16 %v9761_v6, %v9757_v8 }
 0x650   : > { %v4100_v18 = vand.u32 4294901760, %v4099_v11  ;;  %v6387_v9 = vpack.c.bf16 %v9767_v39, %v9765_v41  ;;  %v6390_v32 = vpack.c.bf16 %v9771_v34, %v9769_v28  ;;  %v6393_v11 = vpack.c.bf16 %v9779_v12, %v9773_v23 }
 0x651   : > { %v6375_v63 = vpack.c.bf16 %v4128_v52, %v4121_v7  ;;  %v6399_v35 = vpack.c.bf16 %v9824_v60, %v9822_v13  ;;  %v3905_v30 = vcvt.f32.s32 %v9806_v56 }
 0x652   : > { %v6369_v58 = vpack.c.bf16 %v4100_v18, %v4093_v21  ;;  %v6396_v21 = vpack.c.bf16 %v9820_v54, %v9818_v40 }
 0x653   : > { %v3906_v14 = vshll.u32 %v3905_v30, 16 }
 0x6d5   : > { %v3903_v18 = vpop.xlane.xlu1 %3902 }
 0x6d6   : > { %v3904_v42 = vcvt.f32.s32 %v3903_v18 }
 0x6d8   : > { %v9905_v48 = vadd.s32 %v3906_v14, %v3904_v42 }
 0x6da   : > { %vm3908_vm5 = vcmp.eq.s32.totalorder %v9733_v24, %v9905_v48 }
 0x6db   : > { %v4780_v16 = vsel %vm3908_vm5, 1.0, %v6977_v53 }
 0x6dc   : > { %v9913_v55 = vsub.f32 %v4780_v16, %v4780_v16 }
 0x6de   : > { %v4010_v1 = vand.u32 4294901760, %v9913_v55 }
 0x6e0   : > { %5345 = vmatmul.mubr.f32.vlgmr.msra.gmra.mrb[0].mxu0 %v4010_v1  ;;  %v4011_v56 = vsub.f32 %v9913_v55, %v4010_v1 }
 0x6e1   : > { %6427 = vmatpush3.bf16.msra.mxu0 %v9835_v50  ;;  %5379 = vmatprep.mubr.msk.f32.mxu0 %vm6976_vm4, %v6977_v53  ;;  %v6978_v50 = vmov 1.0  }
 0x6e2   : > { %6428 = vmatprep.subr.bf16.mxu0 %v6975_v4  ;;  %v4012_v19 = vand.u32 4294901760, %v4011_v56 }
 0x6e4   : > { %5240 = vmatmul.mubr.f32.vlgmr.msra.gmra.mrb[0].mxu1 %v4012_v19 }
 0x6e5   : > { %6355 = vmatpush3.bf16.msra.mxu1 %v9842_v47  ;;  %6430 = vmatpush3.bf16.msra.mxu0 %v9844_v46 }
 0x6e6   : > { %6356 = vmatprep.subr.bf16.mxu1 %v6975_v4  ;;  %6431 = vmatprep.subr.bf16.mxu0 %v6975_v4 }
 0x6e7   : > { %5274 = vmatprep.mubr.msk.f32.mxu1 %vm6976_vm4, %v6977_v53 }
 0x6e9   : > { %6358 = vmatpush3.bf16.msra.mxu1 %v9850_v62  ;;  %6433 = vmatpush3.bf16.msra.mxu0 %v9852_v2 }
 0x6ea   : > { %6359 = vmatprep.subr.bf16.mxu1 %v6975_v4  ;;  %6434 = vmatprep.subr.bf16.mxu0 %v6975_v4 }
 0x6ed   : > { %6361 = vmatpush3.bf16.msra.mxu1 %v9858_v17  ;;  %6436 = vmatpush3.bf16.msra.mxu0 %v9860_v44 }
 0x6ee   : > { %6362 = vmatprep.subr.bf16.mxu1 %v6975_v4  ;;  %6437 = vmatprep.subr.bf16.mxu0 %v6975_v4 }
 0x6f1   : > { %6364 = vmatpush3.bf16.msra.mxu1 %v9866_v45  ;;  %6439 = vmatpush3.bf16.msra.mxu0 %v9868_v25 }
 0x6f2   : > { %6365 = vmatprep.subr.bf16.mxu1 %v6975_v4  ;;  %6440 = vmatprep.subr.bf16.mxu0 %v6975_v4 }
 0x6f5   : > { %6367 = vmatpush3.bf16.msra.mxu1 %v9874_v15  ;;  %6442 = vmatpush3.bf16.msra.mxu0 %v9876_v22 }
 0x6f6   : > { %6368 = vmatprep.subr.bf16.mxu1 %v6975_v4  ;;  %6443 = vmatprep.subr.bf16.mxu0 %v6975_v4 }
 0x6f9   : > { %6370 = vmatpush3.bf16.msra.mxu1 %v6369_v58  ;;  %6445 = vmatpush3.bf16.msra.mxu0 %v6444_v27 }
 0x6fa   : > { %6371 = vmatprep.subr.bf16.mxu1 %v6975_v4  ;;  %6446 = vmatprep.subr.bf16.mxu0 %v6975_v4 }
 0x6fd   : > { %6373 = vmatpush3.bf16.msra.mxu1 %v6372_v5  ;;  %6448 = vmatpush3.bf16.msra.mxu0 %v6447_v59 }
 0x6fe   : > { %6374 = vmatprep.subr.bf16.mxu1 %v6975_v4  ;;  %6449 = vmatprep.subr.bf16.mxu0 %v6975_v4 }
 0x700   : > { %5380 = vmatmul.mubr.msk.f32.vlgmr.msra.gmra.mrb[0].mxu0 %vm3908_vm5, %v6978_v50 }
 0x701   : > { %6376 = vmatpush3.bf16.msra.mxu1 %v6375_v63  ;;  %6451 = vmatpush3.bf16.msra.mxu0 %v9745_v29 }
 0x702   : > { %6377 = vmatprep.subr.bf16.mxu1 %v6975_v4  ;;  %6452 = vmatprep.subr.bf16.mxu0 %v6975_v4 }
 0x703   : > { %5414 = vmatprep.mubr.msk.f32.mxu0 %vm6976_vm4, %v6977_v53 }
 0x704   : > { %5275 = vmatmul.mubr.msk.f32.vlgmr.msra.gmra.mrb[0].mxu1 %vm3908_vm5, %v6978_v50 }
 0x705   : > { %6379 = vmatpush3.bf16.msra.mxu1 %v6378_v38  ;;  %6454 = vmatpush3.bf16.msra.mxu0 %v9753_v61 }
 0x706   : > { %6380 = vmatprep.subr.bf16.mxu1 %v6975_v4  ;;  %6455 = vmatprep.subr.bf16.mxu0 %v6975_v4 }
 0x707   : > { %5309 = vmatprep.mubr.msk.f32.mxu1 %vm6976_vm4, %v6977_v53 }
 0x709   : > { %6382 = vmatpush3.bf16.msra.mxu1 %v6381_v31  ;;  %6457 = vmatpush3.bf16.msra.mxu0 %v9777_v10 }
 0x70a   : > { %6383 = vmatprep.subr.bf16.mxu1 %v6975_v4  ;;  %6458 = vmatprep.subr.bf16.mxu0 %v6975_v4 }
 0x70d   : > { %6385 = vmatpush3.bf16.msra.mxu1 %v6384_v57  ;;  %6460 = vmatpush3.bf16.msra.mxu0 %v9785_v43 }
 0x70e   : > { %6386 = vmatprep.subr.bf16.mxu1 %v6975_v4  ;;  %6461 = vmatprep.subr.bf16.mxu0 %v6975_v4 }
 0x711   : > { %6388 = vmatpush3.bf16.msra.mxu1 %v6387_v9  ;;  %6463 = vmatpush3.bf16.msra.mxu0 %v9791_v37 }
 0x712   : > { %6389 = vmatprep.subr.bf16.mxu1 %v6975_v4  ;;  %6464 = vmatprep.subr.bf16.mxu0 %v6975_v4 }
 0x715   : > { %6391 = vmatpush3.bf16.msra.mxu1 %v6390_v32  ;;  %6466 = vmatpush3.bf16.msra.mxu0 %v9797_v0 }
 0x716   : > { %6392 = vmatprep.subr.bf16.mxu1 %v6975_v4  ;;  %6467 = vmatprep.subr.bf16.mxu0 %v6975_v4 }
 0x719   : > { %6394 = vmatpush3.bf16.msra.mxu1 %v6393_v11  ;;  %6469 = vmatpush3.bf16.msra.mxu0 %v9810_v33 }
 0x71a   : > { %6395 = vmatprep.subr.bf16.mxu1 %v6975_v4  ;;  %6470 = vmatprep.subr.bf16.mxu0 %v6975_v4 }
 0x71d   : > { %6397 = vmatpush3.bf16.msra.mxu1 %v6396_v21  ;;  %6472 = vmatpush3.bf16.msra.mxu0 %v9816_v36 }
 0x71e   : > { %6398 = vmatprep.subr.bf16.mxu1 %v6975_v4 }
 0x720   : > { %5415 = vmatmul.mubr.msk.f32.vlgmr.msra.gmra.mrb[0].mxu0 %vm3908_vm5, %v6978_v50 }
 0x721   : > { %6400 = vmatpush3.bf16.msra.mxu1 %v6399_v35 }
 0x724   : > { %5310 = vmatmul.mubr.f32.vlgmr.msra.gmra.mrb[0].mxu1 %v9913_v55 }
 0x7f3   : > { %v4564_v29 = vpop.f32.mrb[0].mxu0 }
 0x7f4   : > { %v5416_v3 = vpop.f32.mrb[1].mxu0 }
 0x7f7   : > { %v4269_v61 = vpop.f32.mrb[0].mxu1 }
 0x7f8   : > { %v6507_v49 = vadd.f32 %v4564_v29, %v4269_v61  ;;  %v5311_v8 = vpop.f32.mrb[1].mxu1 }
 0x7fa   : > { %4568 = vst [vmem:[#allocation2] sm:$0xff] %v6507_v49 }
 0x7fb PF: > { %s6979_s27 = smov [#allocation15]   ;;  %s4785_s24 = sshll.u32 %s7058_s19, 7 }
 0x7fc   : > { %s4594_s30 = sshll.u32 %s6979_s27, 4  ;;  %p11392_p3 = scmp.eq.s32.totalorder %s7058_s19, 2  ;;  %s4595_s30 = int_to_ptr.vmem [resolvable:$true] %s4594_s30 }
 0x7fd   : > { %s6826_s21 = scalar_lea.vmem %s4595_s30, 128  ;;  %p6833_p1 = scmp.lt.s32.totalorder %s4595_s30, %s4595_s30 }
 0x7fe   : > { %p6827_p7 = scmp.ne.s32.totalorder %s4595_s30, %s6826_s21  ;;  %p6834_p8 = scmp.lt.s32.totalorder %s6826_s21, %s6826_s21 }
 0x800   : > { %p6828_p4 = pnand %p6827_p7, %p11392_p3  ;;  %p6835_p9 = por %p6834_p8, %p6833_p1 }
 0x802   : > { %p6829_p10 = pneg %p6828_p4 }
 0x804   : > { %p6836_p6 = pnand %p6835_p9, %p6829_p10 }
 0x806   : > { %6839 = shalt.err (!%p6836_p6)
}
 0x807   : > { %s6840_s23 = scalar_lea.hbm %s10096_s9, 128  ;;  %p11393_p12 = pmov %p11392_p3 }
 0x808   : > { %p6841_p0 = scmp.ne.s32.totalorder %s10096_s9, %s6840_s23  ;;  %p6846_p5 = scmp.lt.u32.totalorder %s6840_s23, %s10096_s9 }
 0x80a   : > { %p6842_p2 = pnand %p6841_p0, %p11393_p12 }
 0x80c   : > { %p6843_p13 = pneg %p6842_p2 }
 0x80e   : > { %p6848_p11 = pnand %p6846_p5, %p6843_p13 }
 0x810   : > { %6851 = shalt.err (!%p6848_p11)
}
 0x811   : > { %p11394_p7 = pmov %p11392_p3  ;;  %s10027_s0 = scalar_lea.hbm %s10095_s8, %s4785_s24 }
 0x812   : > { %s4583_s29 = sshll.u32 %s7300_s11, 4  ;;  %s4570_s25 = scalar_lea.sflag [#allocation5], %s7281_s20  ;;  %s4584_s29 = int_to_ptr.vmem [resolvable:$true] %s4583_s29 }
 0x813   : > { %6540 = dma.vmem_to_hbm [thread:$0]  (%p11394_p7), %s4595_s30, 128, %s10096_s9, [#allocation16]  }
 0x814   : > { %s6852_s23 = scalar_lea.vmem %s4584_s29, 128  ;;  %p11395_p4 = scmp.ne.s32.totalorder %s10549_s12, 0 }
 0x815   : > { %p6853_p3 = scmp.ne.s32.totalorder %s4584_s29, %s6852_s23  ;;  %s6980_s28 = smov [#allocation14]  }
 0x816   : > { %s6856_s2 = sshll.u32 %s6980_s28, 4  ;;  %s6857_s2 = int_to_ptr.vmem [resolvable:$false] %s6856_s2 }
 0x817   : > { %p6854_p10 = pnand %p6853_p3, %p11395_p4  ;;  %s6858_s27 = scalar_lea.vmem %s6857_s2, 256 }
 0x818   : > { %p6859_p8 = scmp.lt.s32.totalorder %s4584_s29, %s6857_s2  ;;  %p6860_p9 = scmp.lt.s32.totalorder %s6858_s27, %s6852_s23 }
 0x819   : > { %p6855_p1 = pneg %p6854_p10 }
 0x81a   : > { %p6861_p6 = por %p6860_p9, %p6859_p8 }
 0x81c   : > { %p6862_p0 = pnand %p6861_p6, %p6855_p1 }
 0x81e   : > { %6865 = shalt.err (!%p6862_p0)
}
 0x81f   : > { %s6866_s20 = scalar_lea.hbm %s10027_s0, 128  ;;  %s6870_s24 = scalar_lea.hbm %s10095_s8, 384 }
 0x820   : > { %p6867_p12 = scmp.ne.s32.totalorder %s10027_s0, %s6866_s20  ;;  %p6871_p5 = scmp.lt.u32.totalorder %s10027_s0, %s10095_s8 }
 0x821   : > { %p6872_p11 = scmp.lt.u32.totalorder %s6870_s24, %s6866_s20  ;;  %p6874_p3 = scmp.lt.u32.totalorder %s6866_s20, %s10027_s0 }
 0x822   : > { %p6868_p2 = pnand %p6867_p12, %p11395_p4 }
 0x823   : > { %p6873_p7 = por %p6872_p11, %p6871_p5 }
 0x824   : > { %p6869_p13 = pneg %p6868_p2 }
 0x825   : > { %p6875_p10 = por %p6874_p3, %p6873_p7 }
 0x827   : > { %p6876_p1 = pnand %p6875_p10, %p6869_p13 }
 0x829   : > { %6879 = shalt.err (!%p6876_p1)
}
 0x82a   : > { %6538 = dma.vmem_to_hbm [thread:$0]  (%p11395_p4), %s4584_s29, 128, %s10027_s0, %s4570_s25  }
 0x82b   : > { %s6981_s22 = smov [#allocation17]   ;;  %p11396_p9 = scmp.eq.s32.totalorder %s7058_s19, 2 }
 0x82c   : > { %s4605_s1 = sshll.u32 %s6981_s22, 4  ;;  %s4606_s1 = int_to_ptr.vmem [resolvable:$true] %s4605_s1 }
 0x82d   : > { %s6880_s23 = scalar_lea.vmem %s4606_s1, 128  ;;  %p6887_p12 = scmp.lt.s32.totalorder %s4606_s1, %s4606_s1 }
 0x82e   : > { %p6881_p8 = scmp.ne.s32.totalorder %s4606_s1, %s6880_s23  ;;  %p6888_p2 = scmp.lt.s32.totalorder %s6880_s23, %s6880_s23 }
 0x830   : > { %p6882_p6 = pnand %p6881_p8, %p11396_p9  ;;  %p6889_p5 = por %p6888_p2, %p6887_p12 }
 0x832   : > { %p6883_p0 = pneg %p6882_p6 }
 0x834   : > { %p6890_p11 = pnand %p6889_p5, %p6883_p0 }
 0x836   : > { %6893 = shalt.err (!%p6890_p11)
}
 0x837   : > { %s6894_s12 = scalar_lea.hbm %s10097_s10, 128  ;;  %p11397_p13 = pmov %p11396_p9 }
 0x838   : > { %p6895_p4 = scmp.ne.s32.totalorder %s10097_s10, %s6894_s12  ;;  %p6900_p10 = scmp.lt.u32.totalorder %s6894_s12, %s10097_s10 }
 0x83a   : > { %p6896_p7 = pnand %p6895_p4, %p11397_p13 }
 0x83c   : > { %p6897_p3 = pneg %p6896_p7 }
 0x83e   : > { %p6902_p1 = pnand %p6900_p10, %p6897_p3 }
 0x840   : > { %6905 = shalt.err (!%p6902_p1)
}
 0x841   : > { %p11398_p8 = pmov %p11396_p9 }
 0x843   : > { %6542 = dma.vmem_to_hbm [thread:$0]  (%p11398_p8), %s4606_s1, 128, %s10097_s10, [#allocation16]  }
 0x844   : > { %p11399_p9 = pmov %p11398_p8 }
 0x845   : > { %p11400_p6 = pmov %p11398_p8 }
 0x846   : > { %6939 = dma.done.wait (%p11399_p9), [#allocation16], 256  }
 0x847   : > { %6941 = vsyncadd (%p11400_p6), [#allocation16], 4294967040 }
 0x848 PF: > { %p6587_p0 = scmp.ge.s32.totalorder %s6960_s16, 2  ;;  %s4625_s24 = sand.u32 1, %s6948_s13  }
 0x849   : > { %p11401_p12 = scmp.ne.s32.totalorder %s10550_s18, 0  ;;  %s4626_s21 = scalar_lea.sflag [#allocation5], %s4625_s24 }
 0x84b   : > { %p6569_p2 = pnand %p6587_p0, %p11401_p12 }
 0x84d   : > { %6943 = dma.done.wait (!%p6569_p2), %s4626_s21, 128  }
 0x84e   : > { %6945 = vsyncadd (!%p6569_p2), %s4626_s21, 4294967168  ;;  %p28_p5 = scmp.ge.s32.totalorder %s7191_s26, 5   ;;  %s11402_s13 = smov %s6952_s14 }
 0x84f   : > { %s11403_s14 = smov %s6956_s15  ;;  %s11404_s15 = smov %s7203_s17 }
 0x850   : > { %s11405_s16 = smov %s7191_s26  ;;  %30 = sbr.rel (!%p28_p5) target bundleno = 13 (0xd), region = 145 }
 0x857   :  { %4631 = vsyncpa [#allocation4], 1 }
 0x858   :  { %4633 = vsyncpa [#allocation4 + $0x1], 1 }
 0x859   :  { %4634 = vsyncpa [#allocation7], 1 }
 0x85a   :  { %4635 = vsyncpa [#allocation10], 1 }
 0x85b   :  { %4636 = vsyncpa [#allocation13], 1 }
 0x85c   :  { %4638 = vsyncpa [#allocation13 + $0x1], 1 }
 0x85d   :  { %4639 = vsyncpa [#allocation5], 1 }
 0x85e   :  { %4641 = vsyncpa [#allocation5 + $0x1], 1 }
 0x85f   :  { %4642 = vsyncpa [#allocation16], 1 }

</bundles_post_ra>
